<compile_context>
chip_gen: v7x
topology: tpu7x:2x2x1
jax: 0.10.0
libtpu: 0.0.40
codegen_flags: <defaults>
</compile_context>

<pallas_src>
import functools

import jax
import jax.numpy as jnp
from jax.experimental import pallas as pl
from jax.experimental.pallas import tpu as pltpu


def _elu(x):
    # ELU(alpha=1); clamp the exp argument so the discarded branch cannot overflow.
    return jnp.where(x > 0, x, jnp.exp(jnp.minimum(x, 0.0)) - 1.0)


def _vmem_budget_bytes():
    """Per-generation VMEM budget (v5e/v6e: 128 MiB physical, v7x: 64 MiB)."""
    try:
        cap = int(pltpu.get_tpu_info().vmem_capacity_bytes)
    except Exception:
        cap = 64 * 1024 * 1024                 # conservative (v7x-sized) fallback
    return max(16 * 1024 * 1024, (cap * 3) // 4)


def _pick_block(seq_len, per_step_bytes, budget_bytes, multiple=1):
    """Largest divisor of seq_len (preferring multiples of `multiple`) fitting the budget."""
    divisors = [d for d in range(1, seq_len + 1) if seq_len % d == 0]
    cands = [d for d in divisors if d % multiple == 0] or divisors
    fitting = [d for d in cands if d * per_step_bytes <= budget_bytes]
    return max(fitting) if fitting else min(cands)


# --------------- kernel A: encoder (fused input projection + recurrence) -------------
def _enc_seq_kernel(x_ref, wih_ref, whh_ref, b_ref, enc_ref, h_ref, *, steps, hidden):
    """Per grid step: `steps` timesteps of  gates = x@Wih + h@Whh + b ; LSTMCell(h, h)."""
    @pl.when(pl.program_id(0) == 0)
    def _():
        h_ref[...] = jnp.zeros_like(h_ref)

    H = hidden

    def body(u, carry):
        x = x_ref[u]                                    # (B, C)  compute dtype
        h = h_ref[...]                                  # (B, H)  f32
        # One lane-packed matmul per operand; gate order [i | f | g | o] along 4H lanes.
        gates = (jnp.dot(x, wih_ref[u], preferred_element_type=jnp.float32)
                 + jnp.dot(h.astype(x.dtype), whh_ref[u],
                           preferred_element_type=jnp.float32)
                 + b_ref[u])                            # (B, 4H) f32
        i_g = jax.nn.sigmoid(gates[:, 0 * H:1 * H])
        f_g = jax.nn.sigmoid(gates[:, 1 * H:2 * H])
        g_g = jnp.tanh(gates[:, 2 * H:3 * H])
        o_g = jax.nn.sigmoid(gates[:, 3 * H:4 * H])
        c_new = f_g * h + i_g * g_g                     # module passes (h, h): cell == h
        h_new = o_g * jnp.tanh(c_new)
        h_ref[...] = h_new                              # carry the raw hidden state
        enc_ref[u] = _elu(h_new).astype(enc_ref.dtype)  # ELU fused into the epilogue
        return carry

    jax.lax.fori_loop(0, steps, body, 0, unroll=True)


# --------------- kernel B: decoder + segmented accumulation + tanh + reverse ---------
def _dec_kernel(enc_ref, w_ref, b_ref, out_ref, acc_ref, *, steps, res, nc):
    """Decoder steps idx = s*steps + u.  h_prev = c_prev = 0 -> no recurrence and the
    forget gate is dropped.  The res-segmented accumulation, the final tanh and the
    time reversal are fused; the output block is written in final position order."""
    s = pl.program_id(0)
    C = nc

    def body(u, carry):
        idx = s * steps + u
        t_in = enc_ref[steps - 1 - u]                   # (B, H) == enc[T - 1 - idx]
        gates = (jnp.dot(t_in, w_ref[u], preferred_element_type=jnp.float32)
                 + b_ref[u])                            # (B, 3C): [i | g | o] on lanes
        i_g = jax.nn.sigmoid(gates[:, 0 * C:1 * C])
        g_g = jnp.tanh(gates[:, 1 * C:2 * C])
        o_g = jax.nn.sigmoid(gates[:, 2 * C:3 * C])
        hd = o_g * jnp.tanh(i_g * g_g)                  # c_new = i*g since c_prev == 0
        acc = jnp.where(idx % res == 0, hd, hd + acc_ref[...])
        acc_ref[...] = acc
        out_ref[steps - 1 - u] = jnp.tanh(acc)          # reverse fused via store index
        return carry

    jax.lax.fori_loop(0, steps, body, 0, unroll=True)


# ------------------------------------ parameter prep ---------------------------------
def prepare_params(enc_wih, enc_whh, enc_bih, enc_bhh,
                   dec_wih, dec_bih, dec_bhh, *,
                   hidden_size, input_size, param_dtype=jnp.bfloat16):
    """Rearranges per-step nn.LSTMCell parameters into lane-packed layouts.

    enc_wih: (T, 4H, C)  enc_whh: (T, 4H, H)  enc_b*: (T, 4H)
    dec_wih: (T, 4C, H)  dec_b*:  (T, 4C)     (PyTorch gate order [i, f, g, o])
    """
    H, C = hidden_size, input_size
    enc_wih_p = jnp.transpose(enc_wih, (0, 2, 1)).astype(param_dtype)          # (T, C, 4H)
    enc_whh_p = jnp.transpose(enc_whh, (0, 2, 1)).astype(param_dtype)          # (T, H, 4H)
    enc_b = (enc_bih + enc_bhh).astype(jnp.float32)[:, None, :]                # (T, 1, 4H)
    # decoder: c_prev == 0 so the forget gate never contributes -> keep [i, g, o].
    keep = jnp.concatenate([jnp.arange(0, C), jnp.arange(2 * C, 3 * C),
                            jnp.arange(3 * C, 4 * C)])
    dec_wih_p = jnp.transpose(dec_wih[:, keep, :], (0, 2, 1)).astype(param_dtype)  # (T, H, 3C)
    dec_b = (dec_bih + dec_bhh)[:, keep].astype(jnp.float32)[:, None, :]       # (T, 1, 3C)
    return dict(enc_wih_p=enc_wih_p, enc_whh_p=enc_whh_p, enc_b=enc_b,
                dec_wih_p=dec_wih_p, dec_b=dec_b)


# ---------------------------------------- forward ------------------------------------
def asc_lstm_forward(x, params, *, hidden_size, seq_len, res, alpha,
                     vmem_budget_bytes=None):
    """x: (B, C, T) like the PyTorch module.  Returns (B, C, T) float32."""
    B, C, T = x.shape
    assert T == seq_len
    H = hidden_size
    cdt = params["enc_wih_p"].dtype                 # matmul/storage dtype (bf16 or f32)
    pb = jnp.dtype(cdt).itemsize

    budget = _vmem_budget_bytes() if vmem_budget_bytes is None else vmem_budget_bytes
    # raw per-timestep VMEM bytes (inputs + outputs); assume up to triple buffering.
    enc_step_bytes = (B * C + C * 4 * H + H * 4 * H + B * H) * pb + 4 * H * 4
    dec_step_bytes = (B * H + H * 3 * C) * pb + (3 * C + B * C) * 4
    blk_budget = (budget * 4 // 5) // 3

    us = _pick_block(T, enc_step_bytes, blk_budget)
    ud = _pick_block(T, dec_step_bytes, blk_budget,
                     multiple=(res if T % res == 0 else 1))
    n_enc, n_dec = T // us, T // ud

    x_t = jnp.transpose(x, (2, 0, 1)).astype(cdt)   # (T, B, C)

    # ---- kernel A: encoder recurrence with fused input projection (sequential) ----
    weight_bufs = 3 if n_enc >= 3 else 2            # deeper pipelining of the big DMAs

    def _wspec(shape, imap):
        if weight_bufs > 2:
            return pl.BlockSpec(shape, imap, pipeline_mode=pl.Buffered(weight_bufs))
        return pl.BlockSpec(shape, imap)

    enc = pl.pallas_call(
        functools.partial(_enc_seq_kernel, steps=us, hidden=H),
        out_shape=jax.ShapeDtypeStruct((T, B, H), cdt),
        grid_spec=pltpu.PrefetchScalarGridSpec(
            num_scalar_prefetch=0,
            grid=(n_enc,),
            in_specs=[
                pl.BlockSpec((us, B, C), lambda s: (s, 0, 0)),
                _wspec((us, C, 4 * H), lambda s: (s, 0, 0)),
                _wspec((us, H, 4 * H), lambda s: (s, 0, 0)),
                pl.BlockSpec((us, 1, 4 * H), lambda s: (s, 0, 0)),
            ],
            out_specs=pl.BlockSpec((us, B, H), lambda s: (s, 0, 0)),
            scratch_shapes=[pltpu.VMEM((B, H), jnp.float32)],
        ),
        compiler_params=pltpu.CompilerParams(
            dimension_semantics=("arbitrary",),      # true recurrence: sequential blocks
            vmem_limit_bytes=budget),
        # TODO(synk): on v7x megacore, split the batch across the two TensorCores with
        # pl.core_map for this (otherwise serial) kernel.
    )(x_t, params["enc_wih_p"], params["enc_whh_p"], params["enc_b"])

    # ---- alpha mixing of rows at multiples of `res` (first-order linear recurrence) ----
    # idx = 0 reads the *pre-mix* value of enc[-res] == enc[T - res], produced later in
    # time, so this cannot be fused into the sequential encoder kernel.
    mix_idx = jnp.arange(0, T, res)
    seed = enc[(0 - res) % T].astype(jnp.float32)
    rows = enc[mix_idx].astype(jnp.float32)                        # (K, B, H)
    K = rows.shape[0]
    a = jnp.full((K, 1, 1), 1.0 - alpha, jnp.float32).at[0].set(0.0)
    b = (alpha * rows).at[0].add((1.0 - alpha) * seed)

    def _compose(lo, hi):                       # y <- a*y + b composition (associative)
        a_lo, b_lo = lo
        a_hi, b_hi = hi
        return a_lo * a_hi, a_hi * b_lo + b_hi

    _, mixed = jax.lax.associative_scan(_compose, (a, b))
    enc = enc.at[mix_idx].set(mixed.astype(enc.dtype))

    # ---- kernel B: decoder + segmented accumulation + tanh + time reversal ----
    dec_parallel = (ud % res == 0)              # blocks self-contained -> megacore-friendly
    dec = pl.pallas_call(
        functools.partial(_dec_kernel, steps=ud, res=res, nc=C),
        out_shape=jax.ShapeDtypeStruct((T, B, C), jnp.float32),
        grid_spec=pltpu.PrefetchScalarGridSpec(
            num_scalar_prefetch=0,
            grid=(n_dec,),
            in_specs=[
                # decoder idx block s consumes enc rows [T-(s+1)*ud, T-s*ud).
                pl.BlockSpec((ud, B, H), lambda s: (n_dec - 1 - s, 0, 0)),
                pl.BlockSpec((ud, H, 3 * C), lambda s: (s, 0, 0)),
                pl.BlockSpec((ud, 1, 3 * C), lambda s: (s, 0, 0)),
            ],
            # results for idx block s land at output positions [T-(s+1)*ud, T-s*ud).
            out_specs=pl.BlockSpec((ud, B, C), lambda s: (n_dec - 1 - s, 0, 0)),
            scratch_shapes=[pltpu.VMEM((B, C), jnp.float32)],
        ),
        compiler_params=pltpu.CompilerParams(
            dimension_semantics=("parallel",) if dec_parallel else ("arbitrary",),
            vmem_limit_bytes=budget),
    )(enc, params["dec_wih_p"], params["dec_b"])

    # dec is already accumulated, tanh-ed and in final position order.
    # TODO(synk): with input_size this small (C=4 lanes) an in-kernel (B, C, T) layout
    # needs a per-step lane<->sublane relayout; keep the single cheap XLA permute.
    return jnp.transpose(dec, (1, 2, 0))        # (B, C, T)


# ----------------------------- pure-JAX reference (check) ----------------------------
def reference_forward(x, enc_wih, enc_whh, enc_bih, enc_bhh,
                      dec_wih, dec_bih, dec_bhh, H, T, res, alpha):
    B, C, _ = x.shape
    h = jnp.zeros((B, H), jnp.float32)
    enc_li = []
    for t in range(T):
        xt = x[:, :, t]
        g = xt @ enc_wih[t].T + enc_bih[t] + h @ enc_whh[t].T + enc_bhh[t]
        i_g = jax.nn.sigmoid(g[:, 0:H]); f_g = jax.nn.sigmoid(g[:, H:2 * H])
        g_g = jnp.tanh(g[:, 2 * H:3 * H]); o_g = jax.nn.sigmoid(g[:, 3 * H:4 * H])
        c = f_g * h + i_g * g_g
        h = o_g * jnp.tanh(c)
        enc_li.append(h)
    enc = _elu(jnp.stack(enc_li))
    for idx in range(T):
        if idx % res == 0:
            enc = enc.at[idx].set(alpha * enc[idx] + (1.0 - alpha) * enc[idx - res])
    dec = jnp.zeros((T, B, C), jnp.float32)
    for idx in range(T):
        t_in = enc[T - idx - 1]
        g = t_in @ dec_wih[idx].T + dec_bih[idx] + dec_bhh[idx]
        i_g = jax.nn.sigmoid(g[:, 0:C])
        g_g = jnp.tanh(g[:, 2 * C:3 * C])
        o_g = jax.nn.sigmoid(g[:, 3 * C:4 * C])
        hd = o_g * jnp.tanh(i_g * g_g)
        val = hd if idx % res == 0 else hd + dec[T - idx]
        dec = dec.at[T - idx - 1].set(val)
    return jnp.transpose(jnp.tanh(dec), (1, 2, 0))


if __name__ == "__main__":
    B, C, H, T, RES, ALPHA = 2, 4, 32, 8, 2, 0.5

    key = jax.random.PRNGKey(0)
    ks = jax.random.split(key, 8)
    es = 1.0 / float(H) ** 0.5
    ds = 1.0 / float(C) ** 0.5
    # Deterministic synthetic parameters (shapes from nn.LSTMCell, one per step).
    enc_wih = jax.random.uniform(ks[0], (T, 4 * H, C), jnp.float32, -es, es)
    enc_whh = jax.random.uniform(ks[1], (T, 4 * H, H), jnp.float32, -es, es)
    enc_bih = jax.random.uniform(ks[2], (T, 4 * H), jnp.float32, -es, es)
    enc_bhh = jax.random.uniform(ks[3], (T, 4 * H), jnp.float32, -es, es)
    dec_wih = jax.random.uniform(ks[4], (T, 4 * C, H), jnp.float32, -ds, ds)
    dec_bih = jax.random.uniform(ks[5], (T, 4 * C), jnp.float32, -ds, ds)
    dec_bhh = jax.random.uniform(ks[6], (T, 4 * C), jnp.float32, -ds, ds)
    x = jax.random.normal(ks[7], (B, C, T), jnp.float32)

    params = prepare_params(enc_wih, enc_whh, enc_bih, enc_bhh,
                            dec_wih, dec_bih, dec_bhh,
                            hidden_size=H, input_size=C,
                            param_dtype=jnp.bfloat16)

    fwd = jax.jit(functools.partial(asc_lstm_forward, hidden_size=H, seq_len=T,
                                    res=RES, alpha=ALPHA))
    out = jax.block_until_ready(fwd(x, params))
    assert out.shape == (B, C, T)

    ref = reference_forward(x, enc_wih, enc_whh, enc_bih, enc_bhh,
                            dec_wih, dec_bih, dec_bhh, H, T, RES, ALPHA)
    err = float(jnp.max(jnp.abs(out - ref)))
    # bf16 matmul operands vs. the f32 reference -> loosened tolerance (per review note).
    if not (err < 5e-2):
        raise AssertionError(f"Pallas/reference mismatch, max abs err = {err}")

    print("KERNEL_OK")
</pallas_src>

<mosaic_0001>
module attributes {stable_mosaic.version = 11 : i64} {
  func.func @_enc_seq_kernel(%arg0: i32, %arg1: memref<8x2x4xbf16, #tpu.memory_space<vmem>>, %arg2: memref<8x4x128xbf16, #tpu.memory_space<vmem>>, %arg3: memref<8x32x128xbf16, #tpu.memory_space<vmem>>, %arg4: memref<8x1x128xf32, #tpu.memory_space<vmem>>, %arg5: memref<8x2x32xbf16, #tpu.memory_space<vmem>>, %arg6: memref<2x32xf32, #tpu.memory_space<vmem>>) attributes {dimension_semantics = [#tpu.dimension_semantics<arbitrary>], iteration_bounds = array<i64: 1>, scalar_prefetch = 0 : i64, scratch_operands = 1 : i64, tpu.core_type = #tpu.core_type<tc>, window_params = [{transform_indices = @transform_0, window_bounds = array<i64: 8, 2, 4>}, {transform_indices = @transform_1, window_bounds = array<i64: 8, 4, 128>}, {transform_indices = @transform_2, window_bounds = array<i64: 8, 32, 128>}, {transform_indices = @transform_3, window_bounds = array<i64: 8, 1, 128>}, {transform_indices = @transform_4, window_bounds = array<i64: 8, 2, 32>}]} {
    %c0_i32 = arith.constant 0 : i32
    %0 = arith.cmpi eq, %arg0, %c0_i32 : i32
    %1 = arith.extui %0 : i1 to i32
    %c0_i32_0 = arith.constant 0 : i32
    %2 = arith.cmpi ne, %1, %c0_i32_0 : i32
    scf.if %2 {
      %cst_176 = arith.constant 0.000000e+00 : f32
      %467 = vector.broadcast %cst_176 : f32 to vector<2x32xf32>
      %c0_177 = arith.constant 0 : index
      %c0_178 = arith.constant 0 : index
      %468 = vector.load %arg6[%c0_177, %c0_178] : memref<2x32xf32, #tpu.memory_space<vmem>>, vector<2x32xf32>
      tpu.vector_store %arg6[%c0_177, %c0_178], %467 {strides = array<i32>} : memref<2x32xf32, #tpu.memory_space<vmem>>, vector<2x32xf32>,
    } else {
    }
    %c0_i32_1 = arith.constant 0 : i32
    %3 = arith.index_cast %c0_i32_1 : i32 to index
    %c0 = arith.constant 0 : index
    %c0_2 = arith.constant 0 : index
    %4 = vector.load %arg1[%3, %c0, %c0_2] : memref<8x2x4xbf16, #tpu.memory_space<vmem>>, vector<1x2x4xbf16>
    %5 = vector.shape_cast %4 : vector<1x2x4xbf16> to vector<2x4xbf16>
    %c0_3 = arith.constant 0 : index
    %c0_4 = arith.constant 0 : index
    %6 = vector.load %arg6[%c0_3, %c0_4] : memref<2x32xf32, #tpu.memory_space<vmem>>, vector<2x32xf32>
    %7 = arith.index_cast %c0_i32_1 : i32 to index
    %c0_5 = arith.constant 0 : index
    %c0_6 = arith.constant 0 : index
    %8 = vector.load %arg2[%7, %c0_5, %c0_6] : memref<8x4x128xbf16, #tpu.memory_space<vmem>>, vector<1x4x128xbf16>
    %9 = vector.shape_cast %8 : vector<1x4x128xbf16> to vector<4x128xbf16>
    %cst = arith.constant dense<0.000000e+00> : vector<2x128xf32>
    %10 = tpu.matmul %5, %9, %cst {dimension_numbers = #tpu.dot_dimension_numbers<[1], [0], [0], [1], [0, 0, 1, 1], [], []>} : vector<2x4xbf16>, vector<4x128xbf16>, vector<2x128xf32> -> vector<2x128xf32>
    %11 = arith.truncf %6 : vector<2x32xf32> to vector<2x32xbf16>
    %12 = arith.index_cast %c0_i32_1 : i32 to index
    %c0_7 = arith.constant 0 : index
    %c0_8 = arith.constant 0 : index
    %13 = vector.load %arg3[%12, %c0_7, %c0_8] : memref<8x32x128xbf16, #tpu.memory_space<vmem>>, vector<1x32x128xbf16>
    %14 = vector.shape_cast %13 : vector<1x32x128xbf16> to vector<32x128xbf16>
    %cst_9 = arith.constant dense<0.000000e+00> : vector<2x128xf32>
    %15 = tpu.matmul %11, %14, %cst_9 {dimension_numbers = #tpu.dot_dimension_numbers<[1], [0], [0], [1], [0, 0, 1, 1], [], []>} : vector<2x32xbf16>, vector<32x128xbf16>, vector<2x128xf32> -> vector<2x128xf32>
    %16 = arith.addf %10, %15 : vector<2x128xf32>
    %17 = arith.index_cast %c0_i32_1 : i32 to index
    %c0_10 = arith.constant 0 : index
    %c0_11 = arith.constant 0 : index
    %18 = vector.load %arg4[%17, %c0_10, %c0_11] : memref<8x1x128xf32, #tpu.memory_space<vmem>>, vector<1x1x128xf32>
    %19 = vector.shape_cast %18 : vector<1x1x128xf32> to vector<1x128xf32>
    %20 = vector.broadcast %19 : vector<1x128xf32> to vector<2x128xf32>
    %21 = arith.addf %16, %20 : vector<2x128xf32>
    %22 = vector.extract_strided_slice %21 {offsets = [0, 0], sizes = [2, 32], strides = [1, 1]} : vector<2x128xf32> to vector<2x32xf32>
    %23 = arith.negf %22 : vector<2x32xf32>
    %24 = math.exp %23 : vector<2x32xf32>
    %cst_12 = arith.constant 1.000000e+00 : f32
    %25 = vector.broadcast %cst_12 : f32 to vector<2x32xf32>
    %26 = arith.addf %25, %24 : vector<2x32xf32>
    %27 = arith.divf %25, %26 : vector<2x32xf32>
    %28 = vector.extract_strided_slice %21 {offsets = [0, 32], sizes = [2, 32], strides = [1, 1]} : vector<2x128xf32> to vector<2x32xf32>
    %29 = arith.negf %28 : vector<2x32xf32>
    %30 = math.exp %29 : vector<2x32xf32>
    %cst_13 = arith.constant 1.000000e+00 : f32
    %31 = vector.broadcast %cst_13 : f32 to vector<2x32xf32>
    %32 = arith.addf %31, %30 : vector<2x32xf32>
    %33 = arith.divf %31, %32 : vector<2x32xf32>
    %34 = vector.extract_strided_slice %21 {offsets = [0, 64], sizes = [2, 32], strides = [1, 1]} : vector<2x128xf32> to vector<2x32xf32>
    %35 = math.tanh %34 : vector<2x32xf32>
    %36 = vector.extract_strided_slice %21 {offsets = [0, 96], sizes = [2, 32], strides = [1, 1]} : vector<2x128xf32> to vector<2x32xf32>
    %37 = arith.negf %36 : vector<2x32xf32>
    %38 = math.exp %37 : vector<2x32xf32>
    %cst_14 = arith.constant 1.000000e+00 : f32
    %39 = vector.broadcast %cst_14 : f32 to vector<2x32xf32>
    %40 = arith.addf %39, %38 : vector<2x32xf32>
    %41 = arith.divf %39, %40 : vector<2x32xf32>
    %42 = arith.mulf %33, %6 : vector<2x32xf32>
    %43 = arith.mulf %27, %35 : vector<2x32xf32>
    %44 = arith.addf %42, %43 : vector<2x32xf32>
    %45 = math.tanh %44 : vector<2x32xf32>
    %46 = arith.mulf %41, %45 : vector<2x32xf32>
    %c0_15 = arith.constant 0 : index
    %c0_16 = arith.constant 0 : index
    %47 = vector.load %arg6[%c0_15, %c0_16] : memref<2x32xf32, #tpu.memory_space<vmem>>, vector<2x32xf32>
    tpu.vector_store %arg6[%c0_15, %c0_16], %46 {strides = array<i32>} : memref<2x32xf32, #tpu.memory_space<vmem>>, vector<2x32xf32>,
    %cst_17 = arith.constant 0.000000e+00 : f32
    %48 = vector.broadcast %cst_17 : f32 to vector<2x32xf32>
    %49 = arith.cmpf ogt, %46, %48 : vector<2x32xf32>
    %cst_18 = arith.constant 0.000000e+00 : f32
    %50 = vector.broadcast %cst_18 : f32 to vector<2x32xf32>
    %51 = arith.minimumf %46, %50 : vector<2x32xf32>
    %52 = math.exp %51 : vector<2x32xf32>
    %cst_19 = arith.constant 1.000000e+00 : f32
    %53 = vector.broadcast %cst_19 : f32 to vector<2x32xf32>
    %54 = arith.subf %52, %53 : vector<2x32xf32>
    %55 = arith.select %49, %46, %54 : vector<2x32xi1>, vector<2x32xf32>
    %56 = arith.truncf %55 : vector<2x32xf32> to vector<2x32xbf16>
    %57 = arith.index_cast %c0_i32_1 : i32 to index
    %c0_20 = arith.constant 0 : index
    %c0_21 = arith.constant 0 : index
    %58 = vector.load %arg5[%57, %c0_20, %c0_21] : memref<8x2x32xbf16, #tpu.memory_space<vmem>>, vector<1x2x32xbf16>
    %59 = vector.shape_cast %58 : vector<1x2x32xbf16> to vector<2x32xbf16>
    %60 = vector.shape_cast %56 : vector<2x32xbf16> to vector<1x2x32xbf16>
    tpu.vector_store %arg5[%57, %c0_20, %c0_21], %60 {strides = array<i32>} : memref<8x2x32xbf16, #tpu.memory_space<vmem>>, vector<1x2x32xbf16>,
    %c1_i32 = arith.constant 1 : i32
    %61 = arith.index_cast %c1_i32 : i32 to index
    %c0_22 = arith.constant 0 : index
    %c0_23 = arith.constant 0 : index
    %62 = vector.load %arg1[%61, %c0_22, %c0_23] : memref<8x2x4xbf16, #tpu.memory_space<vmem>>, vector<1x2x4xbf16>
    %63 = vector.shape_cast %62 : vector<1x2x4xbf16> to vector<2x4xbf16>
    %c0_24 = arith.constant 0 : index
    %c0_25 = arith.constant 0 : index
    %64 = vector.load %arg6[%c0_24, %c0_25] : memref<2x32xf32, #tpu.memory_space<vmem>>, vector<2x32xf32>
    %65 = arith.index_cast %c1_i32 : i32 to index
    %c0_26 = arith.constant 0 : index
    %c0_27 = arith.constant 0 : index
    %66 = vector.load %arg2[%65, %c0_26, %c0_27] : memref<8x4x128xbf16, #tpu.memory_space<vmem>>, vector<1x4x128xbf16>
    %67 = vector.shape_cast %66 : vector<1x4x128xbf16> to vector<4x128xbf16>
    %cst_28 = arith.constant dense<0.000000e+00> : vector<2x128xf32>
    %68 = tpu.matmul %63, %67, %cst_28 {dimension_numbers = #tpu.dot_dimension_numbers<[1], [0], [0], [1], [0, 0, 1, 1], [], []>} : vector<2x4xbf16>, vector<4x128xbf16>, vector<2x128xf32> -> vector<2x128xf32>
    %69 = arith.truncf %64 : vector<2x32xf32> to vector<2x32xbf16>
    %70 = arith.index_cast %c1_i32 : i32 to index
    %c0_29 = arith.constant 0 : index
    %c0_30 = arith.constant 0 : index
    %71 = vector.load %arg3[%70, %c0_29, %c0_30] : memref<8x32x128xbf16, #tpu.memory_space<vmem>>, vector<1x32x128xbf16>
    %72 = vector.shape_cast %71 : vector<1x32x128xbf16> to vector<32x128xbf16>
    %cst_31 = arith.constant dense<0.000000e+00> : vector<2x128xf32>
    %73 = tpu.matmul %69, %72, %cst_31 {dimension_numbers = #tpu.dot_dimension_numbers<[1], [0], [0], [1], [0, 0, 1, 1], [], []>} : vector<2x32xbf16>, vector<32x128xbf16>, vector<2x128xf32> -> vector<2x128xf32>
    %74 = arith.addf %68, %73 : vector<2x128xf32>
    %75 = arith.index_cast %c1_i32 : i32 to index
    %c0_32 = arith.constant 0 : index
    %c0_33 = arith.constant 0 : index
    %76 = vector.load %arg4[%75, %c0_32, %c0_33] : memref<8x1x128xf32, #tpu.memory_space<vmem>>, vector<1x1x128xf32>
    %77 = vector.shape_cast %76 : vector<1x1x128xf32> to vector<1x128xf32>
    %78 = vector.broadcast %77 : vector<1x128xf32> to vector<2x128xf32>
    %79 = arith.addf %74, %78 : vector<2x128xf32>
    %80 = vector.extract_strided_slice %79 {offsets = [0, 0], sizes = [2, 32], strides = [1, 1]} : vector<2x128xf32> to vector<2x32xf32>
    %81 = arith.negf %80 : vector<2x32xf32>
    %82 = math.exp %81 : vector<2x32xf32>
    %cst_34 = arith.constant 1.000000e+00 : f32
    %83 = vector.broadcast %cst_34 : f32 to vector<2x32xf32>
    %84 = arith.addf %83, %82 : vector<2x32xf32>
    %85 = arith.divf %83, %84 : vector<2x32xf32>
    %86 = vector.extract_strided_slice %79 {offsets = [0, 32], sizes = [2, 32], strides = [1, 1]} : vector<2x128xf32> to vector<2x32xf32>
    %87 = arith.negf %86 : vector<2x32xf32>
    %88 = math.exp %87 : vector<2x32xf32>
    %cst_35 = arith.constant 1.000000e+00 : f32
    %89 = vector.broadcast %cst_35 : f32 to vector<2x32xf32>
    %90 = arith.addf %89, %88 : vector<2x32xf32>
    %91 = arith.divf %89, %90 : vector<2x32xf32>
    %92 = vector.extract_strided_slice %79 {offsets = [0, 64], sizes = [2, 32], strides = [1, 1]} : vector<2x128xf32> to vector<2x32xf32>
    %93 = math.tanh %92 : vector<2x32xf32>
    %94 = vector.extract_strided_slice %79 {offsets = [0, 96], sizes = [2, 32], strides = [1, 1]} : vector<2x128xf32> to vector<2x32xf32>
    %95 = arith.negf %94 : vector<2x32xf32>
    %96 = math.exp %95 : vector<2x32xf32>
    %cst_36 = arith.constant 1.000000e+00 : f32
    %97 = vector.broadcast %cst_36 : f32 to vector<2x32xf32>
    %98 = arith.addf %97, %96 : vector<2x32xf32>
    %99 = arith.divf %97, %98 : vector<2x32xf32>
    %100 = arith.mulf %91, %64 : vector<2x32xf32>
    %101 = arith.mulf %85, %93 : vector<2x32xf32>
    %102 = arith.addf %100, %101 : vector<2x32xf32>
    %103 = math.tanh %102 : vector<2x32xf32>
    %104 = arith.mulf %99, %103 : vector<2x32xf32>
    %c0_37 = arith.constant 0 : index
    %c0_38 = arith.constant 0 : index
    %105 = vector.load %arg6[%c0_37, %c0_38] : memref<2x32xf32, #tpu.memory_space<vmem>>, vector<2x32xf32>
    tpu.vector_store %arg6[%c0_37, %c0_38], %104 {strides = array<i32>} : memref<2x32xf32, #tpu.memory_space<vmem>>, vector<2x32xf32>,
    %cst_39 = arith.constant 0.000000e+00 : f32
    %106 = vector.broadcast %cst_39 : f32 to vector<2x32xf32>
    %107 = arith.cmpf ogt, %104, %106 : vector<2x32xf32>
    %cst_40 = arith.constant 0.000000e+00 : f32
    %108 = vector.broadcast %cst_40 : f32 to vector<2x32xf32>
    %109 = arith.minimumf %104, %108 : vector<2x32xf32>
    %110 = math.exp %109 : vector<2x32xf32>
    %cst_41 = arith.constant 1.000000e+00 : f32
    %111 = vector.broadcast %cst_41 : f32 to vector<2x32xf32>
    %112 = arith.subf %110, %111 : vector<2x32xf32>
    %113 = arith.select %107, %104, %112 : vector<2x32xi1>, vector<2x32xf32>
    %114 = arith.truncf %113 : vector<2x32xf32> to vector<2x32xbf16>
    %115 = arith.index_cast %c1_i32 : i32 to index
    %c0_42 = arith.constant 0 : index
    %c0_43 = arith.constant 0 : index
    %116 = vector.load %arg5[%115, %c0_42, %c0_43] : memref<8x2x32xbf16, #tpu.memory_space<vmem>>, vector<1x2x32xbf16>
    %117 = vector.shape_cast %116 : vector<1x2x32xbf16> to vector<2x32xbf16>
    %118 = vector.shape_cast %114 : vector<2x32xbf16> to vector<1x2x32xbf16>
    tpu.vector_store %arg5[%115, %c0_42, %c0_43], %118 {strides = array<i32>} : memref<8x2x32xbf16, #tpu.memory_space<vmem>>, vector<1x2x32xbf16>,
    %c2_i32 = arith.constant 2 : i32
    %119 = arith.index_cast %c2_i32 : i32 to index
    %c0_44 = arith.constant 0 : index
    %c0_45 = arith.constant 0 : index
    %120 = vector.load %arg1[%119, %c0_44, %c0_45] : memref<8x2x4xbf16, #tpu.memory_space<vmem>>, vector<1x2x4xbf16>
    %121 = vector.shape_cast %120 : vector<1x2x4xbf16> to vector<2x4xbf16>
    %c0_46 = arith.constant 0 : index
    %c0_47 = arith.constant 0 : index
    %122 = vector.load %arg6[%c0_46, %c0_47] : memref<2x32xf32, #tpu.memory_space<vmem>>, vector<2x32xf32>
    %123 = arith.index_cast %c2_i32 : i32 to index
    %c0_48 = arith.constant 0 : index
    %c0_49 = arith.constant 0 : index
    %124 = vector.load %arg2[%123, %c0_48, %c0_49] : memref<8x4x128xbf16, #tpu.memory_space<vmem>>, vector<1x4x128xbf16>
    %125 = vector.shape_cast %124 : vector<1x4x128xbf16> to vector<4x128xbf16>
    %cst_50 = arith.constant dense<0.000000e+00> : vector<2x128xf32>
    %126 = tpu.matmul %121, %125, %cst_50 {dimension_numbers = #tpu.dot_dimension_numbers<[1], [0], [0], [1], [0, 0, 1, 1], [], []>} : vector<2x4xbf16>, vector<4x128xbf16>, vector<2x128xf32> -> vector<2x128xf32>
    %127 = arith.truncf %122 : vector<2x32xf32> to vector<2x32xbf16>
    %128 = arith.index_cast %c2_i32 : i32 to index
    %c0_51 = arith.constant 0 : index
    %c0_52 = arith.constant 0 : index
    %129 = vector.load %arg3[%128, %c0_51, %c0_52] : memref<8x32x128xbf16, #tpu.memory_space<vmem>>, vector<1x32x128xbf16>
    %130 = vector.shape_cast %129 : vector<1x32x128xbf16> to vector<32x128xbf16>
    %cst_53 = arith.constant dense<0.000000e+00> : vector<2x128xf32>
    %131 = tpu.matmul %127, %130, %cst_53 {dimension_numbers = #tpu.dot_dimension_numbers<[1], [0], [0], [1], [0, 0, 1, 1], [], []>} : vector<2x32xbf16>, vector<32x128xbf16>, vector<2x128xf32> -> vector<2x128xf32>
    %132 = arith.addf %126, %131 : vector<2x128xf32>
    %133 = arith.index_cast %c2_i32 : i32 to index
    %c0_54 = arith.constant 0 : index
    %c0_55 = arith.constant 0 : index
    %134 = vector.load %arg4[%133, %c0_54, %c0_55] : memref<8x1x128xf32, #tpu.memory_space<vmem>>, vector<1x1x128xf32>
    %135 = vector.shape_cast %134 : vector<1x1x128xf32> to vector<1x128xf32>
    %136 = vector.broadcast %135 : vector<1x128xf32> to vector<2x128xf32>
    %137 = arith.addf %132, %136 : vector<2x128xf32>
    %138 = vector.extract_strided_slice %137 {offsets = [0, 0], sizes = [2, 32], strides = [1, 1]} : vector<2x128xf32> to vector<2x32xf32>
    %139 = arith.negf %138 : vector<2x32xf32>
    %140 = math.exp %139 : vector<2x32xf32>
    %cst_56 = arith.constant 1.000000e+00 : f32
    %141 = vector.broadcast %cst_56 : f32 to vector<2x32xf32>
    %142 = arith.addf %141, %140 : vector<2x32xf32>
    %143 = arith.divf %141, %142 : vector<2x32xf32>
    %144 = vector.extract_strided_slice %137 {offsets = [0, 32], sizes = [2, 32], strides = [1, 1]} : vector<2x128xf32> to vector<2x32xf32>
    %145 = arith.negf %144 : vector<2x32xf32>
    %146 = math.exp %145 : vector<2x32xf32>
    %cst_57 = arith.constant 1.000000e+00 : f32
    %147 = vector.broadcast %cst_57 : f32 to vector<2x32xf32>
    %148 = arith.addf %147, %146 : vector<2x32xf32>
    %149 = arith.divf %147, %148 : vector<2x32xf32>
    %150 = vector.extract_strided_slice %137 {offsets = [0, 64], sizes = [2, 32], strides = [1, 1]} : vector<2x128xf32> to vector<2x32xf32>
    %151 = math.tanh %150 : vector<2x32xf32>
    %152 = vector.extract_strided_slice %137 {offsets = [0, 96], sizes = [2, 32], strides = [1, 1]} : vector<2x128xf32> to vector<2x32xf32>
    %153 = arith.negf %152 : vector<2x32xf32>
    %154 = math.exp %153 : vector<2x32xf32>
    %cst_58 = arith.constant 1.000000e+00 : f32
    %155 = vector.broadcast %cst_58 : f32 to vector<2x32xf32>
    %156 = arith.addf %155, %154 : vector<2x32xf32>
    %157 = arith.divf %155, %156 : vector<2x32xf32>
    %158 = arith.mulf %149, %122 : vector<2x32xf32>
    %159 = arith.mulf %143, %151 : vector<2x32xf32>
    %160 = arith.addf %158, %159 : vector<2x32xf32>
    %161 = math.tanh %160 : vector<2x32xf32>
    %162 = arith.mulf %157, %161 : vector<2x32xf32>
    %c0_59 = arith.constant 0 : index
    %c0_60 = arith.constant 0 : index
    %163 = vector.load %arg6[%c0_59, %c0_60] : memref<2x32xf32, #tpu.memory_space<vmem>>, vector<2x32xf32>
    tpu.vector_store %arg6[%c0_59, %c0_60], %162 {strides = array<i32>} : memref<2x32xf32, #tpu.memory_space<vmem>>, vector<2x32xf32>,
    %cst_61 = arith.constant 0.000000e+00 : f32
    %164 = vector.broadcast %cst_61 : f32 to vector<2x32xf32>
    %165 = arith.cmpf ogt, %162, %164 : vector<2x32xf32>
    %cst_62 = arith.constant 0.000000e+00 : f32
    %166 = vector.broadcast %cst_62 : f32 to vector<2x32xf32>
    %167 = arith.minimumf %162, %166 : vector<2x32xf32>
    %168 = math.exp %167 : vector<2x32xf32>
    %cst_63 = arith.constant 1.000000e+00 : f32
    %169 = vector.broadcast %cst_63 : f32 to vector<2x32xf32>
    %170 = arith.subf %168, %169 : vector<2x32xf32>
    %171 = arith.select %165, %162, %170 : vector<2x32xi1>, vector<2x32xf32>
    %172 = arith.truncf %171 : vector<2x32xf32> to vector<2x32xbf16>
    %173 = arith.index_cast %c2_i32 : i32 to index
    %c0_64 = arith.constant 0 : index
    %c0_65 = arith.constant 0 : index
    %174 = vector.load %arg5[%173, %c0_64, %c0_65] : memref<8x2x32xbf16, #tpu.memory_space<vmem>>, vector<1x2x32xbf16>
    %175 = vector.shape_cast %174 : vector<1x2x32xbf16> to vector<2x32xbf16>
    %176 = vector.shape_cast %172 : vector<2x32xbf16> to vector<1x2x32xbf16>
    tpu.vector_store %arg5[%173, %c0_64, %c0_65], %176 {strides = array<i32>} : memref<8x2x32xbf16, #tpu.memory_space<vmem>>, vector<1x2x32xbf16>,
    %c3_i32 = arith.constant 3 : i32
    %177 = arith.index_cast %c3_i32 : i32 to index
    %c0_66 = arith.constant 0 : index
    %c0_67 = arith.constant 0 : index
    %178 = vector.load %arg1[%177, %c0_66, %c0_67] : memref<8x2x4xbf16, #tpu.memory_space<vmem>>, vector<1x2x4xbf16>
    %179 = vector.shape_cast %178 : vector<1x2x4xbf16> to vector<2x4xbf16>
    %c0_68 = arith.constant 0 : index
    %c0_69 = arith.constant 0 : index
    %180 = vector.load %arg6[%c0_68, %c0_69] : memref<2x32xf32, #tpu.memory_space<vmem>>, vector<2x32xf32>
    %181 = arith.index_cast %c3_i32 : i32 to index
    %c0_70 = arith.constant 0 : index
    %c0_71 = arith.constant 0 : index
    %182 = vector.load %arg2[%181, %c0_70, %c0_71] : memref<8x4x128xbf16, #tpu.memory_space<vmem>>, vector<1x4x128xbf16>
    %183 = vector.shape_cast %182 : vector<1x4x128xbf16> to vector<4x128xbf16>
    %cst_72 = arith.constant dense<0.000000e+00> : vector<2x128xf32>
    %184 = tpu.matmul %179, %183, %cst_72 {dimension_numbers = #tpu.dot_dimension_numbers<[1], [0], [0], [1], [0, 0, 1, 1], [], []>} : vector<2x4xbf16>, vector<4x128xbf16>, vector<2x128xf32> -> vector<2x128xf32>
    %185 = arith.truncf %180 : vector<2x32xf32> to vector<2x32xbf16>
    %186 = arith.index_cast %c3_i32 : i32 to index
    %c0_73 = arith.constant 0 : index
    %c0_74 = arith.constant 0 : index
    %187 = vector.load %arg3[%186, %c0_73, %c0_74] : memref<8x32x128xbf16, #tpu.memory_space<vmem>>, vector<1x32x128xbf16>
    %188 = vector.shape_cast %187 : vector<1x32x128xbf16> to vector<32x128xbf16>
    %cst_75 = arith.constant dense<0.000000e+00> : vector<2x128xf32>
    %189 = tpu.matmul %185, %188, %cst_75 {dimension_numbers = #tpu.dot_dimension_numbers<[1], [0], [0], [1], [0, 0, 1, 1], [], []>} : vector<2x32xbf16>, vector<32x128xbf16>, vector<2x128xf32> -> vector<2x128xf32>
    %190 = arith.addf %184, %189 : vector<2x128xf32>
    %191 = arith.index_cast %c3_i32 : i32 to index
    %c0_76 = arith.constant 0 : index
    %c0_77 = arith.constant 0 : index
    %192 = vector.load %arg4[%191, %c0_76, %c0_77] : memref<8x1x128xf32, #tpu.memory_space<vmem>>, vector<1x1x128xf32>
    %193 = vector.shape_cast %192 : vector<1x1x128xf32> to vector<1x128xf32>
    %194 = vector.broadcast %193 : vector<1x128xf32> to vector<2x128xf32>
    %195 = arith.addf %190, %194 : vector<2x128xf32>
    %196 = vector.extract_strided_slice %195 {offsets = [0, 0], sizes = [2, 32], strides = [1, 1]} : vector<2x128xf32> to vector<2x32xf32>
    %197 = arith.negf %196 : vector<2x32xf32>
    %198 = math.exp %197 : vector<2x32xf32>
    %cst_78 = arith.constant 1.000000e+00 : f32
    %199 = vector.broadcast %cst_78 : f32 to vector<2x32xf32>
    %200 = arith.addf %199, %198 : vector<2x32xf32>
    %201 = arith.divf %199, %200 : vector<2x32xf32>
    %202 = vector.extract_strided_slice %195 {offsets = [0, 32], sizes = [2, 32], strides = [1, 1]} : vector<2x128xf32> to vector<2x32xf32>
    %203 = arith.negf %202 : vector<2x32xf32>
    %204 = math.exp %203 : vector<2x32xf32>
    %cst_79 = arith.constant 1.000000e+00 : f32
    %205 = vector.broadcast %cst_79 : f32 to vector<2x32xf32>
    %206 = arith.addf %205, %204 : vector<2x32xf32>
    %207 = arith.divf %205, %206 : vector<2x32xf32>
    %208 = vector.extract_strided_slice %195 {offsets = [0, 64], sizes = [2, 32], strides = [1, 1]} : vector<2x128xf32> to vector<2x32xf32>
    %209 = math.tanh %208 : vector<2x32xf32>
    %210 = vector.extract_strided_slice %195 {offsets = [0, 96], sizes = [2, 32], strides = [1, 1]} : vector<2x128xf32> to vector<2x32xf32>
    %211 = arith.negf %210 : vector<2x32xf32>
    %212 = math.exp %211 : vector<2x32xf32>
    %cst_80 = arith.constant 1.000000e+00 : f32
    %213 = vector.broadcast %cst_80 : f32 to vector<2x32xf32>
    %214 = arith.addf %213, %212 : vector<2x32xf32>
    %215 = arith.divf %213, %214 : vector<2x32xf32>
    %216 = arith.mulf %207, %180 : vector<2x32xf32>
    %217 = arith.mulf %201, %209 : vector<2x32xf32>
    %218 = arith.addf %216, %217 : vector<2x32xf32>
    %219 = math.tanh %218 : vector<2x32xf32>
    %220 = arith.mulf %215, %219 : vector<2x32xf32>
    %c0_81 = arith.constant 0 : index
    %c0_82 = arith.constant 0 : index
    %221 = vector.load %arg6[%c0_81, %c0_82] : memref<2x32xf32, #tpu.memory_space<vmem>>, vector<2x32xf32>
    tpu.vector_store %arg6[%c0_81, %c0_82], %220 {strides = array<i32>} : memref<2x32xf32, #tpu.memory_space<vmem>>, vector<2x32xf32>,
    %cst_83 = arith.constant 0.000000e+00 : f32
    %222 = vector.broadcast %cst_83 : f32 to vector<2x32xf32>
    %223 = arith.cmpf ogt, %220, %222 : vector<2x32xf32>
    %cst_84 = arith.constant 0.000000e+00 : f32
    %224 = vector.broadcast %cst_84 : f32 to vector<2x32xf32>
    %225 = arith.minimumf %220, %224 : vector<2x32xf32>
    %226 = math.exp %225 : vector<2x32xf32>
    %cst_85 = arith.constant 1.000000e+00 : f32
    %227 = vector.broadcast %cst_85 : f32 to vector<2x32xf32>
    %228 = arith.subf %226, %227 : vector<2x32xf32>
    %229 = arith.select %223, %220, %228 : vector<2x32xi1>, vector<2x32xf32>
    %230 = arith.truncf %229 : vector<2x32xf32> to vector<2x32xbf16>
    %231 = arith.index_cast %c3_i32 : i32 to index
    %c0_86 = arith.constant 0 : index
    %c0_87 = arith.constant 0 : index
    %232 = vector.load %arg5[%231, %c0_86, %c0_87] : memref<8x2x32xbf16, #tpu.memory_space<vmem>>, vector<1x2x32xbf16>
    %233 = vector.shape_cast %232 : vector<1x2x32xbf16> to vector<2x32xbf16>
    %234 = vector.shape_cast %230 : vector<2x32xbf16> to vector<1x2x32xbf16>
    tpu.vector_store %arg5[%231, %c0_86, %c0_87], %234 {strides = array<i32>} : memref<8x2x32xbf16, #tpu.memory_space<vmem>>, vector<1x2x32xbf16>,
    %c4_i32 = arith.constant 4 : i32
    %235 = arith.index_cast %c4_i32 : i32 to index
    %c0_88 = arith.constant 0 : index
    %c0_89 = arith.constant 0 : index
    %236 = vector.load %arg1[%235, %c0_88, %c0_89] : memref<8x2x4xbf16, #tpu.memory_space<vmem>>, vector<1x2x4xbf16>
    %237 = vector.shape_cast %236 : vector<1x2x4xbf16> to vector<2x4xbf16>
    %c0_90 = arith.constant 0 : index
    %c0_91 = arith.constant 0 : index
    %238 = vector.load %arg6[%c0_90, %c0_91] : memref<2x32xf32, #tpu.memory_space<vmem>>, vector<2x32xf32>
    %239 = arith.index_cast %c4_i32 : i32 to index
    %c0_92 = arith.constant 0 : index
    %c0_93 = arith.constant 0 : index
    %240 = vector.load %arg2[%239, %c0_92, %c0_93] : memref<8x4x128xbf16, #tpu.memory_space<vmem>>, vector<1x4x128xbf16>
    %241 = vector.shape_cast %240 : vector<1x4x128xbf16> to vector<4x128xbf16>
    %cst_94 = arith.constant dense<0.000000e+00> : vector<2x128xf32>
    %242 = tpu.matmul %237, %241, %cst_94 {dimension_numbers = #tpu.dot_dimension_numbers<[1], [0], [0], [1], [0, 0, 1, 1], [], []>} : vector<2x4xbf16>, vector<4x128xbf16>, vector<2x128xf32> -> vector<2x128xf32>
    %243 = arith.truncf %238 : vector<2x32xf32> to vector<2x32xbf16>
    %244 = arith.index_cast %c4_i32 : i32 to index
    %c0_95 = arith.constant 0 : index
    %c0_96 = arith.constant 0 : index
    %245 = vector.load %arg3[%244, %c0_95, %c0_96] : memref<8x32x128xbf16, #tpu.memory_space<vmem>>, vector<1x32x128xbf16>
    %246 = vector.shape_cast %245 : vector<1x32x128xbf16> to vector<32x128xbf16>
    %cst_97 = arith.constant dense<0.000000e+00> : vector<2x128xf32>
    %247 = tpu.matmul %243, %246, %cst_97 {dimension_numbers = #tpu.dot_dimension_numbers<[1], [0], [0], [1], [0, 0, 1, 1], [], []>} : vector<2x32xbf16>, vector<32x128xbf16>, vector<2x128xf32> -> vector<2x128xf32>
    %248 = arith.addf %242, %247 : vector<2x128xf32>
    %249 = arith.index_cast %c4_i32 : i32 to index
    %c0_98 = arith.constant 0 : index
    %c0_99 = arith.constant 0 : index
    %250 = vector.load %arg4[%249, %c0_98, %c0_99] : memref<8x1x128xf32, #tpu.memory_space<vmem>>, vector<1x1x128xf32>
    %251 = vector.shape_cast %250 : vector<1x1x128xf32> to vector<1x128xf32>
    %252 = vector.broadcast %251 : vector<1x128xf32> to vector<2x128xf32>
    %253 = arith.addf %248, %252 : vector<2x128xf32>
    %254 = vector.extract_strided_slice %253 {offsets = [0, 0], sizes = [2, 32], strides = [1, 1]} : vector<2x128xf32> to vector<2x32xf32>
    %255 = arith.negf %254 : vector<2x32xf32>
    %256 = math.exp %255 : vector<2x32xf32>
    %cst_100 = arith.constant 1.000000e+00 : f32
    %257 = vector.broadcast %cst_100 : f32 to vector<2x32xf32>
    %258 = arith.addf %257, %256 : vector<2x32xf32>
    %259 = arith.divf %257, %258 : vector<2x32xf32>
    %260 = vector.extract_strided_slice %253 {offsets = [0, 32], sizes = [2, 32], strides = [1, 1]} : vector<2x128xf32> to vector<2x32xf32>
    %261 = arith.negf %260 : vector<2x32xf32>
    %262 = math.exp %261 : vector<2x32xf32>
    %cst_101 = arith.constant 1.000000e+00 : f32
    %263 = vector.broadcast %cst_101 : f32 to vector<2x32xf32>
    %264 = arith.addf %263, %262 : vector<2x32xf32>
    %265 = arith.divf %263, %264 : vector<2x32xf32>
    %266 = vector.extract_strided_slice %253 {offsets = [0, 64], sizes = [2, 32], strides = [1, 1]} : vector<2x128xf32> to vector<2x32xf32>
    %267 = math.tanh %266 : vector<2x32xf32>
    %268 = vector.extract_strided_slice %253 {offsets = [0, 96], sizes = [2, 32], strides = [1, 1]} : vector<2x128xf32> to vector<2x32xf32>
    %269 = arith.negf %268 : vector<2x32xf32>
    %270 = math.exp %269 : vector<2x32xf32>
    %cst_102 = arith.constant 1.000000e+00 : f32
    %271 = vector.broadcast %cst_102 : f32 to vector<2x32xf32>
    %272 = arith.addf %271, %270 : vector<2x32xf32>
    %273 = arith.divf %271, %272 : vector<2x32xf32>
    %274 = arith.mulf %265, %238 : vector<2x32xf32>
    %275 = arith.mulf %259, %267 : vector<2x32xf32>
    %276 = arith.addf %274, %275 : vector<2x32xf32>
    %277 = math.tanh %276 : vector<2x32xf32>
    %278 = arith.mulf %273, %277 : vector<2x32xf32>
    %c0_103 = arith.constant 0 : index
    %c0_104 = arith.constant 0 : index
    %279 = vector.load %arg6[%c0_103, %c0_104] : memref<2x32xf32, #tpu.memory_space<vmem>>, vector<2x32xf32>
    tpu.vector_store %arg6[%c0_103, %c0_104], %278 {strides = array<i32>} : memref<2x32xf32, #tpu.memory_space<vmem>>, vector<2x32xf32>,
    %cst_105 = arith.constant 0.000000e+00 : f32
    %280 = vector.broadcast %cst_105 : f32 to vector<2x32xf32>
    %281 = arith.cmpf ogt, %278, %280 : vector<2x32xf32>
    %cst_106 = arith.constant 0.000000e+00 : f32
    %282 = vector.broadcast %cst_106 : f32 to vector<2x32xf32>
    %283 = arith.minimumf %278, %282 : vector<2x32xf32>
    %284 = math.exp %283 : vector<2x32xf32>
    %cst_107 = arith.constant 1.000000e+00 : f32
    %285 = vector.broadcast %cst_107 : f32 to vector<2x32xf32>
    %286 = arith.subf %284, %285 : vector<2x32xf32>
    %287 = arith.select %281, %278, %286 : vector<2x32xi1>, vector<2x32xf32>
    %288 = arith.truncf %287 : vector<2x32xf32> to vector<2x32xbf16>
    %289 = arith.index_cast %c4_i32 : i32 to index
    %c0_108 = arith.constant 0 : index
    %c0_109 = arith.constant 0 : index
    %290 = vector.load %arg5[%289, %c0_108, %c0_109] : memref<8x2x32xbf16, #tpu.memory_space<vmem>>, vector<1x2x32xbf16>
    %291 = vector.shape_cast %290 : vector<1x2x32xbf16> to vector<2x32xbf16>
    %292 = vector.shape_cast %288 : vector<2x32xbf16> to vector<1x2x32xbf16>
    tpu.vector_store %arg5[%289, %c0_108, %c0_109], %292 {strides = array<i32>} : memref<8x2x32xbf16, #tpu.memory_space<vmem>>, vector<1x2x32xbf16>,
    %c5_i32 = arith.constant 5 : i32
    %293 = arith.index_cast %c5_i32 : i32 to index
    %c0_110 = arith.constant 0 : index
    %c0_111 = arith.constant 0 : index
    %294 = vector.load %arg1[%293, %c0_110, %c0_111] : memref<8x2x4xbf16, #tpu.memory_space<vmem>>, vector<1x2x4xbf16>
    %295 = vector.shape_cast %294 : vector<1x2x4xbf16> to vector<2x4xbf16>
    %c0_112 = arith.constant 0 : index
    %c0_113 = arith.constant 0 : index
    %296 = vector.load %arg6[%c0_112, %c0_113] : memref<2x32xf32, #tpu.memory_space<vmem>>, vector<2x32xf32>
    %297 = arith.index_cast %c5_i32 : i32 to index
    %c0_114 = arith.constant 0 : index
    %c0_115 = arith.constant 0 : index
    %298 = vector.load %arg2[%297, %c0_114, %c0_115] : memref<8x4x128xbf16, #tpu.memory_space<vmem>>, vector<1x4x128xbf16>
    %299 = vector.shape_cast %298 : vector<1x4x128xbf16> to vector<4x128xbf16>
    %cst_116 = arith.constant dense<0.000000e+00> : vector<2x128xf32>
    %300 = tpu.matmul %295, %299, %cst_116 {dimension_numbers = #tpu.dot_dimension_numbers<[1], [0], [0], [1], [0, 0, 1, 1], [], []>} : vector<2x4xbf16>, vector<4x128xbf16>, vector<2x128xf32> -> vector<2x128xf32>
    %301 = arith.truncf %296 : vector<2x32xf32> to vector<2x32xbf16>
    %302 = arith.index_cast %c5_i32 : i32 to index
    %c0_117 = arith.constant 0 : index
    %c0_118 = arith.constant 0 : index
    %303 = vector.load %arg3[%302, %c0_117, %c0_118] : memref<8x32x128xbf16, #tpu.memory_space<vmem>>, vector<1x32x128xbf16>
    %304 = vector.shape_cast %303 : vector<1x32x128xbf16> to vector<32x128xbf16>
    %cst_119 = arith.constant dense<0.000000e+00> : vector<2x128xf32>
    %305 = tpu.matmul %301, %304, %cst_119 {dimension_numbers = #tpu.dot_dimension_numbers<[1], [0], [0], [1], [0, 0, 1, 1], [], []>} : vector<2x32xbf16>, vector<32x128xbf16>, vector<2x128xf32> -> vector<2x128xf32>
    %306 = arith.addf %300, %305 : vector<2x128xf32>
    %307 = arith.index_cast %c5_i32 : i32 to index
    %c0_120 = arith.constant 0 : index
    %c0_121 = arith.constant 0 : index
    %308 = vector.load %arg4[%307, %c0_120, %c0_121] : memref<8x1x128xf32, #tpu.memory_space<vmem>>, vector<1x1x128xf32>
    %309 = vector.shape_cast %308 : vector<1x1x128xf32> to vector<1x128xf32>
    %310 = vector.broadcast %309 : vector<1x128xf32> to vector<2x128xf32>
    %311 = arith.addf %306, %310 : vector<2x128xf32>
    %312 = vector.extract_strided_slice %311 {offsets = [0, 0], sizes = [2, 32], strides = [1, 1]} : vector<2x128xf32> to vector<2x32xf32>
    %313 = arith.negf %312 : vector<2x32xf32>
    %314 = math.exp %313 : vector<2x32xf32>
    %cst_122 = arith.constant 1.000000e+00 : f32
    %315 = vector.broadcast %cst_122 : f32 to vector<2x32xf32>
    %316 = arith.addf %315, %314 : vector<2x32xf32>
    %317 = arith.divf %315, %316 : vector<2x32xf32>
    %318 = vector.extract_strided_slice %311 {offsets = [0, 32], sizes = [2, 32], strides = [1, 1]} : vector<2x128xf32> to vector<2x32xf32>
    %319 = arith.negf %318 : vector<2x32xf32>
    %320 = math.exp %319 : vector<2x32xf32>
    %cst_123 = arith.constant 1.000000e+00 : f32
    %321 = vector.broadcast %cst_123 : f32 to vector<2x32xf32>
    %322 = arith.addf %321, %320 : vector<2x32xf32>
    %323 = arith.divf %321, %322 : vector<2x32xf32>
    %324 = vector.extract_strided_slice %311 {offsets = [0, 64], sizes = [2, 32], strides = [1, 1]} : vector<2x128xf32> to vector<2x32xf32>
    %325 = math.tanh %324 : vector<2x32xf32>
    %326 = vector.extract_strided_slice %311 {offsets = [0, 96], sizes = [2, 32], strides = [1, 1]} : vector<2x128xf32> to vector<2x32xf32>
    %327 = arith.negf %326 : vector<2x32xf32>
    %328 = math.exp %327 : vector<2x32xf32>
    %cst_124 = arith.constant 1.000000e+00 : f32
    %329 = vector.broadcast %cst_124 : f32 to vector<2x32xf32>
    %330 = arith.addf %329, %328 : vector<2x32xf32>
    %331 = arith.divf %329, %330 : vector<2x32xf32>
    %332 = arith.mulf %323, %296 : vector<2x32xf32>
    %333 = arith.mulf %317, %325 : vector<2x32xf32>
    %334 = arith.addf %332, %333 : vector<2x32xf32>
    %335 = math.tanh %334 : vector<2x32xf32>
    %336 = arith.mulf %331, %335 : vector<2x32xf32>
    %c0_125 = arith.constant 0 : index
    %c0_126 = arith.constant 0 : index
    %337 = vector.load %arg6[%c0_125, %c0_126] : memref<2x32xf32, #tpu.memory_space<vmem>>, vector<2x32xf32>
    tpu.vector_store %arg6[%c0_125, %c0_126], %336 {strides = array<i32>} : memref<2x32xf32, #tpu.memory_space<vmem>>, vector<2x32xf32>,
    %cst_127 = arith.constant 0.000000e+00 : f32
    %338 = vector.broadcast %cst_127 : f32 to vector<2x32xf32>
    %339 = arith.cmpf ogt, %336, %338 : vector<2x32xf32>
    %cst_128 = arith.constant 0.000000e+00 : f32
    %340 = vector.broadcast %cst_128 : f32 to vector<2x32xf32>
    %341 = arith.minimumf %336, %340 : vector<2x32xf32>
    %342 = math.exp %341 : vector<2x32xf32>
    %cst_129 = arith.constant 1.000000e+00 : f32
    %343 = vector.broadcast %cst_129 : f32 to vector<2x32xf32>
    %344 = arith.subf %342, %343 : vector<2x32xf32>
    %345 = arith.select %339, %336, %344 : vector<2x32xi1>, vector<2x32xf32>
    %346 = arith.truncf %345 : vector<2x32xf32> to vector<2x32xbf16>
    %347 = arith.index_cast %c5_i32 : i32 to index
    %c0_130 = arith.constant 0 : index
    %c0_131 = arith.constant 0 : index
    %348 = vector.load %arg5[%347, %c0_130, %c0_131] : memref<8x2x32xbf16, #tpu.memory_space<vmem>>, vector<1x2x32xbf16>
    %349 = vector.shape_cast %348 : vector<1x2x32xbf16> to vector<2x32xbf16>
    %350 = vector.shape_cast %346 : vector<2x32xbf16> to vector<1x2x32xbf16>
    tpu.vector_store %arg5[%347, %c0_130, %c0_131], %350 {strides = array<i32>} : memref<8x2x32xbf16, #tpu.memory_space<vmem>>, vector<1x2x32xbf16>,
    %c6_i32 = arith.constant 6 : i32
    %351 = arith.index_cast %c6_i32 : i32 to index
    %c0_132 = arith.constant 0 : index
    %c0_133 = arith.constant 0 : index
    %352 = vector.load %arg1[%351, %c0_132, %c0_133] : memref<8x2x4xbf16, #tpu.memory_space<vmem>>, vector<1x2x4xbf16>
    %353 = vector.shape_cast %352 : vector<1x2x4xbf16> to vector<2x4xbf16>
    %c0_134 = arith.constant 0 : index
    %c0_135 = arith.constant 0 : index
    %354 = vector.load %arg6[%c0_134, %c0_135] : memref<2x32xf32, #tpu.memory_space<vmem>>, vector<2x32xf32>
    %355 = arith.index_cast %c6_i32 : i32 to index
    %c0_136 = arith.constant 0 : index
    %c0_137 = arith.constant 0 : index
    %356 = vector.load %arg2[%355, %c0_136, %c0_137] : memref<8x4x128xbf16, #tpu.memory_space<vmem>>, vector<1x4x128xbf16>
    %357 = vector.shape_cast %356 : vector<1x4x128xbf16> to vector<4x128xbf16>
    %cst_138 = arith.constant dense<0.000000e+00> : vector<2x128xf32>
    %358 = tpu.matmul %353, %357, %cst_138 {dimension_numbers = #tpu.dot_dimension_numbers<[1], [0], [0], [1], [0, 0, 1, 1], [], []>} : vector<2x4xbf16>, vector<4x128xbf16>, vector<2x128xf32> -> vector<2x128xf32>
    %359 = arith.truncf %354 : vector<2x32xf32> to vector<2x32xbf16>
    %360 = arith.index_cast %c6_i32 : i32 to index
    %c0_139 = arith.constant 0 : index
    %c0_140 = arith.constant 0 : index
    %361 = vector.load %arg3[%360, %c0_139, %c0_140] : memref<8x32x128xbf16, #tpu.memory_space<vmem>>, vector<1x32x128xbf16>
    %362 = vector.shape_cast %361 : vector<1x32x128xbf16> to vector<32x128xbf16>
    %cst_141 = arith.constant dense<0.000000e+00> : vector<2x128xf32>
    %363 = tpu.matmul %359, %362, %cst_141 {dimension_numbers = #tpu.dot_dimension_numbers<[1], [0], [0], [1], [0, 0, 1, 1], [], []>} : vector<2x32xbf16>, vector<32x128xbf16>, vector<2x128xf32> -> vector<2x128xf32>
    %364 = arith.addf %358, %363 : vector<2x128xf32>
    %365 = arith.index_cast %c6_i32 : i32 to index
    %c0_142 = arith.constant 0 : index
    %c0_143 = arith.constant 0 : index
    %366 = vector.load %arg4[%365, %c0_142, %c0_143] : memref<8x1x128xf32, #tpu.memory_space<vmem>>, vector<1x1x128xf32>
    %367 = vector.shape_cast %366 : vector<1x1x128xf32> to vector<1x128xf32>
    %368 = vector.broadcast %367 : vector<1x128xf32> to vector<2x128xf32>
    %369 = arith.addf %364, %368 : vector<2x128xf32>
    %370 = vector.extract_strided_slice %369 {offsets = [0, 0], sizes = [2, 32], strides = [1, 1]} : vector<2x128xf32> to vector<2x32xf32>
    %371 = arith.negf %370 : vector<2x32xf32>
    %372 = math.exp %371 : vector<2x32xf32>
    %cst_144 = arith.constant 1.000000e+00 : f32
    %373 = vector.broadcast %cst_144 : f32 to vector<2x32xf32>
    %374 = arith.addf %373, %372 : vector<2x32xf32>
    %375 = arith.divf %373, %374 : vector<2x32xf32>
    %376 = vector.extract_strided_slice %369 {offsets = [0, 32], sizes = [2, 32], strides = [1, 1]} : vector<2x128xf32> to vector<2x32xf32>
    %377 = arith.negf %376 : vector<2x32xf32>
    %378 = math.exp %377 : vector<2x32xf32>
    %cst_145 = arith.constant 1.000000e+00 : f32
    %379 = vector.broadcast %cst_145 : f32 to vector<2x32xf32>
    %380 = arith.addf %379, %378 : vector<2x32xf32>
    %381 = arith.divf %379, %380 : vector<2x32xf32>
    %382 = vector.extract_strided_slice %369 {offsets = [0, 64], sizes = [2, 32], strides = [1, 1]} : vector<2x128xf32> to vector<2x32xf32>
    %383 = math.tanh %382 : vector<2x32xf32>
    %384 = vector.extract_strided_slice %369 {offsets = [0, 96], sizes = [2, 32], strides = [1, 1]} : vector<2x128xf32> to vector<2x32xf32>
    %385 = arith.negf %384 : vector<2x32xf32>
    %386 = math.exp %385 : vector<2x32xf32>
    %cst_146 = arith.constant 1.000000e+00 : f32
    %387 = vector.broadcast %cst_146 : f32 to vector<2x32xf32>
    %388 = arith.addf %387, %386 : vector<2x32xf32>
    %389 = arith.divf %387, %388 : vector<2x32xf32>
    %390 = arith.mulf %381, %354 : vector<2x32xf32>
    %391 = arith.mulf %375, %383 : vector<2x32xf32>
    %392 = arith.addf %390, %391 : vector<2x32xf32>
    %393 = math.tanh %392 : vector<2x32xf32>
    %394 = arith.mulf %389, %393 : vector<2x32xf32>
    %c0_147 = arith.constant 0 : index
    %c0_148 = arith.constant 0 : index
    %395 = vector.load %arg6[%c0_147, %c0_148] : memref<2x32xf32, #tpu.memory_space<vmem>>, vector<2x32xf32>
    tpu.vector_store %arg6[%c0_147, %c0_148], %394 {strides = array<i32>} : memref<2x32xf32, #tpu.memory_space<vmem>>, vector<2x32xf32>,
    %cst_149 = arith.constant 0.000000e+00 : f32
    %396 = vector.broadcast %cst_149 : f32 to vector<2x32xf32>
    %397 = arith.cmpf ogt, %394, %396 : vector<2x32xf32>
    %cst_150 = arith.constant 0.000000e+00 : f32
    %398 = vector.broadcast %cst_150 : f32 to vector<2x32xf32>
    %399 = arith.minimumf %394, %398 : vector<2x32xf32>
    %400 = math.exp %399 : vector<2x32xf32>
    %cst_151 = arith.constant 1.000000e+00 : f32
    %401 = vector.broadcast %cst_151 : f32 to vector<2x32xf32>
    %402 = arith.subf %400, %401 : vector<2x32xf32>
    %403 = arith.select %397, %394, %402 : vector<2x32xi1>, vector<2x32xf32>
    %404 = arith.truncf %403 : vector<2x32xf32> to vector<2x32xbf16>
    %405 = arith.index_cast %c6_i32 : i32 to index
    %c0_152 = arith.constant 0 : index
    %c0_153 = arith.constant 0 : index
    %406 = vector.load %arg5[%405, %c0_152, %c0_153] : memref<8x2x32xbf16, #tpu.memory_space<vmem>>, vector<1x2x32xbf16>
    %407 = vector.shape_cast %406 : vector<1x2x32xbf16> to vector<2x32xbf16>
    %408 = vector.shape_cast %404 : vector<2x32xbf16> to vector<1x2x32xbf16>
    tpu.vector_store %arg5[%405, %c0_152, %c0_153], %408 {strides = array<i32>} : memref<8x2x32xbf16, #tpu.memory_space<vmem>>, vector<1x2x32xbf16>,
    %c7_i32 = arith.constant 7 : i32
    %409 = arith.index_cast %c7_i32 : i32 to index
    %c0_154 = arith.constant 0 : index
    %c0_155 = arith.constant 0 : index
    %410 = vector.load %arg1[%409, %c0_154, %c0_155] : memref<8x2x4xbf16, #tpu.memory_space<vmem>>, vector<1x2x4xbf16>
    %411 = vector.shape_cast %410 : vector<1x2x4xbf16> to vector<2x4xbf16>
    %c0_156 = arith.constant 0 : index
    %c0_157 = arith.constant 0 : index
    %412 = vector.load %arg6[%c0_156, %c0_157] : memref<2x32xf32, #tpu.memory_space<vmem>>, vector<2x32xf32>
    %413 = arith.index_cast %c7_i32 : i32 to index
    %c0_158 = arith.constant 0 : index
    %c0_159 = arith.constant 0 : index
    %414 = vector.load %arg2[%413, %c0_158, %c0_159] : memref<8x4x128xbf16, #tpu.memory_space<vmem>>, vector<1x4x128xbf16>
    %415 = vector.shape_cast %414 : vector<1x4x128xbf16> to vector<4x128xbf16>
    %cst_160 = arith.constant dense<0.000000e+00> : vector<2x128xf32>
    %416 = tpu.matmul %411, %415, %cst_160 {dimension_numbers = #tpu.dot_dimension_numbers<[1], [0], [0], [1], [0, 0, 1, 1], [], []>} : vector<2x4xbf16>, vector<4x128xbf16>, vector<2x128xf32> -> vector<2x128xf32>
    %417 = arith.truncf %412 : vector<2x32xf32> to vector<2x32xbf16>
    %418 = arith.index_cast %c7_i32 : i32 to index
    %c0_161 = arith.constant 0 : index
    %c0_162 = arith.constant 0 : index
    %419 = vector.load %arg3[%418, %c0_161, %c0_162] : memref<8x32x128xbf16, #tpu.memory_space<vmem>>, vector<1x32x128xbf16>
    %420 = vector.shape_cast %419 : vector<1x32x128xbf16> to vector<32x128xbf16>
    %cst_163 = arith.constant dense<0.000000e+00> : vector<2x128xf32>
    %421 = tpu.matmul %417, %420, %cst_163 {dimension_numbers = #tpu.dot_dimension_numbers<[1], [0], [0], [1], [0, 0, 1, 1], [], []>} : vector<2x32xbf16>, vector<32x128xbf16>, vector<2x128xf32> -> vector<2x128xf32>
    %422 = arith.addf %416, %421 : vector<2x128xf32>
    %423 = arith.index_cast %c7_i32 : i32 to index
    %c0_164 = arith.constant 0 : index
    %c0_165 = arith.constant 0 : index
    %424 = vector.load %arg4[%423, %c0_164, %c0_165] : memref<8x1x128xf32, #tpu.memory_space<vmem>>, vector<1x1x128xf32>
    %425 = vector.shape_cast %424 : vector<1x1x128xf32> to vector<1x128xf32>
    %426 = vector.broadcast %425 : vector<1x128xf32> to vector<2x128xf32>
    %427 = arith.addf %422, %426 : vector<2x128xf32>
    %428 = vector.extract_strided_slice %427 {offsets = [0, 0], sizes = [2, 32], strides = [1, 1]} : vector<2x128xf32> to vector<2x32xf32>
    %429 = arith.negf %428 : vector<2x32xf32>
    %430 = math.exp %429 : vector<2x32xf32>
    %cst_166 = arith.constant 1.000000e+00 : f32
    %431 = vector.broadcast %cst_166 : f32 to vector<2x32xf32>
    %432 = arith.addf %431, %430 : vector<2x32xf32>
    %433 = arith.divf %431, %432 : vector<2x32xf32>
    %434 = vector.extract_strided_slice %427 {offsets = [0, 32], sizes = [2, 32], strides = [1, 1]} : vector<2x128xf32> to vector<2x32xf32>
    %435 = arith.negf %434 : vector<2x32xf32>
    %436 = math.exp %435 : vector<2x32xf32>
    %cst_167 = arith.constant 1.000000e+00 : f32
    %437 = vector.broadcast %cst_167 : f32 to vector<2x32xf32>
    %438 = arith.addf %437, %436 : vector<2x32xf32>
    %439 = arith.divf %437, %438 : vector<2x32xf32>
    %440 = vector.extract_strided_slice %427 {offsets = [0, 64], sizes = [2, 32], strides = [1, 1]} : vector<2x128xf32> to vector<2x32xf32>
    %441 = math.tanh %440 : vector<2x32xf32>
    %442 = vector.extract_strided_slice %427 {offsets = [0, 96], sizes = [2, 32], strides = [1, 1]} : vector<2x128xf32> to vector<2x32xf32>
    %443 = arith.negf %442 : vector<2x32xf32>
    %444 = math.exp %443 : vector<2x32xf32>
    %cst_168 = arith.constant 1.000000e+00 : f32
    %445 = vector.broadcast %cst_168 : f32 to vector<2x32xf32>
    %446 = arith.addf %445, %444 : vector<2x32xf32>
    %447 = arith.divf %445, %446 : vector<2x32xf32>
    %448 = arith.mulf %439, %412 : vector<2x32xf32>
    %449 = arith.mulf %433, %441 : vector<2x32xf32>
    %450 = arith.addf %448, %449 : vector<2x32xf32>
    %451 = math.tanh %450 : vector<2x32xf32>
    %452 = arith.mulf %447, %451 : vector<2x32xf32>
    %c0_169 = arith.constant 0 : index
    %c0_170 = arith.constant 0 : index
    %453 = vector.load %arg6[%c0_169, %c0_170] : memref<2x32xf32, #tpu.memory_space<vmem>>, vector<2x32xf32>
    tpu.vector_store %arg6[%c0_169, %c0_170], %452 {strides = array<i32>} : memref<2x32xf32, #tpu.memory_space<vmem>>, vector<2x32xf32>,
    %cst_171 = arith.constant 0.000000e+00 : f32
    %454 = vector.broadcast %cst_171 : f32 to vector<2x32xf32>
    %455 = arith.cmpf ogt, %452, %454 : vector<2x32xf32>
    %cst_172 = arith.constant 0.000000e+00 : f32
    %456 = vector.broadcast %cst_172 : f32 to vector<2x32xf32>
    %457 = arith.minimumf %452, %456 : vector<2x32xf32>
    %458 = math.exp %457 : vector<2x32xf32>
    %cst_173 = arith.constant 1.000000e+00 : f32
    %459 = vector.broadcast %cst_173 : f32 to vector<2x32xf32>
    %460 = arith.subf %458, %459 : vector<2x32xf32>
    %461 = arith.select %455, %452, %460 : vector<2x32xi1>, vector<2x32xf32>
    %462 = arith.truncf %461 : vector<2x32xf32> to vector<2x32xbf16>
    %463 = arith.index_cast %c7_i32 : i32 to index
    %c0_174 = arith.constant 0 : index
    %c0_175 = arith.constant 0 : index
    %464 = vector.load %arg5[%463, %c0_174, %c0_175] : memref<8x2x32xbf16, #tpu.memory_space<vmem>>, vector<1x2x32xbf16>
    %465 = vector.shape_cast %464 : vector<1x2x32xbf16> to vector<2x32xbf16>
    %466 = vector.shape_cast %462 : vector<2x32xbf16> to vector<1x2x32xbf16>
    tpu.vector_store %arg5[%463, %c0_174, %c0_175], %466 {strides = array<i32>} : memref<8x2x32xbf16, #tpu.memory_space<vmem>>, vector<1x2x32xbf16>,
    %c8_i32 = arith.constant 8 : i32
    return
  }
  func.func @transform_0(%arg0: i32) -> (i32, i32, i32) {
    %c0_i32 = arith.constant 0 : i32
    %c0_i32_0 = arith.constant 0 : i32
    %c0_i32_1 = arith.constant 0 : i32
    return %arg0, %c0_i32, %c0_i32_0 : i32, i32, i32
  }
  func.func @transform_1(%arg0: i32) -> (i32, i32, i32) {
    %c0_i32 = arith.constant 0 : i32
    %c0_i32_0 = arith.constant 0 : i32
    %c0_i32_1 = arith.constant 0 : i32
    return %arg0, %c0_i32, %c0_i32_0 : i32, i32, i32
  }
  func.func @transform_2(%arg0: i32) -> (i32, i32, i32) {
    %c0_i32 = arith.constant 0 : i32
    %c0_i32_0 = arith.constant 0 : i32
    %c0_i32_1 = arith.constant 0 : i32
    return %arg0, %c0_i32, %c0_i32_0 : i32, i32, i32
  }
  func.func @transform_3(%arg0: i32) -> (i32, i32, i32) {
    %c0_i32 = arith.constant 0 : i32
    %c0_i32_0 = arith.constant 0 : i32
    %c0_i32_1 = arith.constant 0 : i32
    return %arg0, %c0_i32, %c0_i32_0 : i32, i32, i32
  }
  func.func @transform_4(%arg0: i32) -> (i32, i32, i32) {
    %c0_i32 = arith.constant 0 : i32
    %c0_i32_0 = arith.constant 0 : i32
    %c0_i32_1 = arith.constant 0 : i32
    return %arg0, %c0_i32, %c0_i32_0 : i32, i32, i32
  }
}

module attributes {stable_mosaic.version = 11 : i64} {
  func.func @_dec_kernel(%arg0: i32, %arg1: memref<8x2x32xbf16, #tpu.memory_space<vmem>>, %arg2: memref<8x32x12xbf16, #tpu.memory_space<vmem>>, %arg3: memref<8x1x12xf32, #tpu.memory_space<vmem>>, %arg4: memref<8x2x4xf32, #tpu.memory_space<vmem>>, %arg5: memref<2x4xf32, #tpu.memory_space<vmem>>) attributes {dimension_semantics = [#tpu.dimension_semantics<parallel>], iteration_bounds = array<i64: 1>, scalar_prefetch = 0 : i64, scratch_operands = 1 : i64, tpu.core_type = #tpu.core_type<tc>, window_params = [{transform_indices = @transform_0, window_bounds = array<i64: 8, 2, 32>}, {transform_indices = @transform_1, window_bounds = array<i64: 8, 32, 12>}, {transform_indices = @transform_2, window_bounds = array<i64: 8, 1, 12>}, {transform_indices = @transform_3, window_bounds = array<i64: 8, 2, 4>}]} {
    %c0_i32 = arith.constant 0 : i32
    %c8_i32 = arith.constant 8 : i32
    %0 = arith.muli %arg0, %c8_i32 : i32
    %1 = arith.addi %0, %c0_i32 : i32
    %c7_i32 = arith.constant 7 : i32
    %2 = arith.subi %c7_i32, %c0_i32 : i32
    %3 = arith.index_cast %2 : i32 to index
    %c0 = arith.constant 0 : index
    %c0_0 = arith.constant 0 : index
    %4 = vector.load %arg1[%3, %c0, %c0_0] : memref<8x2x32xbf16, #tpu.memory_space<vmem>>, vector<1x2x32xbf16>
    %5 = vector.shape_cast %4 : vector<1x2x32xbf16> to vector<2x32xbf16>
    %6 = arith.index_cast %c0_i32 : i32 to index
    %c0_1 = arith.constant 0 : index
    %c0_2 = arith.constant 0 : index
    %7 = vector.load %arg2[%6, %c0_1, %c0_2] : memref<8x32x12xbf16, #tpu.memory_space<vmem>>, vector<1x32x12xbf16>
    %8 = vector.shape_cast %7 : vector<1x32x12xbf16> to vector<32x12xbf16>
    %cst = arith.constant dense<0.000000e+00> : vector<2x12xf32>
    %9 = tpu.matmul %5, %8, %cst {dimension_numbers = #tpu.dot_dimension_numbers<[1], [0], [0], [1], [0, 0, 1, 1], [], []>} : vector<2x32xbf16>, vector<32x12xbf16>, vector<2x12xf32> -> vector<2x12xf32>
    %10 = arith.index_cast %c0_i32 : i32 to index
    %c0_3 = arith.constant 0 : index
    %c0_4 = arith.constant 0 : index
    %11 = vector.load %arg3[%10, %c0_3, %c0_4] : memref<8x1x12xf32, #tpu.memory_space<vmem>>, vector<1x1x12xf32>
    %12 = vector.shape_cast %11 : vector<1x1x12xf32> to vector<1x12xf32>
    %13 = vector.broadcast %12 : vector<1x12xf32> to vector<2x12xf32>
    %14 = arith.addf %9, %13 : vector<2x12xf32>
    %15 = vector.extract_strided_slice %14 {offsets = [0, 0], sizes = [2, 4], strides = [1, 1]} : vector<2x12xf32> to vector<2x4xf32>
    %16 = arith.negf %15 : vector<2x4xf32>
    %17 = math.exp %16 : vector<2x4xf32>
    %cst_5 = arith.constant 1.000000e+00 : f32
    %18 = vector.broadcast %cst_5 : f32 to vector<2x4xf32>
    %19 = arith.addf %18, %17 : vector<2x4xf32>
    %20 = arith.divf %18, %19 : vector<2x4xf32>
    %21 = vector.extract_strided_slice %14 {offsets = [0, 4], sizes = [2, 4], strides = [1, 1]} : vector<2x12xf32> to vector<2x4xf32>
    %22 = math.tanh %21 : vector<2x4xf32>
    %23 = vector.extract_strided_slice %14 {offsets = [0, 8], sizes = [2, 4], strides = [1, 1]} : vector<2x12xf32> to vector<2x4xf32>
    %24 = arith.negf %23 : vector<2x4xf32>
    %25 = math.exp %24 : vector<2x4xf32>
    %cst_6 = arith.constant 1.000000e+00 : f32
    %26 = vector.broadcast %cst_6 : f32 to vector<2x4xf32>
    %27 = arith.addf %26, %25 : vector<2x4xf32>
    %28 = arith.divf %26, %27 : vector<2x4xf32>
    %29 = arith.mulf %20, %22 : vector<2x4xf32>
    %30 = math.tanh %29 : vector<2x4xf32>
    %31 = arith.mulf %28, %30 : vector<2x4xf32>
    %c2_i32 = arith.constant 2 : i32
    %c0_i32_7 = arith.constant 0 : i32
    %32 = arith.cmpi eq, %c2_i32, %c0_i32_7 : i32
    %c1_i32 = arith.constant 1 : i32
    %33 = arith.select %32, %c1_i32, %c2_i32 : i32
    %34 = arith.remsi %1, %33 : i32
    %c0_i32_8 = arith.constant 0 : i32
    %35 = arith.cmpi ne, %34, %c0_i32_8 : i32
    %c0_i32_9 = arith.constant 0 : i32
    %36 = arith.cmpi slt, %34, %c0_i32_9 : i32
    %c0_i32_10 = arith.constant 0 : i32
    %37 = arith.cmpi slt, %33, %c0_i32_10 : i32
    %38 = arith.xori %36, %37 : i1
    %39 = arith.andi %38, %35 : i1
    %40 = arith.addi %34, %33 : i32
    %41 = arith.select %39, %40, %34 : i32
    %c0_i32_11 = arith.constant 0 : i32
    %42 = arith.cmpi eq, %41, %c0_i32_11 : i32
    %c0_12 = arith.constant 0 : index
    %c0_13 = arith.constant 0 : index
    %43 = vector.load %arg5[%c0_12, %c0_13] : memref<2x4xf32, #tpu.memory_space<vmem>>, vector<2x4xf32>
    %44 = arith.addf %31, %43 : vector<2x4xf32>
    %45 = arith.select %42, %31, %44 : vector<2x4xf32>
    %c0_14 = arith.constant 0 : index
    %c0_15 = arith.constant 0 : index
    %46 = vector.load %arg5[%c0_14, %c0_15] : memref<2x4xf32, #tpu.memory_space<vmem>>, vector<2x4xf32>
    tpu.vector_store %arg5[%c0_14, %c0_15], %45 {strides = array<i32>} : memref<2x4xf32, #tpu.memory_space<vmem>>, vector<2x4xf32>,
    %47 = math.tanh %45 : vector<2x4xf32>
    %c7_i32_16 = arith.constant 7 : i32
    %48 = arith.subi %c7_i32_16, %c0_i32 : i32
    %49 = arith.index_cast %48 : i32 to index
    %c0_17 = arith.constant 0 : index
    %c0_18 = arith.constant 0 : index
    %50 = vector.load %arg4[%49, %c0_17, %c0_18] : memref<8x2x4xf32, #tpu.memory_space<vmem>>, vector<1x2x4xf32>
    %51 = vector.shape_cast %50 : vector<1x2x4xf32> to vector<2x4xf32>
    %52 = vector.shape_cast %47 : vector<2x4xf32> to vector<1x2x4xf32>
    tpu.vector_store %arg4[%49, %c0_17, %c0_18], %52 {strides = array<i32>} : memref<8x2x4xf32, #tpu.memory_space<vmem>>, vector<1x2x4xf32>,
    %c1_i32_19 = arith.constant 1 : i32
    %c8_i32_20 = arith.constant 8 : i32
    %53 = arith.muli %arg0, %c8_i32_20 : i32
    %54 = arith.addi %53, %c1_i32_19 : i32
    %c7_i32_21 = arith.constant 7 : i32
    %55 = arith.subi %c7_i32_21, %c1_i32_19 : i32
    %56 = arith.index_cast %55 : i32 to index
    %c0_22 = arith.constant 0 : index
    %c0_23 = arith.constant 0 : index
    %57 = vector.load %arg1[%56, %c0_22, %c0_23] : memref<8x2x32xbf16, #tpu.memory_space<vmem>>, vector<1x2x32xbf16>
    %58 = vector.shape_cast %57 : vector<1x2x32xbf16> to vector<2x32xbf16>
    %59 = arith.index_cast %c1_i32_19 : i32 to index
    %c0_24 = arith.constant 0 : index
    %c0_25 = arith.constant 0 : index
    %60 = vector.load %arg2[%59, %c0_24, %c0_25] : memref<8x32x12xbf16, #tpu.memory_space<vmem>>, vector<1x32x12xbf16>
    %61 = vector.shape_cast %60 : vector<1x32x12xbf16> to vector<32x12xbf16>
    %cst_26 = arith.constant dense<0.000000e+00> : vector<2x12xf32>
    %62 = tpu.matmul %58, %61, %cst_26 {dimension_numbers = #tpu.dot_dimension_numbers<[1], [0], [0], [1], [0, 0, 1, 1], [], []>} : vector<2x32xbf16>, vector<32x12xbf16>, vector<2x12xf32> -> vector<2x12xf32>
    %63 = arith.index_cast %c1_i32_19 : i32 to index
    %c0_27 = arith.constant 0 : index
    %c0_28 = arith.constant 0 : index
    %64 = vector.load %arg3[%63, %c0_27, %c0_28] : memref<8x1x12xf32, #tpu.memory_space<vmem>>, vector<1x1x12xf32>
    %65 = vector.shape_cast %64 : vector<1x1x12xf32> to vector<1x12xf32>
    %66 = vector.broadcast %65 : vector<1x12xf32> to vector<2x12xf32>
    %67 = arith.addf %62, %66 : vector<2x12xf32>
    %68 = vector.extract_strided_slice %67 {offsets = [0, 0], sizes = [2, 4], strides = [1, 1]} : vector<2x12xf32> to vector<2x4xf32>
    %69 = arith.negf %68 : vector<2x4xf32>
    %70 = math.exp %69 : vector<2x4xf32>
    %cst_29 = arith.constant 1.000000e+00 : f32
    %71 = vector.broadcast %cst_29 : f32 to vector<2x4xf32>
    %72 = arith.addf %71, %70 : vector<2x4xf32>
    %73 = arith.divf %71, %72 : vector<2x4xf32>
    %74 = vector.extract_strided_slice %67 {offsets = [0, 4], sizes = [2, 4], strides = [1, 1]} : vector<2x12xf32> to vector<2x4xf32>
    %75 = math.tanh %74 : vector<2x4xf32>
    %76 = vector.extract_strided_slice %67 {offsets = [0, 8], sizes = [2, 4], strides = [1, 1]} : vector<2x12xf32> to vector<2x4xf32>
    %77 = arith.negf %76 : vector<2x4xf32>
    %78 = math.exp %77 : vector<2x4xf32>
    %cst_30 = arith.constant 1.000000e+00 : f32
    %79 = vector.broadcast %cst_30 : f32 to vector<2x4xf32>
    %80 = arith.addf %79, %78 : vector<2x4xf32>
    %81 = arith.divf %79, %80 : vector<2x4xf32>
    %82 = arith.mulf %73, %75 : vector<2x4xf32>
    %83 = math.tanh %82 : vector<2x4xf32>
    %84 = arith.mulf %81, %83 : vector<2x4xf32>
    %c2_i32_31 = arith.constant 2 : i32
    %c0_i32_32 = arith.constant 0 : i32
    %85 = arith.cmpi eq, %c2_i32_31, %c0_i32_32 : i32
    %c1_i32_33 = arith.constant 1 : i32
    %86 = arith.select %85, %c1_i32_33, %c2_i32_31 : i32
    %87 = arith.remsi %54, %86 : i32
    %c0_i32_34 = arith.constant 0 : i32
    %88 = arith.cmpi ne, %87, %c0_i32_34 : i32
    %c0_i32_35 = arith.constant 0 : i32
    %89 = arith.cmpi slt, %87, %c0_i32_35 : i32
    %c0_i32_36 = arith.constant 0 : i32
    %90 = arith.cmpi slt, %86, %c0_i32_36 : i32
    %91 = arith.xori %89, %90 : i1
    %92 = arith.andi %91, %88 : i1
    %93 = arith.addi %87, %86 : i32
    %94 = arith.select %92, %93, %87 : i32
    %c0_i32_37 = arith.constant 0 : i32
    %95 = arith.cmpi eq, %94, %c0_i32_37 : i32
    %c0_38 = arith.constant 0 : index
    %c0_39 = arith.constant 0 : index
    %96 = vector.load %arg5[%c0_38, %c0_39] : memref<2x4xf32, #tpu.memory_space<vmem>>, vector<2x4xf32>
    %97 = arith.addf %84, %96 : vector<2x4xf32>
    %98 = arith.select %95, %84, %97 : vector<2x4xf32>
    %c0_40 = arith.constant 0 : index
    %c0_41 = arith.constant 0 : index
    %99 = vector.load %arg5[%c0_40, %c0_41] : memref<2x4xf32, #tpu.memory_space<vmem>>, vector<2x4xf32>
    tpu.vector_store %arg5[%c0_40, %c0_41], %98 {strides = array<i32>} : memref<2x4xf32, #tpu.memory_space<vmem>>, vector<2x4xf32>,
    %100 = math.tanh %98 : vector<2x4xf32>
    %c7_i32_42 = arith.constant 7 : i32
    %101 = arith.subi %c7_i32_42, %c1_i32_19 : i32
    %102 = arith.index_cast %101 : i32 to index
    %c0_43 = arith.constant 0 : index
    %c0_44 = arith.constant 0 : index
    %103 = vector.load %arg4[%102, %c0_43, %c0_44] : memref<8x2x4xf32, #tpu.memory_space<vmem>>, vector<1x2x4xf32>
    %104 = vector.shape_cast %103 : vector<1x2x4xf32> to vector<2x4xf32>
    %105 = vector.shape_cast %100 : vector<2x4xf32> to vector<1x2x4xf32>
    tpu.vector_store %arg4[%102, %c0_43, %c0_44], %105 {strides = array<i32>} : memref<8x2x4xf32, #tpu.memory_space<vmem>>, vector<1x2x4xf32>,
    %c2_i32_45 = arith.constant 2 : i32
    %c8_i32_46 = arith.constant 8 : i32
    %106 = arith.muli %arg0, %c8_i32_46 : i32
    %107 = arith.addi %106, %c2_i32_45 : i32
    %c7_i32_47 = arith.constant 7 : i32
    %108 = arith.subi %c7_i32_47, %c2_i32_45 : i32
    %109 = arith.index_cast %108 : i32 to index
    %c0_48 = arith.constant 0 : index
    %c0_49 = arith.constant 0 : index
    %110 = vector.load %arg1[%109, %c0_48, %c0_49] : memref<8x2x32xbf16, #tpu.memory_space<vmem>>, vector<1x2x32xbf16>
    %111 = vector.shape_cast %110 : vector<1x2x32xbf16> to vector<2x32xbf16>
    %112 = arith.index_cast %c2_i32_45 : i32 to index
    %c0_50 = arith.constant 0 : index
    %c0_51 = arith.constant 0 : index
    %113 = vector.load %arg2[%112, %c0_50, %c0_51] : memref<8x32x12xbf16, #tpu.memory_space<vmem>>, vector<1x32x12xbf16>
    %114 = vector.shape_cast %113 : vector<1x32x12xbf16> to vector<32x12xbf16>
    %cst_52 = arith.constant dense<0.000000e+00> : vector<2x12xf32>
    %115 = tpu.matmul %111, %114, %cst_52 {dimension_numbers = #tpu.dot_dimension_numbers<[1], [0], [0], [1], [0, 0, 1, 1], [], []>} : vector<2x32xbf16>, vector<32x12xbf16>, vector<2x12xf32> -> vector<2x12xf32>
    %116 = arith.index_cast %c2_i32_45 : i32 to index
    %c0_53 = arith.constant 0 : index
    %c0_54 = arith.constant 0 : index
    %117 = vector.load %arg3[%116, %c0_53, %c0_54] : memref<8x1x12xf32, #tpu.memory_space<vmem>>, vector<1x1x12xf32>
    %118 = vector.shape_cast %117 : vector<1x1x12xf32> to vector<1x12xf32>
    %119 = vector.broadcast %118 : vector<1x12xf32> to vector<2x12xf32>
    %120 = arith.addf %115, %119 : vector<2x12xf32>
    %121 = vector.extract_strided_slice %120 {offsets = [0, 0], sizes = [2, 4], strides = [1, 1]} : vector<2x12xf32> to vector<2x4xf32>
    %122 = arith.negf %121 : vector<2x4xf32>
    %123 = math.exp %122 : vector<2x4xf32>
    %cst_55 = arith.constant 1.000000e+00 : f32
    %124 = vector.broadcast %cst_55 : f32 to vector<2x4xf32>
    %125 = arith.addf %124, %123 : vector<2x4xf32>
    %126 = arith.divf %124, %125 : vector<2x4xf32>
    %127 = vector.extract_strided_slice %120 {offsets = [0, 4], sizes = [2, 4], strides = [1, 1]} : vector<2x12xf32> to vector<2x4xf32>
    %128 = math.tanh %127 : vector<2x4xf32>
    %129 = vector.extract_strided_slice %120 {offsets = [0, 8], sizes = [2, 4], strides = [1, 1]} : vector<2x12xf32> to vector<2x4xf32>
    %130 = arith.negf %129 : vector<2x4xf32>
    %131 = math.exp %130 : vector<2x4xf32>
    %cst_56 = arith.constant 1.000000e+00 : f32
    %132 = vector.broadcast %cst_56 : f32 to vector<2x4xf32>
    %133 = arith.addf %132, %131 : vector<2x4xf32>
    %134 = arith.divf %132, %133 : vector<2x4xf32>
    %135 = arith.mulf %126, %128 : vector<2x4xf32>
    %136 = math.tanh %135 : vector<2x4xf32>
    %137 = arith.mulf %134, %136 : vector<2x4xf32>
    %c2_i32_57 = arith.constant 2 : i32
    %c0_i32_58 = arith.constant 0 : i32
    %138 = arith.cmpi eq, %c2_i32_57, %c0_i32_58 : i32
    %c1_i32_59 = arith.constant 1 : i32
    %139 = arith.select %138, %c1_i32_59, %c2_i32_57 : i32
    %140 = arith.remsi %107, %139 : i32
    %c0_i32_60 = arith.constant 0 : i32
    %141 = arith.cmpi ne, %140, %c0_i32_60 : i32
    %c0_i32_61 = arith.constant 0 : i32
    %142 = arith.cmpi slt, %140, %c0_i32_61 : i32
    %c0_i32_62 = arith.constant 0 : i32
    %143 = arith.cmpi slt, %139, %c0_i32_62 : i32
    %144 = arith.xori %142, %143 : i1
    %145 = arith.andi %144, %141 : i1
    %146 = arith.addi %140, %139 : i32
    %147 = arith.select %145, %146, %140 : i32
    %c0_i32_63 = arith.constant 0 : i32
    %148 = arith.cmpi eq, %147, %c0_i32_63 : i32
    %c0_64 = arith.constant 0 : index
    %c0_65 = arith.constant 0 : index
    %149 = vector.load %arg5[%c0_64, %c0_65] : memref<2x4xf32, #tpu.memory_space<vmem>>, vector<2x4xf32>
    %150 = arith.addf %137, %149 : vector<2x4xf32>
    %151 = arith.select %148, %137, %150 : vector<2x4xf32>
    %c0_66 = arith.constant 0 : index
    %c0_67 = arith.constant 0 : index
    %152 = vector.load %arg5[%c0_66, %c0_67] : memref<2x4xf32, #tpu.memory_space<vmem>>, vector<2x4xf32>
    tpu.vector_store %arg5[%c0_66, %c0_67], %151 {strides = array<i32>} : memref<2x4xf32, #tpu.memory_space<vmem>>, vector<2x4xf32>,
    %153 = math.tanh %151 : vector<2x4xf32>
    %c7_i32_68 = arith.constant 7 : i32
    %154 = arith.subi %c7_i32_68, %c2_i32_45 : i32
    %155 = arith.index_cast %154 : i32 to index
    %c0_69 = arith.constant 0 : index
    %c0_70 = arith.constant 0 : index
    %156 = vector.load %arg4[%155, %c0_69, %c0_70] : memref<8x2x4xf32, #tpu.memory_space<vmem>>, vector<1x2x4xf32>
    %157 = vector.shape_cast %156 : vector<1x2x4xf32> to vector<2x4xf32>
    %158 = vector.shape_cast %153 : vector<2x4xf32> to vector<1x2x4xf32>
    tpu.vector_store %arg4[%155, %c0_69, %c0_70], %158 {strides = array<i32>} : memref<8x2x4xf32, #tpu.memory_space<vmem>>, vector<1x2x4xf32>,
    %c3_i32 = arith.constant 3 : i32
    %c8_i32_71 = arith.constant 8 : i32
    %159 = arith.muli %arg0, %c8_i32_71 : i32
    %160 = arith.addi %159, %c3_i32 : i32
    %c7_i32_72 = arith.constant 7 : i32
    %161 = arith.subi %c7_i32_72, %c3_i32 : i32
    %162 = arith.index_cast %161 : i32 to index
    %c0_73 = arith.constant 0 : index
    %c0_74 = arith.constant 0 : index
    %163 = vector.load %arg1[%162, %c0_73, %c0_74] : memref<8x2x32xbf16, #tpu.memory_space<vmem>>, vector<1x2x32xbf16>
    %164 = vector.shape_cast %163 : vector<1x2x32xbf16> to vector<2x32xbf16>
    %165 = arith.index_cast %c3_i32 : i32 to index
    %c0_75 = arith.constant 0 : index
    %c0_76 = arith.constant 0 : index
    %166 = vector.load %arg2[%165, %c0_75, %c0_76] : memref<8x32x12xbf16, #tpu.memory_space<vmem>>, vector<1x32x12xbf16>
    %167 = vector.shape_cast %166 : vector<1x32x12xbf16> to vector<32x12xbf16>
    %cst_77 = arith.constant dense<0.000000e+00> : vector<2x12xf32>
    %168 = tpu.matmul %164, %167, %cst_77 {dimension_numbers = #tpu.dot_dimension_numbers<[1], [0], [0], [1], [0, 0, 1, 1], [], []>} : vector<2x32xbf16>, vector<32x12xbf16>, vector<2x12xf32> -> vector<2x12xf32>
    %169 = arith.index_cast %c3_i32 : i32 to index
    %c0_78 = arith.constant 0 : index
    %c0_79 = arith.constant 0 : index
    %170 = vector.load %arg3[%169, %c0_78, %c0_79] : memref<8x1x12xf32, #tpu.memory_space<vmem>>, vector<1x1x12xf32>
    %171 = vector.shape_cast %170 : vector<1x1x12xf32> to vector<1x12xf32>
    %172 = vector.broadcast %171 : vector<1x12xf32> to vector<2x12xf32>
    %173 = arith.addf %168, %172 : vector<2x12xf32>
    %174 = vector.extract_strided_slice %173 {offsets = [0, 0], sizes = [2, 4], strides = [1, 1]} : vector<2x12xf32> to vector<2x4xf32>
    %175 = arith.negf %174 : vector<2x4xf32>
    %176 = math.exp %175 : vector<2x4xf32>
    %cst_80 = arith.constant 1.000000e+00 : f32
    %177 = vector.broadcast %cst_80 : f32 to vector<2x4xf32>
    %178 = arith.addf %177, %176 : vector<2x4xf32>
    %179 = arith.divf %177, %178 : vector<2x4xf32>
    %180 = vector.extract_strided_slice %173 {offsets = [0, 4], sizes = [2, 4], strides = [1, 1]} : vector<2x12xf32> to vector<2x4xf32>
    %181 = math.tanh %180 : vector<2x4xf32>
    %182 = vector.extract_strided_slice %173 {offsets = [0, 8], sizes = [2, 4], strides = [1, 1]} : vector<2x12xf32> to vector<2x4xf32>
    %183 = arith.negf %182 : vector<2x4xf32>
    %184 = math.exp %183 : vector<2x4xf32>
    %cst_81 = arith.constant 1.000000e+00 : f32
    %185 = vector.broadcast %cst_81 : f32 to vector<2x4xf32>
    %186 = arith.addf %185, %184 : vector<2x4xf32>
    %187 = arith.divf %185, %186 : vector<2x4xf32>
    %188 = arith.mulf %179, %181 : vector<2x4xf32>
    %189 = math.tanh %188 : vector<2x4xf32>
    %190 = arith.mulf %187, %189 : vector<2x4xf32>
    %c2_i32_82 = arith.constant 2 : i32
    %c0_i32_83 = arith.constant 0 : i32
    %191 = arith.cmpi eq, %c2_i32_82, %c0_i32_83 : i32
    %c1_i32_84 = arith.constant 1 : i32
    %192 = arith.select %191, %c1_i32_84, %c2_i32_82 : i32
    %193 = arith.remsi %160, %192 : i32
    %c0_i32_85 = arith.constant 0 : i32
    %194 = arith.cmpi ne, %193, %c0_i32_85 : i32
    %c0_i32_86 = arith.constant 0 : i32
    %195 = arith.cmpi slt, %193, %c0_i32_86 : i32
    %c0_i32_87 = arith.constant 0 : i32
    %196 = arith.cmpi slt, %192, %c0_i32_87 : i32
    %197 = arith.xori %195, %196 : i1
    %198 = arith.andi %197, %194 : i1
    %199 = arith.addi %193, %192 : i32
    %200 = arith.select %198, %199, %193 : i32
    %c0_i32_88 = arith.constant 0 : i32
    %201 = arith.cmpi eq, %200, %c0_i32_88 : i32
    %c0_89 = arith.constant 0 : index
    %c0_90 = arith.constant 0 : index
    %202 = vector.load %arg5[%c0_89, %c0_90] : memref<2x4xf32, #tpu.memory_space<vmem>>, vector<2x4xf32>
    %203 = arith.addf %190, %202 : vector<2x4xf32>
    %204 = arith.select %201, %190, %203 : vector<2x4xf32>
    %c0_91 = arith.constant 0 : index
    %c0_92 = arith.constant 0 : index
    %205 = vector.load %arg5[%c0_91, %c0_92] : memref<2x4xf32, #tpu.memory_space<vmem>>, vector<2x4xf32>
    tpu.vector_store %arg5[%c0_91, %c0_92], %204 {strides = array<i32>} : memref<2x4xf32, #tpu.memory_space<vmem>>, vector<2x4xf32>,
    %206 = math.tanh %204 : vector<2x4xf32>
    %c7_i32_93 = arith.constant 7 : i32
    %207 = arith.subi %c7_i32_93, %c3_i32 : i32
    %208 = arith.index_cast %207 : i32 to index
    %c0_94 = arith.constant 0 : index
    %c0_95 = arith.constant 0 : index
    %209 = vector.load %arg4[%208, %c0_94, %c0_95] : memref<8x2x4xf32, #tpu.memory_space<vmem>>, vector<1x2x4xf32>
    %210 = vector.shape_cast %209 : vector<1x2x4xf32> to vector<2x4xf32>
    %211 = vector.shape_cast %206 : vector<2x4xf32> to vector<1x2x4xf32>
    tpu.vector_store %arg4[%208, %c0_94, %c0_95], %211 {strides = array<i32>} : memref<8x2x4xf32, #tpu.memory_space<vmem>>, vector<1x2x4xf32>,
    %c4_i32 = arith.constant 4 : i32
    %c8_i32_96 = arith.constant 8 : i32
    %212 = arith.muli %arg0, %c8_i32_96 : i32
    %213 = arith.addi %212, %c4_i32 : i32
    %c7_i32_97 = arith.constant 7 : i32
    %214 = arith.subi %c7_i32_97, %c4_i32 : i32
    %215 = arith.index_cast %214 : i32 to index
    %c0_98 = arith.constant 0 : index
    %c0_99 = arith.constant 0 : index
    %216 = vector.load %arg1[%215, %c0_98, %c0_99] : memref<8x2x32xbf16, #tpu.memory_space<vmem>>, vector<1x2x32xbf16>
    %217 = vector.shape_cast %216 : vector<1x2x32xbf16> to vector<2x32xbf16>
    %218 = arith.index_cast %c4_i32 : i32 to index
    %c0_100 = arith.constant 0 : index
    %c0_101 = arith.constant 0 : index
    %219 = vector.load %arg2[%218, %c0_100, %c0_101] : memref<8x32x12xbf16, #tpu.memory_space<vmem>>, vector<1x32x12xbf16>
    %220 = vector.shape_cast %219 : vector<1x32x12xbf16> to vector<32x12xbf16>
    %cst_102 = arith.constant dense<0.000000e+00> : vector<2x12xf32>
    %221 = tpu.matmul %217, %220, %cst_102 {dimension_numbers = #tpu.dot_dimension_numbers<[1], [0], [0], [1], [0, 0, 1, 1], [], []>} : vector<2x32xbf16>, vector<32x12xbf16>, vector<2x12xf32> -> vector<2x12xf32>
    %222 = arith.index_cast %c4_i32 : i32 to index
    %c0_103 = arith.constant 0 : index
    %c0_104 = arith.constant 0 : index
    %223 = vector.load %arg3[%222, %c0_103, %c0_104] : memref<8x1x12xf32, #tpu.memory_space<vmem>>, vector<1x1x12xf32>
    %224 = vector.shape_cast %223 : vector<1x1x12xf32> to vector<1x12xf32>
    %225 = vector.broadcast %224 : vector<1x12xf32> to vector<2x12xf32>
    %226 = arith.addf %221, %225 : vector<2x12xf32>
    %227 = vector.extract_strided_slice %226 {offsets = [0, 0], sizes = [2, 4], strides = [1, 1]} : vector<2x12xf32> to vector<2x4xf32>
    %228 = arith.negf %227 : vector<2x4xf32>
    %229 = math.exp %228 : vector<2x4xf32>
    %cst_105 = arith.constant 1.000000e+00 : f32
    %230 = vector.broadcast %cst_105 : f32 to vector<2x4xf32>
    %231 = arith.addf %230, %229 : vector<2x4xf32>
    %232 = arith.divf %230, %231 : vector<2x4xf32>
    %233 = vector.extract_strided_slice %226 {offsets = [0, 4], sizes = [2, 4], strides = [1, 1]} : vector<2x12xf32> to vector<2x4xf32>
    %234 = math.tanh %233 : vector<2x4xf32>
    %235 = vector.extract_strided_slice %226 {offsets = [0, 8], sizes = [2, 4], strides = [1, 1]} : vector<2x12xf32> to vector<2x4xf32>
    %236 = arith.negf %235 : vector<2x4xf32>
    %237 = math.exp %236 : vector<2x4xf32>
    %cst_106 = arith.constant 1.000000e+00 : f32
    %238 = vector.broadcast %cst_106 : f32 to vector<2x4xf32>
    %239 = arith.addf %238, %237 : vector<2x4xf32>
    %240 = arith.divf %238, %239 : vector<2x4xf32>
    %241 = arith.mulf %232, %234 : vector<2x4xf32>
    %242 = math.tanh %241 : vector<2x4xf32>
    %243 = arith.mulf %240, %242 : vector<2x4xf32>
    %c2_i32_107 = arith.constant 2 : i32
    %c0_i32_108 = arith.constant 0 : i32
    %244 = arith.cmpi eq, %c2_i32_107, %c0_i32_108 : i32
    %c1_i32_109 = arith.constant 1 : i32
    %245 = arith.select %244, %c1_i32_109, %c2_i32_107 : i32
    %246 = arith.remsi %213, %245 : i32
    %c0_i32_110 = arith.constant 0 : i32
    %247 = arith.cmpi ne, %246, %c0_i32_110 : i32
    %c0_i32_111 = arith.constant 0 : i32
    %248 = arith.cmpi slt, %246, %c0_i32_111 : i32
    %c0_i32_112 = arith.constant 0 : i32
    %249 = arith.cmpi slt, %245, %c0_i32_112 : i32
    %250 = arith.xori %248, %249 : i1
    %251 = arith.andi %250, %247 : i1
    %252 = arith.addi %246, %245 : i32
    %253 = arith.select %251, %252, %246 : i32
    %c0_i32_113 = arith.constant 0 : i32
    %254 = arith.cmpi eq, %253, %c0_i32_113 : i32
    %c0_114 = arith.constant 0 : index
    %c0_115 = arith.constant 0 : index
    %255 = vector.load %arg5[%c0_114, %c0_115] : memref<2x4xf32, #tpu.memory_space<vmem>>, vector<2x4xf32>
    %256 = arith.addf %243, %255 : vector<2x4xf32>
    %257 = arith.select %254, %243, %256 : vector<2x4xf32>
    %c0_116 = arith.constant 0 : index
    %c0_117 = arith.constant 0 : index
    %258 = vector.load %arg5[%c0_116, %c0_117] : memref<2x4xf32, #tpu.memory_space<vmem>>, vector<2x4xf32>
    tpu.vector_store %arg5[%c0_116, %c0_117], %257 {strides = array<i32>} : memref<2x4xf32, #tpu.memory_space<vmem>>, vector<2x4xf32>,
    %259 = math.tanh %257 : vector<2x4xf32>
    %c7_i32_118 = arith.constant 7 : i32
    %260 = arith.subi %c7_i32_118, %c4_i32 : i32
    %261 = arith.index_cast %260 : i32 to index
    %c0_119 = arith.constant 0 : index
    %c0_120 = arith.constant 0 : index
    %262 = vector.load %arg4[%261, %c0_119, %c0_120] : memref<8x2x4xf32, #tpu.memory_space<vmem>>, vector<1x2x4xf32>
    %263 = vector.shape_cast %262 : vector<1x2x4xf32> to vector<2x4xf32>
    %264 = vector.shape_cast %259 : vector<2x4xf32> to vector<1x2x4xf32>
    tpu.vector_store %arg4[%261, %c0_119, %c0_120], %264 {strides = array<i32>} : memref<8x2x4xf32, #tpu.memory_space<vmem>>, vector<1x2x4xf32>,
    %c5_i32 = arith.constant 5 : i32
    %c8_i32_121 = arith.constant 8 : i32
    %265 = arith.muli %arg0, %c8_i32_121 : i32
    %266 = arith.addi %265, %c5_i32 : i32
    %c7_i32_122 = arith.constant 7 : i32
    %267 = arith.subi %c7_i32_122, %c5_i32 : i32
    %268 = arith.index_cast %267 : i32 to index
    %c0_123 = arith.constant 0 : index
    %c0_124 = arith.constant 0 : index
    %269 = vector.load %arg1[%268, %c0_123, %c0_124] : memref<8x2x32xbf16, #tpu.memory_space<vmem>>, vector<1x2x32xbf16>
    %270 = vector.shape_cast %269 : vector<1x2x32xbf16> to vector<2x32xbf16>
    %271 = arith.index_cast %c5_i32 : i32 to index
    %c0_125 = arith.constant 0 : index
    %c0_126 = arith.constant 0 : index
    %272 = vector.load %arg2[%271, %c0_125, %c0_126] : memref<8x32x12xbf16, #tpu.memory_space<vmem>>, vector<1x32x12xbf16>
    %273 = vector.shape_cast %272 : vector<1x32x12xbf16> to vector<32x12xbf16>
    %cst_127 = arith.constant dense<0.000000e+00> : vector<2x12xf32>
    %274 = tpu.matmul %270, %273, %cst_127 {dimension_numbers = #tpu.dot_dimension_numbers<[1], [0], [0], [1], [0, 0, 1, 1], [], []>} : vector<2x32xbf16>, vector<32x12xbf16>, vector<2x12xf32> -> vector<2x12xf32>
    %275 = arith.index_cast %c5_i32 : i32 to index
    %c0_128 = arith.constant 0 : index
    %c0_129 = arith.constant 0 : index
    %276 = vector.load %arg3[%275, %c0_128, %c0_129] : memref<8x1x12xf32, #tpu.memory_space<vmem>>, vector<1x1x12xf32>
    %277 = vector.shape_cast %276 : vector<1x1x12xf32> to vector<1x12xf32>
    %278 = vector.broadcast %277 : vector<1x12xf32> to vector<2x12xf32>
    %279 = arith.addf %274, %278 : vector<2x12xf32>
    %280 = vector.extract_strided_slice %279 {offsets = [0, 0], sizes = [2, 4], strides = [1, 1]} : vector<2x12xf32> to vector<2x4xf32>
    %281 = arith.negf %280 : vector<2x4xf32>
    %282 = math.exp %281 : vector<2x4xf32>
    %cst_130 = arith.constant 1.000000e+00 : f32
    %283 = vector.broadcast %cst_130 : f32 to vector<2x4xf32>
    %284 = arith.addf %283, %282 : vector<2x4xf32>
    %285 = arith.divf %283, %284 : vector<2x4xf32>
    %286 = vector.extract_strided_slice %279 {offsets = [0, 4], sizes = [2, 4], strides = [1, 1]} : vector<2x12xf32> to vector<2x4xf32>
    %287 = math.tanh %286 : vector<2x4xf32>
    %288 = vector.extract_strided_slice %279 {offsets = [0, 8], sizes = [2, 4], strides = [1, 1]} : vector<2x12xf32> to vector<2x4xf32>
    %289 = arith.negf %288 : vector<2x4xf32>
    %290 = math.exp %289 : vector<2x4xf32>
    %cst_131 = arith.constant 1.000000e+00 : f32
    %291 = vector.broadcast %cst_131 : f32 to vector<2x4xf32>
    %292 = arith.addf %291, %290 : vector<2x4xf32>
    %293 = arith.divf %291, %292 : vector<2x4xf32>
    %294 = arith.mulf %285, %287 : vector<2x4xf32>
    %295 = math.tanh %294 : vector<2x4xf32>
    %296 = arith.mulf %293, %295 : vector<2x4xf32>
    %c2_i32_132 = arith.constant 2 : i32
    %c0_i32_133 = arith.constant 0 : i32
    %297 = arith.cmpi eq, %c2_i32_132, %c0_i32_133 : i32
    %c1_i32_134 = arith.constant 1 : i32
    %298 = arith.select %297, %c1_i32_134, %c2_i32_132 : i32
    %299 = arith.remsi %266, %298 : i32
    %c0_i32_135 = arith.constant 0 : i32
    %300 = arith.cmpi ne, %299, %c0_i32_135 : i32
    %c0_i32_136 = arith.constant 0 : i32
    %301 = arith.cmpi slt, %299, %c0_i32_136 : i32
    %c0_i32_137 = arith.constant 0 : i32
    %302 = arith.cmpi slt, %298, %c0_i32_137 : i32
    %303 = arith.xori %301, %302 : i1
    %304 = arith.andi %303, %300 : i1
    %305 = arith.addi %299, %298 : i32
    %306 = arith.select %304, %305, %299 : i32
    %c0_i32_138 = arith.constant 0 : i32
    %307 = arith.cmpi eq, %306, %c0_i32_138 : i32
    %c0_139 = arith.constant 0 : index
    %c0_140 = arith.constant 0 : index
    %308 = vector.load %arg5[%c0_139, %c0_140] : memref<2x4xf32, #tpu.memory_space<vmem>>, vector<2x4xf32>
    %309 = arith.addf %296, %308 : vector<2x4xf32>
    %310 = arith.select %307, %296, %309 : vector<2x4xf32>
    %c0_141 = arith.constant 0 : index
    %c0_142 = arith.constant 0 : index
    %311 = vector.load %arg5[%c0_141, %c0_142] : memref<2x4xf32, #tpu.memory_space<vmem>>, vector<2x4xf32>
    tpu.vector_store %arg5[%c0_141, %c0_142], %310 {strides = array<i32>} : memref<2x4xf32, #tpu.memory_space<vmem>>, vector<2x4xf32>,
    %312 = math.tanh %310 : vector<2x4xf32>
    %c7_i32_143 = arith.constant 7 : i32
    %313 = arith.subi %c7_i32_143, %c5_i32 : i32
    %314 = arith.index_cast %313 : i32 to index
    %c0_144 = arith.constant 0 : index
    %c0_145 = arith.constant 0 : index
    %315 = vector.load %arg4[%314, %c0_144, %c0_145] : memref<8x2x4xf32, #tpu.memory_space<vmem>>, vector<1x2x4xf32>
    %316 = vector.shape_cast %315 : vector<1x2x4xf32> to vector<2x4xf32>
    %317 = vector.shape_cast %312 : vector<2x4xf32> to vector<1x2x4xf32>
    tpu.vector_store %arg4[%314, %c0_144, %c0_145], %317 {strides = array<i32>} : memref<8x2x4xf32, #tpu.memory_space<vmem>>, vector<1x2x4xf32>,
    %c6_i32 = arith.constant 6 : i32
    %c8_i32_146 = arith.constant 8 : i32
    %318 = arith.muli %arg0, %c8_i32_146 : i32
    %319 = arith.addi %318, %c6_i32 : i32
    %c7_i32_147 = arith.constant 7 : i32
    %320 = arith.subi %c7_i32_147, %c6_i32 : i32
    %321 = arith.index_cast %320 : i32 to index
    %c0_148 = arith.constant 0 : index
    %c0_149 = arith.constant 0 : index
    %322 = vector.load %arg1[%321, %c0_148, %c0_149] : memref<8x2x32xbf16, #tpu.memory_space<vmem>>, vector<1x2x32xbf16>
    %323 = vector.shape_cast %322 : vector<1x2x32xbf16> to vector<2x32xbf16>
    %324 = arith.index_cast %c6_i32 : i32 to index
    %c0_150 = arith.constant 0 : index
    %c0_151 = arith.constant 0 : index
    %325 = vector.load %arg2[%324, %c0_150, %c0_151] : memref<8x32x12xbf16, #tpu.memory_space<vmem>>, vector<1x32x12xbf16>
    %326 = vector.shape_cast %325 : vector<1x32x12xbf16> to vector<32x12xbf16>
    %cst_152 = arith.constant dense<0.000000e+00> : vector<2x12xf32>
    %327 = tpu.matmul %323, %326, %cst_152 {dimension_numbers = #tpu.dot_dimension_numbers<[1], [0], [0], [1], [0, 0, 1, 1], [], []>} : vector<2x32xbf16>, vector<32x12xbf16>, vector<2x12xf32> -> vector<2x12xf32>
    %328 = arith.index_cast %c6_i32 : i32 to index
    %c0_153 = arith.constant 0 : index
    %c0_154 = arith.constant 0 : index
    %329 = vector.load %arg3[%328, %c0_153, %c0_154] : memref<8x1x12xf32, #tpu.memory_space<vmem>>, vector<1x1x12xf32>
    %330 = vector.shape_cast %329 : vector<1x1x12xf32> to vector<1x12xf32>
    %331 = vector.broadcast %330 : vector<1x12xf32> to vector<2x12xf32>
    %332 = arith.addf %327, %331 : vector<2x12xf32>
    %333 = vector.extract_strided_slice %332 {offsets = [0, 0], sizes = [2, 4], strides = [1, 1]} : vector<2x12xf32> to vector<2x4xf32>
    %334 = arith.negf %333 : vector<2x4xf32>
    %335 = math.exp %334 : vector<2x4xf32>
    %cst_155 = arith.constant 1.000000e+00 : f32
    %336 = vector.broadcast %cst_155 : f32 to vector<2x4xf32>
    %337 = arith.addf %336, %335 : vector<2x4xf32>
    %338 = arith.divf %336, %337 : vector<2x4xf32>
    %339 = vector.extract_strided_slice %332 {offsets = [0, 4], sizes = [2, 4], strides = [1, 1]} : vector<2x12xf32> to vector<2x4xf32>
    %340 = math.tanh %339 : vector<2x4xf32>
    %341 = vector.extract_strided_slice %332 {offsets = [0, 8], sizes = [2, 4], strides = [1, 1]} : vector<2x12xf32> to vector<2x4xf32>
    %342 = arith.negf %341 : vector<2x4xf32>
    %343 = math.exp %342 : vector<2x4xf32>
    %cst_156 = arith.constant 1.000000e+00 : f32
    %344 = vector.broadcast %cst_156 : f32 to vector<2x4xf32>
    %345 = arith.addf %344, %343 : vector<2x4xf32>
    %346 = arith.divf %344, %345 : vector<2x4xf32>
    %347 = arith.mulf %338, %340 : vector<2x4xf32>
    %348 = math.tanh %347 : vector<2x4xf32>
    %349 = arith.mulf %346, %348 : vector<2x4xf32>
    %c2_i32_157 = arith.constant 2 : i32
    %c0_i32_158 = arith.constant 0 : i32
    %350 = arith.cmpi eq, %c2_i32_157, %c0_i32_158 : i32
    %c1_i32_159 = arith.constant 1 : i32
    %351 = arith.select %350, %c1_i32_159, %c2_i32_157 : i32
    %352 = arith.remsi %319, %351 : i32
    %c0_i32_160 = arith.constant 0 : i32
    %353 = arith.cmpi ne, %352, %c0_i32_160 : i32
    %c0_i32_161 = arith.constant 0 : i32
    %354 = arith.cmpi slt, %352, %c0_i32_161 : i32
    %c0_i32_162 = arith.constant 0 : i32
    %355 = arith.cmpi slt, %351, %c0_i32_162 : i32
    %356 = arith.xori %354, %355 : i1
    %357 = arith.andi %356, %353 : i1
    %358 = arith.addi %352, %351 : i32
    %359 = arith.select %357, %358, %352 : i32
    %c0_i32_163 = arith.constant 0 : i32
    %360 = arith.cmpi eq, %359, %c0_i32_163 : i32
    %c0_164 = arith.constant 0 : index
    %c0_165 = arith.constant 0 : index
    %361 = vector.load %arg5[%c0_164, %c0_165] : memref<2x4xf32, #tpu.memory_space<vmem>>, vector<2x4xf32>
    %362 = arith.addf %349, %361 : vector<2x4xf32>
    %363 = arith.select %360, %349, %362 : vector<2x4xf32>
    %c0_166 = arith.constant 0 : index
    %c0_167 = arith.constant 0 : index
    %364 = vector.load %arg5[%c0_166, %c0_167] : memref<2x4xf32, #tpu.memory_space<vmem>>, vector<2x4xf32>
    tpu.vector_store %arg5[%c0_166, %c0_167], %363 {strides = array<i32>} : memref<2x4xf32, #tpu.memory_space<vmem>>, vector<2x4xf32>,
    %365 = math.tanh %363 : vector<2x4xf32>
    %c7_i32_168 = arith.constant 7 : i32
    %366 = arith.subi %c7_i32_168, %c6_i32 : i32
    %367 = arith.index_cast %366 : i32 to index
    %c0_169 = arith.constant 0 : index
    %c0_170 = arith.constant 0 : index
    %368 = vector.load %arg4[%367, %c0_169, %c0_170] : memref<8x2x4xf32, #tpu.memory_space<vmem>>, vector<1x2x4xf32>
    %369 = vector.shape_cast %368 : vector<1x2x4xf32> to vector<2x4xf32>
    %370 = vector.shape_cast %365 : vector<2x4xf32> to vector<1x2x4xf32>
    tpu.vector_store %arg4[%367, %c0_169, %c0_170], %370 {strides = array<i32>} : memref<8x2x4xf32, #tpu.memory_space<vmem>>, vector<1x2x4xf32>,
    %c7_i32_171 = arith.constant 7 : i32
    %c8_i32_172 = arith.constant 8 : i32
    %371 = arith.muli %arg0, %c8_i32_172 : i32
    %372 = arith.addi %371, %c7_i32_171 : i32
    %c7_i32_173 = arith.constant 7 : i32
    %373 = arith.subi %c7_i32_173, %c7_i32_171 : i32
    %374 = arith.index_cast %373 : i32 to index
    %c0_174 = arith.constant 0 : index
    %c0_175 = arith.constant 0 : index
    %375 = vector.load %arg1[%374, %c0_174, %c0_175] : memref<8x2x32xbf16, #tpu.memory_space<vmem>>, vector<1x2x32xbf16>
    %376 = vector.shape_cast %375 : vector<1x2x32xbf16> to vector<2x32xbf16>
    %377 = arith.index_cast %c7_i32_171 : i32 to index
    %c0_176 = arith.constant 0 : index
    %c0_177 = arith.constant 0 : index
    %378 = vector.load %arg2[%377, %c0_176, %c0_177] : memref<8x32x12xbf16, #tpu.memory_space<vmem>>, vector<1x32x12xbf16>
    %379 = vector.shape_cast %378 : vector<1x32x12xbf16> to vector<32x12xbf16>
    %cst_178 = arith.constant dense<0.000000e+00> : vector<2x12xf32>
    %380 = tpu.matmul %376, %379, %cst_178 {dimension_numbers = #tpu.dot_dimension_numbers<[1], [0], [0], [1], [0, 0, 1, 1], [], []>} : vector<2x32xbf16>, vector<32x12xbf16>, vector<2x12xf32> -> vector<2x12xf32>
    %381 = arith.index_cast %c7_i32_171 : i32 to index
    %c0_179 = arith.constant 0 : index
    %c0_180 = arith.constant 0 : index
    %382 = vector.load %arg3[%381, %c0_179, %c0_180] : memref<8x1x12xf32, #tpu.memory_space<vmem>>, vector<1x1x12xf32>
    %383 = vector.shape_cast %382 : vector<1x1x12xf32> to vector<1x12xf32>
    %384 = vector.broadcast %383 : vector<1x12xf32> to vector<2x12xf32>
    %385 = arith.addf %380, %384 : vector<2x12xf32>
    %386 = vector.extract_strided_slice %385 {offsets = [0, 0], sizes = [2, 4], strides = [1, 1]} : vector<2x12xf32> to vector<2x4xf32>
    %387 = arith.negf %386 : vector<2x4xf32>
    %388 = math.exp %387 : vector<2x4xf32>
    %cst_181 = arith.constant 1.000000e+00 : f32
    %389 = vector.broadcast %cst_181 : f32 to vector<2x4xf32>
    %390 = arith.addf %389, %388 : vector<2x4xf32>
    %391 = arith.divf %389, %390 : vector<2x4xf32>
    %392 = vector.extract_strided_slice %385 {offsets = [0, 4], sizes = [2, 4], strides = [1, 1]} : vector<2x12xf32> to vector<2x4xf32>
    %393 = math.tanh %392 : vector<2x4xf32>
    %394 = vector.extract_strided_slice %385 {offsets = [0, 8], sizes = [2, 4], strides = [1, 1]} : vector<2x12xf32> to vector<2x4xf32>
    %395 = arith.negf %394 : vector<2x4xf32>
    %396 = math.exp %395 : vector<2x4xf32>
    %cst_182 = arith.constant 1.000000e+00 : f32
    %397 = vector.broadcast %cst_182 : f32 to vector<2x4xf32>
    %398 = arith.addf %397, %396 : vector<2x4xf32>
    %399 = arith.divf %397, %398 : vector<2x4xf32>
    %400 = arith.mulf %391, %393 : vector<2x4xf32>
    %401 = math.tanh %400 : vector<2x4xf32>
    %402 = arith.mulf %399, %401 : vector<2x4xf32>
    %c2_i32_183 = arith.constant 2 : i32
    %c0_i32_184 = arith.constant 0 : i32
    %403 = arith.cmpi eq, %c2_i32_183, %c0_i32_184 : i32
    %c1_i32_185 = arith.constant 1 : i32
    %404 = arith.select %403, %c1_i32_185, %c2_i32_183 : i32
    %405 = arith.remsi %372, %404 : i32
    %c0_i32_186 = arith.constant 0 : i32
    %406 = arith.cmpi ne, %405, %c0_i32_186 : i32
    %c0_i32_187 = arith.constant 0 : i32
    %407 = arith.cmpi slt, %405, %c0_i32_187 : i32
    %c0_i32_188 = arith.constant 0 : i32
    %408 = arith.cmpi slt, %404, %c0_i32_188 : i32
    %409 = arith.xori %407, %408 : i1
    %410 = arith.andi %409, %406 : i1
    %411 = arith.addi %405, %404 : i32
    %412 = arith.select %410, %411, %405 : i32
    %c0_i32_189 = arith.constant 0 : i32
    %413 = arith.cmpi eq, %412, %c0_i32_189 : i32
    %c0_190 = arith.constant 0 : index
    %c0_191 = arith.constant 0 : index
    %414 = vector.load %arg5[%c0_190, %c0_191] : memref<2x4xf32, #tpu.memory_space<vmem>>, vector<2x4xf32>
    %415 = arith.addf %402, %414 : vector<2x4xf32>
    %416 = arith.select %413, %402, %415 : vector<2x4xf32>
    %c0_192 = arith.constant 0 : index
    %c0_193 = arith.constant 0 : index
    %417 = vector.load %arg5[%c0_192, %c0_193] : memref<2x4xf32, #tpu.memory_space<vmem>>, vector<2x4xf32>
    tpu.vector_store %arg5[%c0_192, %c0_193], %416 {strides = array<i32>} : memref<2x4xf32, #tpu.memory_space<vmem>>, vector<2x4xf32>,
    %418 = math.tanh %416 : vector<2x4xf32>
    %c7_i32_194 = arith.constant 7 : i32
    %419 = arith.subi %c7_i32_194, %c7_i32_171 : i32
    %420 = arith.index_cast %419 : i32 to index
    %c0_195 = arith.constant 0 : index
    %c0_196 = arith.constant 0 : index
    %421 = vector.load %arg4[%420, %c0_195, %c0_196] : memref<8x2x4xf32, #tpu.memory_space<vmem>>, vector<1x2x4xf32>
    %422 = vector.shape_cast %421 : vector<1x2x4xf32> to vector<2x4xf32>
    %423 = vector.shape_cast %418 : vector<2x4xf32> to vector<1x2x4xf32>
    tpu.vector_store %arg4[%420, %c0_195, %c0_196], %423 {strides = array<i32>} : memref<8x2x4xf32, #tpu.memory_space<vmem>>, vector<1x2x4xf32>,
    %c8_i32_197 = arith.constant 8 : i32
    return
  }
  func.func @transform_0(%arg0: i32) -> (i32, i32, i32) {
    %c0_i32 = arith.constant 0 : i32
    %0 = arith.subi %c0_i32, %arg0 : i32
    %c0_i32_0 = arith.constant 0 : i32
    %c0_i32_1 = arith.constant 0 : i32
    %c0_i32_2 = arith.constant 0 : i32
    return %0, %c0_i32_0, %c0_i32_1 : i32, i32, i32
  }
  func.func @transform_1(%arg0: i32) -> (i32, i32, i32) {
    %c0_i32 = arith.constant 0 : i32
    %c0_i32_0 = arith.constant 0 : i32
    %c0_i32_1 = arith.constant 0 : i32
    return %arg0, %c0_i32, %c0_i32_0 : i32, i32, i32
  }
  func.func @transform_2(%arg0: i32) -> (i32, i32, i32) {
    %c0_i32 = arith.constant 0 : i32
    %c0_i32_0 = arith.constant 0 : i32
    %c0_i32_1 = arith.constant 0 : i32
    return %arg0, %c0_i32, %c0_i32_0 : i32, i32, i32
  }
  func.func @transform_3(%arg0: i32) -> (i32, i32, i32) {
    %c0_i32 = arith.constant 0 : i32
    %0 = arith.subi %c0_i32, %arg0 : i32
    %c0_i32_0 = arith.constant 0 : i32
    %c0_i32_1 = arith.constant 0 : i32
    %c0_i32_2 = arith.constant 0 : i32
    return %0, %c0_i32_0, %c0_i32_1 : i32, i32, i32
  }
}

</mosaic_0001>

<bundles_post_ra>
// kernel: asc_lstm_forward.3
= control target key start
LH: loop header
LB: loop body
LE: loop exit
PB: predicated region body
PF: predicated region fallthrough
CT: control target
= control target key end

     0   :  { %v1345_v0 = vmov 0.0   ;;  %vm1346_vm0 = vmmov 0   ;;  %vm74_vm1 = vcmask 261120   ;;  %s1347_s15 = smov 124   ;;  %s1348_s24 = smov 8   ;;  %vm163_vm2 = vcmask 25600   ;;  %s1602_s1 = inlined_call_operand.vmem [shape: bf16[8,32,12], index: 1, kind: input, shape index: {}]   ;;  %s1603_s0 = inlined_call_operand.vmem [shape: bf16[8,2,32], index: 0, kind: input, shape index: {}]   ;;  %s1604_s2 = inlined_call_operand.vmem [shape: f32[8,1,12], index: 2, kind: input, shape index: {}]   ;;  %s1605_s3 = inlined_call_operand.vmem [shape: f32[8,2,4], index: 3, kind: output, shape index: {}]  }
   0x1   :  { %1180 = vmatprep.subr.bf16.mxu0 %v1345_v0  ;;  %v1249_v1 = vld [vmem:[%s1602_s1] sm:$0xff]   ;;  %1184 = vmatprep.mubr.msk.bf16.mxu0 %vm1346_vm0, %v1345_v0  ;;  %v1250_v2 = vld [vmem:[%s1602_s1 + $0x8] sm:$0xff]   ;;  %v1251_v3 = vld [vmem:[%s1602_s1 + $0x10] sm:$0xff]   ;;  %s1349_s29 = smov 120  }
   0x2   :  { %1188 = vmatprep.subr.bf16.mxu1 %v1345_v0  ;;  %1192 = vmatprep.mubr.msk.bf16.mxu1 %vm1346_vm0, %v1345_v0  ;;  %v1252_v4 = vld [vmem:[%s1602_s1 + $0x18] sm:$0xff]   ;;  %v1067_v5 = vld [vmem:[%s1603_s0 + $0x7] sm:$0x1]  ;;  %v1074_v7 = vld [vmem:[%s1603_s0 + $0x6] sm:$0x1] }
   0x3   :  { %1181 = vmatpush3.bf16.msra.mxu0 %v1249_v1  ;;  %1189 = vmatpush3.bf16.msra.mxu1 %v1251_v3  ;;  %v1253_v6 = vld [vmem:[%s1602_s1 + $0x20] sm:$0xff]   ;;  %v1254_v8 = vld [vmem:[%s1602_s1 + $0x28] sm:$0xff]   ;;  %v1257_v33 = vld [vmem:[%s1602_s1 + $0x30] sm:$0xff]  }
   0x4   :  { %1182 = vmatprep.subr.bf16.mxu0 %v1345_v0  ;;  %1190 = vmatprep.subr.bf16.mxu1 %v1345_v0  ;;  %v1086_v9 = vld [vmem:[%s1603_s0 + $0x5] sm:$0x1]  ;;  %v1256_v11 = vld [vmem:[%s1602_s1 + $0x48] sm:$0xff]   ;;  %v1110_v12 = vld [vmem:[%s1603_s0 + $0x3] sm:$0x1] }
   0x5   :  { %v1255_v10 = vld [vmem:[%s1602_s1 + $0x40] sm:$0xff]   ;;  %v1258_v35 = vld [vmem:[%s1602_s1 + $0x38] sm:$0xff]  }
   0x6   :  { %v1068_v13 = vld [vmem:[%s1604_s2] ss:$0 sm:$0xff]  ;;  %v1080_v17 = vld [vmem:[%s1604_s2 + $0x1] ss:$0 sm:$0xff]  ;;  %v1092_v24 = vld [vmem:[%s1604_s2 + $0x2] ss:$0 sm:$0xff] }
   0x7   :  { %1183 = vmatpush3.bf16.msra.mxu0 %v1250_v2  ;;  %1191 = vmatpush3.bf16.msra.mxu1 %v1252_v4  ;;  %v1098_v36 = vld [vmem:[%s1603_s0 + $0x4] sm:$0x1] }
   0x8   :  { %1196 = vmatprep.subr.bf16.mxu0 %v1345_v0  ;;  %1204 = vmatprep.subr.bf16.mxu1 %v1345_v0  ;;  %v1116_v57 = vld [vmem:[%s1604_s2 + $0x4] ss:$0 sm:$0xff] }
   0xa   :  { %1185 = vmatmul.mubr.msk.bf16.vlgmr.msra.gmra.mrb[0].mxu0 %vm74_vm1, %v1067_v5  ;;  %1193 = vmatmul.mubr.msk.bf16.vlgmr.msra.gmra.mrb[0].mxu1 %vm74_vm1, %v1074_v7 }
   0xb   :  { %1197 = vmatpush3.bf16.msra.mxu0 %v1253_v6  ;;  %1200 = vmatprep.mubr.msk.bf16.mxu0 %vm1346_vm0, %v1345_v0 }
   0xc   :  { %1198 = vmatprep.subr.bf16.mxu0 %v1345_v0  ;;  %1208 = vmatprep.mubr.msk.bf16.mxu1 %vm1346_vm0, %v1345_v0 }
   0xd   :  { %1205 = vmatpush3.bf16.msra.mxu1 %v1257_v33 }
   0xe   :  { %1206 = vmatprep.subr.bf16.mxu1 %v1345_v0 }
   0xf   :  { %1199 = vmatpush3.bf16.msra.mxu0 %v1254_v8  ;;  %v1259_v8 = vld [vmem:[%s1602_s1 + $0x50] sm:$0xff]  }
  0x10   :  { %1212 = vmatprep.subr.bf16.mxu0 %v1345_v0 }
  0x11   :  { %1207 = vmatpush3.bf16.msra.mxu1 %v1258_v35 }
  0x12   :  { %1201 = vmatmul.mubr.msk.bf16.vlgmr.msra.gmra.mrb[4].mxu0 %vm74_vm1, %v1086_v9  ;;  %1220 = vmatprep.subr.bf16.mxu1 %v1345_v0  ;;  %v1261_v9 = vld [vmem:[%s1602_s1 + $0x60] sm:$0xff]  }
  0x13   :  { %1216 = vmatprep.mubr.msk.bf16.mxu0 %vm1346_vm0, %v1345_v0  ;;  %1213 = vmatpush3.bf16.msra.mxu0 %v1255_v10 }
  0x14   :  { %1214 = vmatprep.subr.bf16.mxu0 %v1345_v0  ;;  %1209 = vmatmul.mubr.msk.bf16.vlgmr.msra.gmra.mrb[4].mxu1 %vm74_vm1, %v1098_v36 }
  0x15   :  { %1224 = vmatprep.mubr.msk.bf16.mxu1 %vm1346_vm0, %v1345_v0  ;;  %1221 = vmatpush3.bf16.msra.mxu1 %v1259_v8 }
  0x16   :  { %1222 = vmatprep.subr.bf16.mxu1 %v1345_v0 }
  0x17   :  { %1215 = vmatpush3.bf16.msra.mxu0 %v1256_v11  ;;  %v1260_v11 = vld [vmem:[%s1602_s1 + $0x58] sm:$0xff]  }
  0x18   :  { %1228 = vmatprep.subr.bf16.mxu0 %v1345_v0 }
  0x19   :  { %1223 = vmatpush3.bf16.msra.mxu1 %v1260_v11 }
  0x1a   :  { %1217 = vmatmul.mubr.msk.bf16.vlgmr.msra.gmra.mrb[8].mxu0 %vm74_vm1, %v1110_v12  ;;  %v1262_v12 = vld [vmem:[%s1602_s1 + $0x68] sm:$0xff]   ;;  %1236 = vmatprep.subr.bf16.mxu1 %v1345_v0 }
  0x1b   :  { %1232 = vmatprep.mubr.msk.bf16.mxu0 %vm1346_vm0, %v1345_v0  ;;  %1229 = vmatpush3.bf16.msra.mxu0 %v1261_v9 }
  0x1c   :  { %1230 = vmatprep.subr.bf16.mxu0 %v1345_v0 }
  0x1f   :  { %1231 = vmatpush3.bf16.msra.mxu0 %v1262_v12 }
  0xdd   :  { %v112_v14 = vpop.f32.mrb[0].mxu0  ;;  %v237_v20 = vpop.f32.mrb[0].mxu1 }
  0xde   :  { %v113_v15 = vadd.f32 %v1068_v13, %v112_v14  ;;  %v1186_v16 = vpop.f32.mrb[1].mxu0  ;;  %v238_v21 = vadd.f32 %v1080_v17, %v237_v20  ;;  %v1194_v22 = vpop.f32.mrb[1].mxu1  ;;  %v1122_v14 = vld [vmem:[%s1603_s0 + $0x2] sm:$0x1]  ;;  %v1104_v17 = vld [vmem:[%s1604_s2 + $0x3] ss:$0 sm:$0xff] }
  0xdf   :  { %v115_v18 = vpop.f32.mrb[2].mxu0  ;;  %v240_v23 = vpop.f32.mrb[2].mxu1  ;;  %v1134_v16 = vld [vmem:[%s1603_s0 + $0x1] sm:$0x1]  ;;  %1225 = vmatmul.mubr.msk.bf16.vlgmr.msra.gmra.mrb[8].mxu1 %vm74_vm1, %v1122_v14 }
  0xe0   :  { %1265 = vtanh.f32 %v113_v15  ;;  %v1187_v19 = vpop.f32.mrb[3].mxu0  ;;  %v1195_v25 = vpop.f32.mrb[3].mxu1  ;;  %v1072_v37 = vmul.f32 -1.442695, %v113_v15  ;;  %v1084_v38 = vmul.f32 -1.442695, %v238_v21  ;;  %1233 = vmatmul.mubr.msk.bf16.vlgmr.msra.gmra.mrb[12].mxu0 %vm74_vm1, %v1134_v16  ;;  %1240 = vmatprep.mubr.msk.bf16.mxu1 %vm1346_vm0, %v1345_v0 }
  0xe1   :  { %1267 = vtanh.f32 %v238_v21 }
  0xe5   :  { %v361_v26 = vpop.f32.mrb[4].mxu0 }
  0xe6   :  { %v362_v27 = vadd.f32 %v1092_v24, %v361_v26  ;;  %v1202_v28 = vpop.f32.mrb[5].mxu0 }
  0xe7   :  { %v364_v29 = vpop.f32.mrb[6].mxu0  ;;  %v485_v2 = vpop.f32.mrb[4].mxu1 }
  0xe8   :  { %1269 = vtanh.f32 %v362_v27  ;;  %v1203_v30 = vpop.f32.mrb[7].mxu0  ;;  %v1096_v39 = vmul.f32 -1.442695, %v362_v27  ;;  %v1210_v3 = vpop.f32.mrb[5].mxu1  ;;  %v486_v18 = vadd.f32 %v1104_v17, %v485_v2 }
  0xe9   :  { %1271 = vpow2.f32 %v1072_v37  ;;  %v488_v4 = vpop.f32.mrb[6].mxu1 }
  0xea   :  { %v1266_v31 = vpop.eup %1265  ;;  %1273 = vpow2.f32 %v1084_v38  ;;  %v1211_v5 = vpop.f32.mrb[7].mxu1  ;;  %v1108_v23 = vmul.f32 -1.442695, %v486_v18 }
  0xeb   :  { %126 = vrot.lane.b32.xlu0 %v1266_v31, %s1347_s15  ;;  %v1268_v32 = vpop.eup %1267  ;;  %1275 = vpow2.f32 %v1096_v39 }
  0xec   :  { %251 = vrot.lane.b32.xlu1 %v1268_v32, %s1347_s15 }
  0xed   :  { %v609_v45 = vpop.f32.mrb[8].mxu0 }
  0xee   :  { %v1218_v46 = vpop.f32.mrb[9].mxu0  ;;  %v610_v60 = vadd.f32 %v1116_v57, %v609_v45  ;;  %v1140_v45 = vld [vmem:[%s1604_s2 + $0x6] ss:$0 sm:$0xff] }
  0xef   :  { %v612_v48 = vpop.f32.mrb[10].mxu0 }
  0xf0   :  { %v1219_v49 = vpop.f32.mrb[11].mxu0  ;;  %v1120_v22 = vmul.f32 -1.442695, %v610_v60  ;;  %v1264_v48 = vld [vmem:[%s1602_s1 + $0x78] sm:$0xff]  }
  0xf1   :  { %v917_v49 = vld [vmem:[%s1603_s0] sm:$0x1] }
  0xf2   :  { %v1270_v34 = vpop.eup %1269 }
  0xf3   :  { %375 = vrot.lane.b32.xlu1 %v1270_v34, %s1347_s15  ;;  %v1272_v40 = vpop.eup %1271 }
  0xf4   :  { %v1274_v41 = vpop.eup %1273  ;;  %v121_v42 = vadd.f32 1.0, %v1272_v40 }
  0xf5   :  { %v246_v43 = vadd.f32 1.0, %v1274_v41  ;;  %v1276_v44 = vpop.eup %1275 }
  0xf6   :  { %1277 = vrcp.f32 %v121_v42  ;;  %v370_v47 = vadd.f32 1.0, %v1276_v44 }
  0xf7   :  { %1279 = vrcp.f32 %v246_v43 }
  0xf8   :  { %1281 = vrcp.f32 %v370_v47  ;;  %v1263_v47 = vld [vmem:[%s1602_s1 + $0x70] sm:$0xff]  }
  0xf9   :  { %1237 = vmatpush3.bf16.msra.mxu1 %v1263_v47 }
  0xfa   :  { %1238 = vmatprep.subr.bf16.mxu1 %v1345_v0  ;;  %v1128_v0 = vld [vmem:[%s1604_s2 + $0x5] ss:$0 sm:$0xff] }
  0xfd   :  { %1239 = vmatpush3.bf16.msra.mxu1 %v1264_v48 }
 0x100   :  { %v1278_v50 = vpop.eup %1277  ;;  %1241 = vmatmul.mubr.msk.bf16.vlgmr.msra.gmra.mrb[12].mxu1 %vm74_vm1, %v917_v49 }
 0x101   :  { %v1458_v52 = vpop.eup %1279 }
 0x102   :  { %v1282_v56 = vpop.eup %1281 }
 0x15d   :  { %v127_v51 = vpop.permute.xlu0 %126 }
 0x15e   :  { %v129_v53 = vmul.f32 %v1278_v50, %v127_v51  ;;  %v252_v54 = vpop.permute.xlu1 %251 }
 0x15f   :  { %v254_v55 = vmul.f32 %v1458_v52, %v252_v54 }
 0x160   :  { %1283 = vtanh.f32 %v129_v53 }
 0x161   :  { %1285 = vtanh.f32 %v254_v55 }
 0x165   :  { %v376_v58 = vpop.permute.xlu1 %375 }
 0x166   :  { %v378_v59 = vmul.f32 %v1282_v56, %v376_v58 }
 0x168   :  { %1287 = vtanh.f32 %v378_v59 }
 0x169   :  { %1289 = vtanh.f32 %v610_v60 }
 0x16a   :  { %v1284_v61 = vpop.eup %1283  ;;  %1291 = vtanh.f32 %v486_v18 }
 0x16b   :  { %132 = vrot.lane.b32.xlu0 %v1284_v61, %s1348_s24  ;;  %v1286_v62 = vpop.eup %1285  ;;  %1293 = vpow2.f32 %v1120_v22 }
 0x16c   :  { %257 = vrot.lane.b32.xlu1 %v1286_v62, %s1348_s24  ;;  %1295 = vpow2.f32 %v1108_v23 }
 0x172   :  { %v1288_v63 = vpop.eup %1287 }
 0x173   :  { %381 = vrot.lane.b32.xlu1 %v1288_v63, %s1348_s24  ;;  %v1290_v1 = vpop.eup %1289 }
 0x174   :  { %v1292_v21 = vpop.eup %1291 }
 0x175   :  { %v1294_v26 = vpop.eup %1293 }
 0x176   :  { %v1296_v28 = vpop.eup %1295  ;;  %v618_v30 = vadd.f32 1.0, %v1294_v26 }
 0x177   :  { %623 = vrot.lane.b32.xlu1 %v1290_v1, %s1347_s15  ;;  %v494_v31 = vadd.f32 1.0, %v1296_v28 }
 0x178   :  { %1297 = vrcp.f32 %v618_v30 }
 0x179   :  { %1299 = vrcp.f32 %v494_v31 }
 0x182   :  { %v1298_v38 = vpop.eup %1297 }
 0x183   :  { %v1300_v40 = vpop.eup %1299 }
 0x1b2   :  { %v733_v24 = vpop.f32.mrb[8].mxu1 }
 0x1b3   :  { %v1226_v25 = vpop.f32.mrb[9].mxu1  ;;  %v857_v32 = vpop.f32.mrb[12].mxu0  ;;  %v734_v53 = vadd.f32 %v1128_v0, %v733_v24 }
 0x1b4   :  { %v736_v27 = vpop.f32.mrb[10].mxu1  ;;  %v1234_v33 = vpop.f32.mrb[13].mxu0  ;;  %v858_v46 = vadd.f32 %v1140_v45, %v857_v32 }
 0x1b5   :  { %v1227_v29 = vpop.f32.mrb[11].mxu1  ;;  %v860_v34 = vpop.f32.mrb[14].mxu0  ;;  %v1132_v61 = vmul.f32 -1.442695, %v734_v53 }
 0x1b6   :  { %v1235_v35 = vpop.f32.mrb[15].mxu0  ;;  %v1144_v62 = vmul.f32 -1.442695, %v858_v46 }
 0x1d3   :  { %v980_v4 = vpop.f32.mrb[12].mxu1 }
 0x1d4   :  { %v1242_v5 = vpop.f32.mrb[13].mxu1 }
 0x1dd   :  { %v133_v6 = vpop.permute.xlu0 %132 }
 0x1de   :  { %v1468_v7 = vmul.f32 %v1278_v50, %v133_v6  ;;  %v258_v10 = vpop.permute.xlu1 %257  ;;  %v983_v6 = vpop.f32.mrb[14].mxu1 }
 0x1df   :  { %v260_v36 = vmul.f32 %v1458_v52, %v258_v10  ;;  %v1243_v8 = vpop.f32.mrb[15].mxu1 }
 0x1e0   :  { %160 = vrot.lane.b32.xlu0 %v1468_v7, %s1349_s29 }
 0x1e5   :  { %v382_v13 = vpop.permute.xlu1 %381 }
 0x1e6   :  { %v1489_v15 = vmul.f32 %v1282_v56, %v382_v13 }
 0x1e8   :  { %409 = vrot.lane.b32.xlu1 %v1489_v15, %s1349_s29 }
 0x1e9   :  { %v624_v41 = vpop.permute.xlu1 %623 }
 0x1ea   :  { %v626_v43 = vmul.f32 %v1298_v38, %v624_v41 }
 0x252   :  { %v161_v19 = vpop.permute.xlu0 %160 }
 0x253   :  { %164 = vst.msk [vmem:[#allocation2] sm:$0x3] %vm163_vm2, %v161_v19 }
 0x25a   :  { %v274_v20 = vld [vmem:[#allocation2] sm:$0x3]  ;;  %v410_v55 = vpop.permute.xlu1 %409 }
 0x25b   :  { %276 = vrot.lane.b32.xlu0 %v274_v20, %s1348_s24 }
 0x25f   :  { %499 = vrot.lane.b32.xlu0 %v1292_v21, %s1347_s15  ;;  %v1151_v21 = vld [vmem:[%s1604_s2 + $0x7] ss:$0 sm:$0xff] }
 0x260   :  { %v981_v22 = vadd.f32 %v1151_v21, %v980_v4 }
 0x262   :  { %v1155_v30 = vmul.f32 -1.442695, %v981_v22 }
 0x2cd   :  { %v277_v37 = vpop.permute.xlu0 %276 }
 0x2ce   :  { %v1508_v39 = vadd.f32 %v277_v37, %v260_v36 }
 0x2d0   :  { %285 = vrot.lane.b32.xlu0 %v1508_v39, %s1349_s29 }
 0x2d1   :  { %v500_v42 = vpop.permute.xlu0 %499 }
 0x2d2   :  { %v502_v44 = vmul.f32 %v1300_v40, %v500_v42 }
 0x2d4   :  { %1301 = vtanh.f32 %v502_v44 }
 0x2d5   :  { %1303 = vtanh.f32 %v626_v43 }
 0x2d6   :  { %1305 = vtanh.f32 %v858_v46 }
 0x2d7   :  { %1307 = vtanh.f32 %v734_v53 }
 0x2d8   :  { %1309 = vpow2.f32 %v1132_v61 }
 0x2d9   :  { %1311 = vpow2.f32 %v1144_v62 }
 0x2de   :  { %v1302_v50 = vpop.eup %1301 }
 0x2df   :  { %505 = vrot.lane.b32.xlu0 %v1302_v50, %s1348_s24  ;;  %v1304_v51 = vpop.eup %1303 }
 0x2e0   :  { %v1306_v52 = vpop.eup %1305 }
 0x2e1   :  { %v1308_v57 = vpop.eup %1307 }
 0x2e2   :  { %v1310_v63 = vpop.eup %1309 }
 0x2e3   :  { %629 = vrot.lane.b32.xlu0 %v1304_v51, %s1348_s24  ;;  %v1312_v1 = vpop.eup %1311  ;;  %v742_v2 = vadd.f32 1.0, %v1310_v63 }
 0x2e4   :  { %v866_v3 = vadd.f32 1.0, %v1312_v1 }
 0x2e5   :  { %1313 = vrcp.f32 %v742_v2 }
 0x2e6   :  { %1315 = vrcp.f32 %v866_v3 }
 0x2e7   :  { %871 = vrot.lane.b32.xlu0 %v1306_v52, %s1347_s15 }
 0x2ef   :  { %v1314_v11 = vpop.eup %1313 }
 0x2f0   :  { %v1316_v13 = vpop.eup %1315 }
 0x342   :  { %v286_v54 = vpop.permute.xlu0 %285 }
 0x343   :  { %288 = vst.msk [vmem:[#allocation2] sm:$0x3] %vm163_vm2, %v286_v54 }
 0x344   :  { %412 = vst.msk [vmem:[#allocation2] sm:$0x3] %vm163_vm2, %v410_v55 }
 0x34b   :  { %v522_v56 = vld [vmem:[#allocation2] sm:$0x3] }
 0x34c   :  { %524 = vrot.lane.b32.xlu1 %v522_v56, %s1348_s24 }
 0x350   :  { %747 = vrot.lane.b32.xlu1 %v1308_v57, %s1347_s15 }
 0x351   :  { %v506_v58 = vpop.permute.xlu0 %505 }
 0x352   :  { %v508_v9 = vmul.f32 %v1300_v40, %v506_v58 }
 0x355   :  { %v630_v59 = vpop.permute.xlu0 %629 }
 0x356   :  { %v1536_v60 = vmul.f32 %v1298_v38, %v630_v59 }
 0x358   :  { %657 = vrot.lane.b32.xlu0 %v1536_v60, %s1349_s29 }
 0x359   :  { %v872_v14 = vpop.permute.xlu0 %871 }
 0x35a   :  { %v874_v18 = vmul.f32 %v1316_v13, %v872_v14 }
 0x3be   :  { %v525_v10 = vpop.permute.xlu1 %524 }
 0x3bf   :  { %v527_v12 = vadd.f32 %v525_v10, %v508_v9 }
 0x3c1   :  { %533 = vrot.lane.b32.xlu1 %v527_v12, %s1349_s29 }
 0x3c2   :  { %v748_v16 = vpop.permute.xlu1 %747 }
 0x3c3   :  { %v750_v17 = vmul.f32 %v1314_v11, %v748_v16 }
 0x3c5   :  { %1317 = vtanh.f32 %v750_v17 }
 0x3c6   :  { %1319 = vtanh.f32 %v874_v18 }
 0x3c7   :  { %1321 = vtanh.f32 %v981_v22 }
 0x3c8   :  { %1323 = vpow2.f32 %v1155_v30 }
 0x3ca   :  { %v658_v24 = vpop.permute.xlu0 %657 }
 0x3cf   :  { %v1318_v19 = vpop.eup %1317 }
 0x3d0   :  { %753 = vrot.lane.b32.xlu1 %v1318_v19, %s1348_s24  ;;  %v1320_v20 = vpop.eup %1319 }
 0x3d1   :  { %v1322_v26 = vpop.eup %1321 }
 0x3d2   :  { %v1324_v31 = vpop.eup %1323 }
 0x3d3   :  { %v989_v32 = vadd.f32 1.0, %v1324_v31 }
 0x3d4   :  { %877 = vrot.lane.b32.xlu1 %v1320_v20, %s1348_s24 }
 0x3d5   :  { %1325 = vrcp.f32 %v989_v32 }
 0x3df   :  { %v1326_v36 = vpop.eup %1325 }
 0x433   :  { %v534_v23 = vpop.permute.xlu1 %533 }
 0x434   :  { %536 = vst.msk [vmem:[#allocation2] sm:$0x3] %vm163_vm2, %v534_v23 }
 0x435   :  { %660 = vst.msk [vmem:[#allocation2] sm:$0x3] %vm163_vm2, %v658_v24 }
 0x43c   :  { %v770_v25 = vld [vmem:[#allocation2] sm:$0x3] }
 0x43d   :  { %772 = vrot.lane.b32.xlu0 %v770_v25, %s1348_s24 }
 0x441   :  { %994 = vrot.lane.b32.xlu0 %v1322_v26, %s1347_s15 }
 0x442   :  { %v754_v27 = vpop.permute.xlu1 %753 }
 0x443   :  { %v756_v33 = vmul.f32 %v1314_v11, %v754_v27 }
 0x446   :  { %v878_v28 = vpop.permute.xlu1 %877 }
 0x447   :  { %v880_v29 = vmul.f32 %v1316_v13, %v878_v28 }
 0x449   :  { %905 = vrot.lane.b32.xlu0 %v880_v29, %s1349_s29 }
 0x4af   :  { %v773_v34 = vpop.permute.xlu0 %772 }
 0x4b0   :  { %v775_v35 = vadd.f32 %v773_v34, %v756_v33 }
 0x4b2   :  { %781 = vrot.lane.b32.xlu1 %v775_v35, %s1349_s29 }
 0x4b3   :  { %v995_v37 = vpop.permute.xlu0 %994 }
 0x4b4   :  { %v997_v38 = vmul.f32 %v1326_v36, %v995_v37 }
 0x4b6   :  { %1327 = vtanh.f32 %v997_v38 }
 0x4b7   :  { %1329 = vtanh.f32 %v1468_v7 }
 0x4b8   :  { %1331 = vtanh.f32 %v1489_v15 }
 0x4b9   :  { %1333 = vtanh.f32 %v1536_v60 }
 0x4ba   :  { %1335 = vtanh.f32 %v880_v29 }
 0x4bb   :  { %v906_v15 = vpop.permute.xlu0 %905  ;;  %1337 = vtanh.f32 %v1508_v39 }
 0x4bc   :  { %1339 = vtanh.f32 %v527_v12 }
 0x4bd   :  { %1341 = vtanh.f32 %v775_v35 }
 0x4c0   :  { %v1328_v40 = vpop.eup %1327 }
 0x4c1   :  { %1000 = vrot.lane.b32.xlu1 %v1328_v40, %s1348_s24  ;;  %v1330_v41 = vpop.eup %1329 }
 0x4c2   :  { %v1332_v42 = vpop.eup %1331 }
 0x4c3   :  { %v1334_v43 = vpop.eup %1333 }
 0x4c4   :  { %v1336_v44 = vpop.eup %1335 }
 0x4c5   :  { %167 = vrot.lane.b32.xlu1 %v1330_v41, %s1349_s29  ;;  %v1338_v46 = vpop.eup %1337 }
 0x4c6   :  { %v1340_v48 = vpop.eup %1339 }
 0x4c7   :  { %v1342_v50 = vpop.eup %1341 }
 0x4c9   :  { %415 = vrot.lane.b32.xlu1 %v1332_v42, %s1349_s29 }
 0x4cd   :  { %663 = vrot.lane.b32.xlu1 %v1334_v43, %s1349_s29 }
 0x4d1   :  { %911 = vrot.lane.b32.xlu1 %v1336_v44, %s1349_s29 }
 0x524   :  { %v782_v7 = vpop.permute.xlu1 %781 }
 0x525   :  { %784 = vst.msk [vmem:[#allocation2] sm:$0x3] %vm163_vm2, %v782_v7 }
 0x526   :  { %908 = vst.msk [vmem:[#allocation2] sm:$0x3] %vm163_vm2, %v906_v15 }
 0x52d   :  { %v1017_v45 = vld [vmem:[#allocation2] sm:$0x3] }
 0x52e   :  { %1019 = vrot.lane.b32.xlu0 %v1017_v45, %s1348_s24 }
 0x532   :  { %291 = vrot.lane.b32.xlu0 %v1338_v46, %s1349_s29 }
 0x533   :  { %v1001_v47 = vpop.permute.xlu1 %1000 }
 0x534   :  { %v1003_v0 = vmul.f32 %v1326_v36, %v1001_v47 }
 0x536   :  { %539 = vrot.lane.b32.xlu0 %v1340_v48, %s1349_s29 }
 0x537   :  { %v168_v49 = vpop.permute.xlu1 %167 }
 0x538   :  { %1073 = vst.msk [vmem:[%s1605_s3 + $0xe] sm:$0x3] %vm163_vm2, %v168_v49 }
 0x53a   :  { %787 = vrot.lane.b32.xlu0 %v1342_v50, %s1349_s29 }
 0x53b   :  { %v416_v39 = vpop.permute.xlu1 %415 }
 0x53c   :  { %1097 = vst.msk [vmem:[%s1605_s3 + $0xa] sm:$0x3] %vm163_vm2, %v416_v39 }
 0x53f   :  { %v664_v51 = vpop.permute.xlu1 %663 }
 0x540   :  { %1121 = vst.msk [vmem:[%s1605_s3 + $0x6] sm:$0x3] %vm163_vm2, %v664_v51 }
 0x543   :  { %v912_v52 = vpop.permute.xlu1 %911 }
 0x544   :  { %1145 = vst.msk [vmem:[%s1605_s3 + $0x2] sm:$0x3] %vm163_vm2, %v912_v52 }
 0x5a0   :  { %v1020_v53 = vpop.permute.xlu0 %1019 }
 0x5a1   :  { %v1022_v54 = vadd.f32 %v1020_v53, %v1003_v0 }
 0x5a3   :  { %1343 = vtanh.f32 %v1022_v54  ;;  %1028 = vrot.lane.b32.xlu0 %v1022_v54, %s1349_s29 }
 0x5a4   :  { %v292_v55 = vpop.permute.xlu0 %291 }
 0x5a5   :  { %1085 = vst.msk [vmem:[%s1605_s3 + $0xc] sm:$0x3] %vm163_vm2, %v292_v55 }
 0x5a8   :  { %v540_v56 = vpop.permute.xlu0 %539 }
 0x5a9   :  { %1109 = vst.msk [vmem:[%s1605_s3 + $0x8] sm:$0x3] %vm163_vm2, %v540_v56 }
 0x5ac   :  { %v788_v57 = vpop.permute.xlu0 %787 }
 0x5ad   :  { %v1344_v58 = vpop.eup %1343  ;;  %1133 = vst.msk [vmem:[%s1605_s3 + $0x4] sm:$0x3] %vm163_vm2, %v788_v57 }
 0x5ae   :  { %1034 = vrot.lane.b32.xlu1 %v1344_v58, %s1349_s29 }
 0x615   :  { %v1029_v59 = vpop.permute.xlu0 %1028 }
 0x616   :  { %1031 = vst.msk [vmem:[#allocation2] sm:$0x3] %vm163_vm2, %v1029_v59 }
 0x620   :  { %v1035_v60 = vpop.permute.xlu1 %1034 }
 0x621   :  { %1037 = vst.msk [vmem:[%s1605_s3] sm:$0x3] %vm163_vm2, %v1035_v60 }

// kernel: asc_lstm_forward.2
= control target key start
LH: loop header
LB: loop body
LE: loop exit
PB: predicated region body
PF: predicated region fallthrough
CT: control target
= control target key end

     0   :  { %9 = vsyncpa [#allocation4], 0  ;;  %s1854_s15 = smov [#allocation3]   ;;  %s2207_s0 = inlined_call_operand.vmem [shape: bf16[8,2,4], index: 0, kind: input, shape index: {}]   ;;  %s2208_s1 = inlined_call_operand.vmem [shape: bf16[8,4,128], index: 1, kind: input, shape index: {}]   ;;  %s2209_s2 = inlined_call_operand.hbm [shape: bf16[8,32,128], index: 2, kind: input, shape index: {}]   ;;  %s2210_s3 = inlined_call_operand.vmem [shape: f32[8,1,128], index: 3, kind: input, shape index: {}]   ;;  %s2211_s4 = inlined_call_operand.vmem [shape: bf16[8,2,32], index: 4, kind: output, shape index: {}]  }
   0x1   :  { %s19_s16 = sshll.u32 %s1854_s15, 4  ;;  %s1830_s19 = scalar_lea.hbm %s2209_s2, 2048  ;;  %s20_s16 = int_to_ptr.vmem [resolvable:$true] %s19_s16 }
   0x2   :  { %p1831_p0 = scmp.ne.s32.totalorder %s2209_s2, %s1830_s19  ;;  %p1834_p1 = scmp.lt.u32.totalorder %s1830_s19, %s2209_s2 }
   0x4   :  { %p1836_p2 = pnand %p1834_p1, %p1831_p0 }
   0x6   :  { %1839 = shalt.err (!%p1836_p2)
}
   0x7   :  { %s1840_s24 = scalar_lea.vmem %s20_s16, 2048  ;;  %p1845_p4 = scmp.lt.s32.totalorder %s20_s16, %s20_s16 }
   0x8   :  { %p1841_p3 = scmp.ne.s32.totalorder %s20_s16, %s1840_s24  ;;  %p1846_p5 = scmp.lt.s32.totalorder %s1840_s24, %s1840_s24 }
   0xa   :  { %p1847_p6 = por %p1846_p5, %p1845_p4 }
   0xc   :  { %p1848_p7 = pnand %p1847_p6, %p1841_p3 }
   0xe   :  { %1851 = shalt.err (!%p1848_p7)
}
   0xf   :  { %s1855_s25 = smov 64   ;;  %s1856_s26 = smov 4  }
  0x10   :  { %25 = dma.hbm_to_vmem [thread:$0]  %s2209_s2, 2048, %s20_s16, [#allocation4], %s1855_s25, %s1855_s25, %s1856_s26  }
  0x11   :  { %1852 = dma.done.wait [#allocation4], 2048  }
  0x12   :  { %1853 = vsyncadd [#allocation4], 4294965248  ;;  %v1857_v0 = vmov 0.0   ;;  %vm36_vm0 = vcmask 254976   ;;  %vm1858_vm1 = vmmov 0   ;;  %vm106_vm2 = vcmask 1041408  }
  0x13   :  { %1615 = vmatprep.subr.bf16.mxu0 %v1857_v0  ;;  %1623 = vmatprep.subr.bf16.mxu1 %v1857_v0  ;;  %37 = vst.msk [vmem:[#allocation2] sm:$0x3] %vm36_vm0, %v1857_v0  ;;  %vm102_vm3 = vcmask 31744   ;;  %v1734_v1 = vld [vmem:[#allocation3] sm:$0xff]   ;;  %vm58_vm4 = vcmask 261120   ;;  %v1735_v4 = vld [vmem:[#allocation3 + $0x8] sm:$0xff]  }
  0x14   :  { %1625 = vmatprep.mubr.msk.bf16.mxu1 %vm1858_vm1, %v1857_v0  ;;  %1619 = vmatprep.mubr.msk.bf16.mxu0 %vm1858_vm1, %v1857_v0  ;;  %v40_v2 = vld [vmem:[%s2208_s1] sm:$0x3]  ;;  %s1859_s8 = smov 32   ;;  %v1736_v31 = vld [vmem:[#allocation3 + $0x10] sm:$0xff]   ;;  %v1499_v32 = vld [vmem:[%s2208_s1 + $0x2] sm:$0x3] }
  0x15   :  { %1616 = vmatpush3.bf16.msra.mxu0 %v1734_v1  ;;  %v108_v3 = vsel %vm106_vm2, %v40_v2, 0  ;;  %v38_v5 = vld [vmem:[%s2207_s0] sm:$0x1]  ;;  %v289_v33 = vsel %vm106_vm2, %v1499_v32, 0  ;;  %v1498_v35 = vld [vmem:[%s2207_s0 + $0x1] sm:$0x1] }
  0x16   :  { %1624 = vmatpush3.bf16.msra.mxu1 %v108_v3  ;;  %1617 = vmatprep.subr.bf16.mxu0 %v1857_v0  ;;  %v1495_v12 = vld [vmem:[%s2210_s3] ss:$0 sm:$0xff]  ;;  %v1505_v46 = vld [vmem:[%s2210_s3 + $0x1] ss:$0 sm:$0xff]  ;;  %v1738_v1 = vld [vmem:[#allocation3 + $0x20] sm:$0xff]   ;;  %vm217_vm9 = vcmask 253952  }
  0x17   :  { %1629 = vmatprep.subr.bf16.mxu1 %v1857_v0  ;;  %v1737_v34 = vld [vmem:[#allocation3 + $0x18] sm:$0xff]   ;;  %v1510_v2 = vld [vmem:[%s2208_s1 + $0x4] sm:$0x3] }
  0x18   :  { %v470_v3 = vsel %vm106_vm2, %v1510_v2, 0 }
  0x19   :  { %1618 = vmatpush3.bf16.msra.mxu0 %v1735_v4  ;;  %1626 = vmatmul.mubr.msk.bf16.vlgmr.msra.gmra.mrb[0].mxu1 %vm102_vm3, %v38_v5  ;;  %v1739_v4 = vld [vmem:[#allocation3 + $0x28] sm:$0xff]   ;;  %v1509_v5 = vld [vmem:[%s2207_s0 + $0x2] sm:$0x1] }
  0x1a   :  { %v39_v6 = vld [vmem:[#allocation2] sm:$0x3]  ;;  %1637 = vmatprep.subr.bf16.mxu0 %v1857_v0  ;;  %1633 = vmatprep.mubr.msk.bf16.mxu1 %vm1858_vm1, %v1857_v0 }
  0x1b   :  { %v41_v7 = vpack.c.bf16 %v39_v6, %v39_v6  ;;  %1630 = vmatpush3.bf16.msra.mxu1 %v1736_v31 }
  0x1c   :  { %1631 = vmatprep.subr.bf16.mxu1 %v1857_v0 }
  0x1d   :  { %1620 = vmatmul.mubr.msk.bf16.vlgmr.msra.gmra.mrb[0].mxu0 %vm58_vm4, %v41_v7 }
  0x1e   :  { %1639 = vmatprep.mubr.msk.bf16.mxu0 %vm1858_vm1, %v1857_v0  ;;  %1638 = vmatpush3.bf16.msra.mxu0 %v289_v33 }
  0x1f   :  { %1651 = vmatprep.subr.bf16.mxu0 %v1857_v0  ;;  %1632 = vmatpush3.bf16.msra.mxu1 %v1737_v34  ;;  %v1740_v34 = vld [vmem:[#allocation3 + $0x30] sm:$0xff]  }
  0x20   :  { %1643 = vmatprep.subr.bf16.mxu1 %v1857_v0 }
  0x25   :  { %1640 = vmatmul.mubr.msk.bf16.vlgmr.msra.gmra.mrb[4].mxu0 %vm102_vm3, %v1498_v35  ;;  %v1521_v35 = vld [vmem:[%s2208_s1 + $0x6] sm:$0x3] }
  0x26   :  { %1653 = vmatprep.mubr.msk.bf16.mxu0 %vm1858_vm1, %v1857_v0  ;;  %1652 = vmatpush3.bf16.msra.mxu0 %v470_v3 }
  0x27   :  { %1665 = vmatprep.subr.bf16.mxu0 %v1857_v0 }
  0x2d   :  { %1654 = vmatmul.mubr.msk.bf16.vlgmr.msra.gmra.mrb[8].mxu0 %vm102_vm3, %v1509_v5  ;;  %v1742_v5 = vld [vmem:[#allocation3 + $0x40] sm:$0xff]  }
  0x2e   :  { %1667 = vmatprep.mubr.msk.bf16.mxu0 %vm1858_vm1, %v1857_v0 }
  0xec   :  { %v144_v8 = vpop.f32.mrb[0].mxu1 }
  0xed   :  { %v1627_v9 = vpop.f32.mrb[1].mxu1 }
  0xee   :  { %v147_v10 = vpop.f32.mrb[2].mxu1 }
  0xef   :  { %v1628_v13 = vpop.f32.mrb[3].mxu1 }
  0xf0   :  { %v96_v11 = vpop.f32.mrb[0].mxu0 }
  0xf1   :  { %v145_v14 = vadd.f32 %v144_v8, %v96_v11  ;;  %v1621_v15 = vpop.f32.mrb[1].mxu0 }
  0xf2   :  { %v99_v16 = vpop.f32.mrb[2].mxu0 }
  0xf3   :  { %v157_v17 = vadd.f32 %v1495_v12, %v145_v14  ;;  %v1622_v18 = vpop.f32.mrb[3].mxu0  ;;  %v1516_v16 = vld [vmem:[%s2210_s3 + $0x2] ss:$0 sm:$0xff] }
  0xf5   :  { %1750 = vtanh.f32 %v157_v17  ;;  %v1496_v20 = vmul.f32 -1.442695, %v157_v17 }
  0xf7   :  { %1752 = vpow2.f32 %v1496_v20 }
  0xf8   :  { %v325_v41 = vpop.f32.mrb[4].mxu0 }
  0xf9   :  { %v1641_v42 = vpop.f32.mrb[5].mxu0 }
  0xfa   :  { %v328_v43 = vpop.f32.mrb[6].mxu0 }
  0xfb   :  { %v1642_v44 = vpop.f32.mrb[7].mxu0 }
  0xff   :  { %v1751_v19 = vpop.eup %1750 }
 0x100   :  { %171 = vrot.lane.b32.xlu0 %v1751_v19, %s1855_s25  ;;  %v506_v11 = vpop.f32.mrb[8].mxu0 }
 0x101   :  { %v1753_v21 = vpop.eup %1752  ;;  %v1655_v12 = vpop.f32.mrb[9].mxu0 }
 0x102   :  { %v161_v22 = vadd.f32 1.0, %v1753_v21  ;;  %v509_v13 = vpop.f32.mrb[10].mxu0 }
 0x103   :  { %v1656_v14 = vpop.f32.mrb[11].mxu0 }
 0x104   :  { %166 = vrot.lane.b32.xlu0 %v39_v6, %s1859_s8  ;;  %1754 = vrcp.f32 %v161_v22 }
 0x10e   :  { %v1755_v23 = vpop.eup %1754 }
 0x172   :  { %v172_v24 = vpop.permute.xlu0 %171 }
 0x173   :  { %v174_v25 = vmul.f32 %v1755_v23, %v172_v24 }
 0x175   :  { %176 = vrot.lane.b32.xlu1 %v174_v25, %s1859_s8 }
 0x176   :  { %v167_v26 = vpop.permute.xlu0 %166 }
 0x177   :  { %v169_v27 = vmul.f32 %v1755_v23, %v167_v26 }
 0x1e7   :  { %v177_v28 = vpop.permute.xlu1 %176 }
 0x1e8   :  { %v179_v29 = vadd.f32 %v177_v28, %v169_v27 }
 0x1ea   :  { %1756 = vtanh.f32 %v179_v29 }
 0x1f4   :  { %v1757_v30 = vpop.eup %1756 }
 0x1f5   :  { %182 = vrot.lane.b32.xlu1 %v1757_v30, %s1855_s25 }
 0x267   :  { %v183_v36 = vpop.permute.xlu1 %182 }
 0x268   :  { %v1944_v37 = vmul.f32 %v1755_v23, %v183_v36  ;;  %v651_v36 = vsel %vm106_vm2, %v1521_v35, 0 }
 0x269   :  { %1666 = vmatpush3.bf16.msra.mxu0 %v651_v36 }
 0x26a   :  { %187 = vrot.lane.b32.xlu0 %v1944_v37, %s1859_s8  ;;  %1679 = vmatprep.subr.bf16.mxu0 %v1857_v0  ;;  %vm192_vm5 = vcmp.gt.f32.partialorder %v1944_v37, 0.0 }
 0x2dc   :  { %v188_v38 = vpop.permute.xlu0 %187 }
 0x2dd   :  { %191 = vst.msk [vmem:[#allocation2] sm:$0x3] %vm36_vm0, %v188_v38  ;;  %v1741_v38 = vld [vmem:[#allocation3 + $0x38] sm:$0xff]  }
 0x2e4   :  { %v221_v39 = vld [vmem:[#allocation2] sm:$0x3] }
 0x2e5   :  { %348 = vrot.lane.b32.xlu0 %v221_v39, %s1859_s8  ;;  %v224_v40 = vpack.c.bf16 %v221_v39, %v221_v39  ;;  %v1520_v39 = vld [vmem:[%s2207_s0 + $0x3] sm:$0x1] }
 0x2e6   :  { %1668 = vmatmul.mubr.msk.bf16.vlgmr.msra.gmra.mrb[12].mxu0 %vm102_vm3, %v1520_v39 }
 0x2e7   :  { %1634 = vmatmul.mubr.msk.bf16.vlgmr.msra.gmra.mrb[4].mxu1 %vm58_vm4, %v224_v40  ;;  %1681 = vmatprep.mubr.msk.bf16.mxu0 %vm1858_vm1, %v1857_v0 }
 0x2e8   :  { %1647 = vmatprep.mubr.msk.bf16.mxu1 %vm1858_vm1, %v1857_v0  ;;  %1644 = vmatpush3.bf16.msra.mxu1 %v1738_v1 }
 0x2e9   :  { %1645 = vmatprep.subr.bf16.mxu1 %v1857_v0 }
 0x2ec   :  { %1646 = vmatpush3.bf16.msra.mxu1 %v1739_v4 }
 0x2ed   :  { %1657 = vmatprep.subr.bf16.mxu1 %v1857_v0 }
 0x357   :  { %v349_v59 = vpop.permute.xlu0 %348 }
 0x3ba   :  { %v279_v45 = vpop.f32.mrb[4].mxu1 }
 0x3bb   :  { %v326_v47 = vadd.f32 %v325_v41, %v279_v45  ;;  %v1635_v48 = vpop.f32.mrb[5].mxu1  ;;  %v687_v45 = vpop.f32.mrb[12].mxu0 }
 0x3bc   :  { %v282_v49 = vpop.f32.mrb[6].mxu1 }
 0x3bd   :  { %v339_v50 = vadd.f32 %v1505_v46, %v326_v47  ;;  %v1636_v51 = vpop.f32.mrb[7].mxu1  ;;  %v1669_v46 = vpop.f32.mrb[13].mxu0 }
 0x3be   :  { %v690_v47 = vpop.f32.mrb[14].mxu0 }
 0x3bf   :  { %1758 = vtanh.f32 %v339_v50  ;;  %v1506_v53 = vmul.f32 -1.442695, %v339_v50  ;;  %v1670_v48 = vpop.f32.mrb[15].mxu0  ;;  %v1527_v50 = vld [vmem:[%s2210_s3 + $0x3] ss:$0 sm:$0xff] }
 0x3c1   :  { %1760 = vpow2.f32 %v1506_v53 }
 0x3c9   :  { %v1759_v52 = vpop.eup %1758 }
 0x3ca   :  { %353 = vrot.lane.b32.xlu1 %v1759_v52, %s1855_s25 }
 0x3cb   :  { %v1761_v54 = vpop.eup %1760 }
 0x3cc   :  { %v343_v55 = vadd.f32 1.0, %v1761_v54 }
 0x3ce   :  { %1762 = vrcp.f32 %v343_v55 }
 0x3d8   :  { %v1763_v56 = vpop.eup %1762 }
 0x3d9   :  { %v351_v60 = vmul.f32 %v1763_v56, %v349_v59 }
 0x43c   :  { %v354_v57 = vpop.permute.xlu1 %353 }
 0x43d   :  { %v356_v58 = vmul.f32 %v1763_v56, %v354_v57 }
 0x43f   :  { %358 = vrot.lane.b32.xlu1 %v356_v58, %s1859_s8 }
 0x4b1   :  { %v359_v61 = vpop.permute.xlu1 %358 }
 0x4b2   :  { %v361_v62 = vadd.f32 %v359_v61, %v351_v60 }
 0x4b4   :  { %1764 = vtanh.f32 %v361_v62 }
 0x4be   :  { %v1765_v63 = vpop.eup %1764 }
 0x4bf   :  { %364 = vrot.lane.b32.xlu0 %v1765_v63, %s1855_s25 }
 0x531   :  { %v365_v6 = vpop.permute.xlu0 %364 }
 0x532   :  { %v1972_v7 = vmul.f32 %v1763_v56, %v365_v6  ;;  %v1532_v6 = vld [vmem:[%s2208_s1 + $0x8] sm:$0x3] }
 0x534   :  { %369 = vrot.lane.b32.xlu1 %v1972_v7, %s1859_s8  ;;  %vm373_vm10 = vcmp.gt.f32.partialorder %v1972_v7, 0.0 }
 0x5a6   :  { %v370_v8 = vpop.permute.xlu1 %369 }
 0x5a7   :  { %372 = vst.msk [vmem:[#allocation2] sm:$0x3] %vm36_vm0, %v370_v8  ;;  %v832_v8 = vsel %vm106_vm2, %v1532_v6, 0 }
 0x5a8   :  { %1680 = vmatpush3.bf16.msra.mxu0 %v832_v8 }
 0x5a9   :  { %1693 = vmatprep.subr.bf16.mxu0 %v1857_v0 }
 0x5ae   :  { %v402_v9 = vld [vmem:[#allocation2] sm:$0x3] }
 0x5af   :  { %529 = vrot.lane.b32.xlu1 %v402_v9, %s1859_s8  ;;  %v405_v10 = vpack.c.bf16 %v402_v9, %v402_v9  ;;  %v1743_v9 = vld [vmem:[#allocation3 + $0x48] sm:$0xff]  }
 0x5b1   :  { %1648 = vmatmul.mubr.msk.bf16.vlgmr.msra.gmra.mrb[8].mxu1 %vm58_vm4, %v405_v10  ;;  %v1531_v10 = vld [vmem:[%s2207_s0 + $0x4] sm:$0x1] }
 0x5b2   :  { %1661 = vmatprep.mubr.msk.bf16.mxu1 %vm1858_vm1, %v1857_v0  ;;  %1658 = vmatpush3.bf16.msra.mxu1 %v1740_v34 }
 0x5b3   :  { %1659 = vmatprep.subr.bf16.mxu1 %v1857_v0  ;;  %1682 = vmatmul.mubr.msk.bf16.vlgmr.msra.gmra.mrb[16].mxu0 %vm102_vm3, %v1531_v10 }
 0x5b4   :  { %1695 = vmatprep.mubr.msk.bf16.mxu0 %vm1858_vm1, %v1857_v0 }
 0x5b6   :  { %1660 = vmatpush3.bf16.msra.mxu1 %v1741_v38 }
 0x5b7   :  { %1671 = vmatprep.subr.bf16.mxu1 %v1857_v0 }
 0x621   :  { %v530_v29 = vpop.permute.xlu1 %529 }
 0x684   :  { %v460_v15 = vpop.f32.mrb[8].mxu1 }
 0x685   :  { %v507_v17 = vadd.f32 %v506_v11, %v460_v15  ;;  %v1649_v18 = vpop.f32.mrb[9].mxu1 }
 0x686   :  { %v463_v19 = vpop.f32.mrb[10].mxu1 }
 0x687   :  { %v520_v20 = vadd.f32 %v1516_v16, %v507_v17  ;;  %v1650_v21 = vpop.f32.mrb[11].mxu1  ;;  %v868_v16 = vpop.f32.mrb[16].mxu0 }
 0x688   :  { %v1683_v17 = vpop.f32.mrb[17].mxu0  ;;  %v1538_v21 = vld [vmem:[%s2210_s3 + $0x4] ss:$0 sm:$0xff] }
 0x689   :  { %1766 = vtanh.f32 %v520_v20  ;;  %v1517_v23 = vmul.f32 -1.442695, %v520_v20  ;;  %v871_v18 = vpop.f32.mrb[18].mxu0  ;;  %v1553_v17 = vld [vmem:[%s2207_s0 + $0x6] sm:$0x1] }
 0x68a   :  { %v1684_v19 = vpop.f32.mrb[19].mxu0 }
 0x68b   :  { %1768 = vpow2.f32 %v1517_v23 }
 0x693   :  { %v1767_v22 = vpop.eup %1766 }
 0x694   :  { %534 = vrot.lane.b32.xlu0 %v1767_v22, %s1855_s25 }
 0x695   :  { %v1769_v24 = vpop.eup %1768 }
 0x696   :  { %v524_v25 = vadd.f32 1.0, %v1769_v24 }
 0x698   :  { %1770 = vrcp.f32 %v524_v25 }
 0x6a2   :  { %v1771_v26 = vpop.eup %1770 }
 0x6a3   :  { %v532_v30 = vmul.f32 %v1771_v26, %v530_v29 }
 0x706   :  { %v535_v27 = vpop.permute.xlu0 %534 }
 0x707   :  { %v537_v28 = vmul.f32 %v1771_v26, %v535_v27 }
 0x709   :  { %539 = vrot.lane.b32.xlu0 %v537_v28, %s1859_s8 }
 0x77b   :  { %v540_v31 = vpop.permute.xlu0 %539 }
 0x77c   :  { %v542_v32 = vadd.f32 %v540_v31, %v532_v30 }
 0x77e   :  { %1772 = vtanh.f32 %v542_v32 }
 0x788   :  { %v1773_v33 = vpop.eup %1772 }
 0x789   :  { %545 = vrot.lane.b32.xlu1 %v1773_v33, %s1855_s25 }
 0x7fb   :  { %v546_v40 = vpop.permute.xlu1 %545 }
 0x7fc   :  { %v2000_v41 = vmul.f32 %v1771_v26, %v546_v40  ;;  %v1744_v40 = vld [vmem:[#allocation3 + $0x50] sm:$0xff]  }
 0x7fe   :  { %550 = vrot.lane.b32.xlu0 %v2000_v41, %s1859_s8  ;;  %vm554_vm6 = vcmp.gt.f32.partialorder %v2000_v41, 0.0 }
 0x870   :  { %v551_v42 = vpop.permute.xlu0 %550 }
 0x871   :  { %553 = vst.msk [vmem:[#allocation2] sm:$0x3] %vm36_vm0, %v551_v42  ;;  %v1543_v42 = vld [vmem:[%s2208_s1 + $0xa] sm:$0x3] }
 0x878   :  { %v583_v43 = vld [vmem:[#allocation2] sm:$0x3] }
 0x879   :  { %710 = vrot.lane.b32.xlu0 %v583_v43, %s1859_s8  ;;  %v586_v44 = vpack.c.bf16 %v583_v43, %v583_v43  ;;  %v1013_v43 = vsel %vm106_vm2, %v1543_v42, 0 }
 0x87a   :  { %1694 = vmatpush3.bf16.msra.mxu0 %v1013_v43 }
 0x87b   :  { %1662 = vmatmul.mubr.msk.bf16.vlgmr.msra.gmra.mrb[12].mxu1 %vm58_vm4, %v586_v44  ;;  %v1745_v44 = vld [vmem:[#allocation3 + $0x58] sm:$0xff]   ;;  %1707 = vmatprep.subr.bf16.mxu0 %v1857_v0 }
 0x87c   :  { %1675 = vmatprep.mubr.msk.bf16.mxu1 %vm1858_vm1, %v1857_v0  ;;  %1672 = vmatpush3.bf16.msra.mxu1 %v1742_v5 }
 0x87d   :  { %1673 = vmatprep.subr.bf16.mxu1 %v1857_v0 }
 0x880   :  { %1674 = vmatpush3.bf16.msra.mxu1 %v1743_v9 }
 0x881   :  { %1685 = vmatprep.subr.bf16.mxu1 %v1857_v0 }
 0x8eb   :  { %v711_v63 = vpop.permute.xlu0 %710 }
 0x94e   :  { %v641_v49 = vpop.f32.mrb[12].mxu1 }
 0x94f   :  { %v688_v51 = vadd.f32 %v687_v45, %v641_v49  ;;  %v1663_v52 = vpop.f32.mrb[13].mxu1  ;;  %v1542_v45 = vld [vmem:[%s2207_s0 + $0x5] sm:$0x1] }
 0x950   :  { %v644_v53 = vpop.f32.mrb[14].mxu1  ;;  %1696 = vmatmul.mubr.msk.bf16.vlgmr.msra.gmra.mrb[20].mxu0 %vm102_vm3, %v1542_v45 }
 0x951   :  { %v701_v54 = vadd.f32 %v1527_v50, %v688_v51  ;;  %v1664_v55 = vpop.f32.mrb[15].mxu1  ;;  %1709 = vmatprep.mubr.msk.bf16.mxu0 %vm1858_vm1, %v1857_v0 }
 0x953   :  { %1774 = vtanh.f32 %v701_v54  ;;  %v1528_v57 = vmul.f32 -1.442695, %v701_v54 }
 0x955   :  { %1776 = vpow2.f32 %v1528_v57 }
 0x95d   :  { %v1775_v56 = vpop.eup %1774 }
 0x95e   :  { %715 = vrot.lane.b32.xlu1 %v1775_v56, %s1855_s25  ;;  %v1549_v56 = vld [vmem:[%s2210_s3 + $0x5] ss:$0 sm:$0xff] }
 0x95f   :  { %v1777_v58 = vpop.eup %1776 }
 0x960   :  { %v705_v59 = vadd.f32 1.0, %v1777_v58 }
 0x962   :  { %1778 = vrcp.f32 %v705_v59 }
 0x96c   :  { %v1779_v60 = vpop.eup %1778 }
 0x96d   :  { %v713_v1 = vmul.f32 %v1779_v60, %v711_v63 }
 0x9d0   :  { %v716_v61 = vpop.permute.xlu1 %715 }
 0x9d1   :  { %v718_v62 = vmul.f32 %v1779_v60, %v716_v61 }
 0x9d3   :  { %720 = vrot.lane.b32.xlu1 %v718_v62, %s1859_s8 }
 0xa23   :  { %v1049_v51 = vpop.f32.mrb[20].mxu0 }
 0xa24   :  { %v1697_v52 = vpop.f32.mrb[21].mxu0 }
 0xa25   :  { %v1052_v53 = vpop.f32.mrb[22].mxu0  ;;  %v1749_v52 = vld [vmem:[#allocation3 + $0x78] sm:$0xff]  }
 0xa26   :  { %v1698_v54 = vpop.f32.mrb[23].mxu0  ;;  %v1564_v53 = vld [vmem:[%s2207_s0 + $0x7] sm:$0x1] }
 0xa45   :  { %v721_v2 = vpop.permute.xlu1 %720 }
 0xa46   :  { %v723_v3 = vadd.f32 %v721_v2, %v713_v1 }
 0xa48   :  { %1780 = vtanh.f32 %v723_v3 }
 0xa52   :  { %v1781_v4 = vpop.eup %1780 }
 0xa53   :  { %726 = vrot.lane.b32.xlu0 %v1781_v4, %s1855_s25 }
 0xac5   :  { %v727_v11 = vpop.permute.xlu0 %726 }
 0xac6   :  { %v2028_v12 = vmul.f32 %v1779_v60, %v727_v11 }
 0xac8   :  { %731 = vrot.lane.b32.xlu1 %v2028_v12, %s1859_s8  ;;  %vm735_vm11 = vcmp.gt.f32.partialorder %v2028_v12, 0.0 }
 0xb3a   :  { %v732_v13 = vpop.permute.xlu1 %731 }
 0xb3b   :  { %734 = vst.msk [vmem:[#allocation2] sm:$0x3] %vm36_vm0, %v732_v13  ;;  %v1746_v13 = vld [vmem:[#allocation3 + $0x60] sm:$0xff]  }
 0xb42   :  { %v764_v14 = vld [vmem:[#allocation2] sm:$0x3] }
 0xb43   :  { %891 = vrot.lane.b32.xlu1 %v764_v14, %s1859_s8  ;;  %v767_v15 = vpack.c.bf16 %v764_v14, %v764_v14  ;;  %v1554_v14 = vld [vmem:[%s2208_s1 + $0xc] sm:$0x3] }
 0xb45   :  { %1676 = vmatmul.mubr.msk.bf16.vlgmr.msra.gmra.mrb[16].mxu1 %vm58_vm4, %v767_v15  ;;  %v1194_v15 = vsel %vm106_vm2, %v1554_v14, 0 }
 0xb46   :  { %1689 = vmatprep.mubr.msk.bf16.mxu1 %vm1858_vm1, %v1857_v0  ;;  %1686 = vmatpush3.bf16.msra.mxu1 %v1744_v40 }
 0xb47   :  { %1687 = vmatprep.subr.bf16.mxu1 %v1857_v0  ;;  %1708 = vmatpush3.bf16.msra.mxu0 %v1194_v15 }
 0xb48   :  { %1721 = vmatprep.subr.bf16.mxu0 %v1857_v0 }
 0xb4a   :  { %1688 = vmatpush3.bf16.msra.mxu1 %v1745_v44  ;;  %1710 = vmatmul.mubr.msk.bf16.vlgmr.msra.gmra.mrb[24].mxu0 %vm102_vm3, %v1553_v17 }
 0xb4b   :  { %1699 = vmatprep.subr.bf16.mxu1 %v1857_v0  ;;  %1723 = vmatprep.mubr.msk.bf16.mxu0 %vm1858_vm1, %v1857_v0 }
 0xbb5   :  { %v892_v34 = vpop.permute.xlu1 %891 }
 0xc18   :  { %v822_v20 = vpop.f32.mrb[16].mxu1 }
 0xc19   :  { %v869_v22 = vadd.f32 %v868_v16, %v822_v20  ;;  %v1677_v23 = vpop.f32.mrb[17].mxu1  ;;  %v1747_v16 = vld [vmem:[#allocation3 + $0x68] sm:$0xff]  }
 0xc1a   :  { %v825_v24 = vpop.f32.mrb[18].mxu1 }
 0xc1b   :  { %v882_v25 = vadd.f32 %v1538_v21, %v869_v22  ;;  %v1678_v26 = vpop.f32.mrb[19].mxu1 }
 0xc1d   :  { %1782 = vtanh.f32 %v882_v25  ;;  %v1539_v28 = vmul.f32 -1.442695, %v882_v25  ;;  %v1230_v23 = vpop.f32.mrb[24].mxu0 }
 0xc1e   :  { %v1711_v24 = vpop.f32.mrb[25].mxu0 }
 0xc1f   :  { %1784 = vpow2.f32 %v1539_v28  ;;  %v1233_v25 = vpop.f32.mrb[26].mxu0  ;;  %v1560_v28 = vld [vmem:[%s2210_s3 + $0x6] ss:$0 sm:$0xff]  ;;  %v203_v24 = vlaneseq }
 0xc20   :  { %v1712_v26 = vpop.f32.mrb[27].mxu0 }
 0xc27   :  { %v1783_v27 = vpop.eup %1782 }
 0xc28   :  { %896 = vrot.lane.b32.xlu0 %v1783_v27, %s1855_s25 }
 0xc29   :  { %v1785_v29 = vpop.eup %1784 }
 0xc2a   :  { %v886_v30 = vadd.f32 1.0, %v1785_v29 }
 0xc2c   :  { %1786 = vrcp.f32 %v886_v30 }
 0xc36   :  { %v1787_v31 = vpop.eup %1786 }
 0xc37   :  { %v894_v35 = vmul.f32 %v1787_v31, %v892_v34 }
 0xc9a   :  { %v897_v32 = vpop.permute.xlu0 %896 }
 0xc9b   :  { %v899_v33 = vmul.f32 %v1787_v31, %v897_v32 }
 0xc9d   :  { %901 = vrot.lane.b32.xlu0 %v899_v33, %s1859_s8 }
 0xd0f   :  { %v902_v36 = vpop.permute.xlu0 %901 }
 0xd10   :  { %v904_v38 = vadd.f32 %v902_v36, %v894_v35 }
 0xd12   :  { %1788 = vtanh.f32 %v904_v38 }
 0xd1c   :  { %v1789_v39 = vpop.eup %1788 }
 0xd1d   :  { %907 = vrot.lane.b32.xlu1 %v1789_v39, %s1855_s25 }
 0xd8f   :  { %v908_v46 = vpop.permute.xlu1 %907 }
 0xd90   :  { %v2056_v47 = vmul.f32 %v1787_v31, %v908_v46 }
 0xd92   :  { %912 = vrot.lane.b32.xlu0 %v2056_v47, %s1859_s8  ;;  %v917_v14 = vmin.f32 %v2056_v47, 0.0  ;;  %vm916_vm7 = vcmp.gt.f32.partialorder %v2056_v47, 0.0 }
 0xd94   :  { %v918_v15 = vmul.f32 1.442695, %v917_v14 }
 0xe04   :  { %v913_v48 = vpop.permute.xlu0 %912 }
 0xe05   :  { %915 = vst.msk [vmem:[#allocation2] sm:$0x3] %vm36_vm0, %v913_v48 }
 0xe0c   :  { %v945_v49 = vld [vmem:[#allocation2] sm:$0x3] }
 0xe0d   :  { %1072 = vrot.lane.b32.xlu0 %v945_v49, %s1859_s8  ;;  %v948_v50 = vpack.c.bf16 %v945_v49, %v945_v49  ;;  %v1748_v49 = vld [vmem:[#allocation3 + $0x70] sm:$0xff]  }
 0xe0f   :  { %1690 = vmatmul.mubr.msk.bf16.vlgmr.msra.gmra.mrb[20].mxu1 %vm58_vm4, %v948_v50  ;;  %v1565_v50 = vld [vmem:[%s2208_s1 + $0xe] sm:$0x3] }
 0xe10   :  { %1703 = vmatprep.mubr.msk.bf16.mxu1 %vm1858_vm1, %v1857_v0  ;;  %1700 = vmatpush3.bf16.msra.mxu1 %v1746_v13 }
 0xe11   :  { %1701 = vmatprep.subr.bf16.mxu1 %v1857_v0 }
 0xe14   :  { %1702 = vmatpush3.bf16.msra.mxu1 %v1747_v16 }
 0xe15   :  { %1713 = vmatprep.subr.bf16.mxu1 %v1857_v0 }
 0xe7f   :  { %v1073_v6 = vpop.permute.xlu0 %1072 }
 0xee2   :  { %v1003_v55 = vpop.f32.mrb[20].mxu1 }
 0xee3   :  { %v1050_v57 = vadd.f32 %v1049_v51, %v1003_v55  ;;  %v1691_v58 = vpop.f32.mrb[21].mxu1  ;;  %v1375_v51 = vsel %vm106_vm2, %v1565_v50, 0 }
 0xee4   :  { %v1006_v59 = vpop.f32.mrb[22].mxu1  ;;  %1722 = vmatpush3.bf16.msra.mxu0 %v1375_v51 }
 0xee5   :  { %v1063_v60 = vadd.f32 %v1549_v56, %v1050_v57  ;;  %v1692_v61 = vpop.f32.mrb[23].mxu1 }
 0xee7   :  { %1790 = vtanh.f32 %v1063_v60  ;;  %v1550_v63 = vmul.f32 -1.442695, %v1063_v60  ;;  %1724 = vmatmul.mubr.msk.bf16.vlgmr.msra.gmra.mrb[28].mxu0 %vm102_vm3, %v1564_v53 }
 0xee9   :  { %1792 = vpow2.f32 %v1550_v63  ;;  %v1571_v63 = vld [vmem:[%s2210_s3 + $0x7] ss:$0 sm:$0xff] }
 0xef1   :  { %v1791_v62 = vpop.eup %1790 }
 0xef2   :  { %1077 = vrot.lane.b32.xlu1 %v1791_v62, %s1855_s25 }
 0xef3   :  { %v1793_v1 = vpop.eup %1792 }
 0xef4   :  { %v1067_v2 = vadd.f32 1.0, %v1793_v1 }
 0xef6   :  { %1794 = vrcp.f32 %v1067_v2 }
 0xf00   :  { %v1795_v3 = vpop.eup %1794 }
 0xf01   :  { %v1075_v8 = vmul.f32 %v1795_v3, %v1073_v6 }
 0xf64   :  { %v1078_v4 = vpop.permute.xlu1 %1077 }
 0xf65   :  { %v1080_v5 = vmul.f32 %v1795_v3, %v1078_v4 }
 0xf67   :  { %1082 = vrot.lane.b32.xlu1 %v1080_v5, %s1859_s8 }
 0xfba   :  { %v1411_v59 = vpop.f32.mrb[28].mxu0 }
 0xfd9   :  { %v1083_v9 = vpop.permute.xlu1 %1082 }
 0xfda   :  { %v1085_v10 = vadd.f32 %v1083_v9, %v1075_v8  ;;  %v193_v8 = vmin.f32 %v1944_v37, 0.0 }
 0xfdc   :  { %1796 = vtanh.f32 %v1085_v10  ;;  %v194_v10 = vmul.f32 1.442695, %v193_v8 }
 0xfe6   :  { %v1797_v11 = vpop.eup %1796 }
 0xfe7   :  { %1088 = vrot.lane.b32.xlu0 %v1797_v11, %s1855_s25  ;;  %v555_v11 = vmin.f32 %v2000_v41, 0.0 }
 0xfe9   :  { %v556_v13 = vmul.f32 1.442695, %v555_v11 }
0x1059   :  { %v1089_v18 = vpop.permute.xlu0 %1088 }
0x105a   :  { %v2084_v19 = vmul.f32 %v1795_v3, %v1089_v18 }
0x105c   :  { %1093 = vrot.lane.b32.xlu1 %v2084_v19, %s1859_s8  ;;  %vm1097_vm12 = vcmp.gt.f32.partialorder %v2084_v19, 0.0 }
0x10ce   :  { %v1094_v20 = vpop.permute.xlu1 %1093 }
0x10cf   :  { %1096 = vst.msk [vmem:[#allocation2] sm:$0x3] %vm36_vm0, %v1094_v20 }
0x10d6   :  { %v1126_v21 = vld [vmem:[#allocation2] sm:$0x3] }
0x10d7   :  { %1253 = vrot.lane.b32.xlu1 %v1126_v21, %s1859_s8  ;;  %v1129_v22 = vpack.c.bf16 %v1126_v21, %v1126_v21 }
0x10d9   :  { %1704 = vmatmul.mubr.msk.bf16.vlgmr.msra.gmra.mrb[24].mxu1 %vm58_vm4, %v1129_v22  ;;  %v1860_v22 = vmov 1966171168  }
0x10da   :  { %1717 = vmatprep.mubr.msk.bf16.mxu1 %vm1858_vm1, %v1857_v0  ;;  %1714 = vmatpush3.bf16.msra.mxu1 %v1748_v49 }
0x10db   :  { %1715 = vmatprep.subr.bf16.mxu1 %v1857_v0  ;;  %v1725_v0 = vpop.f32.mrb[29].mxu0 }
0x10dc   :  { %v1414_v60 = vpop.f32.mrb[30].mxu0 }
0x10dd   :  { %v1726_v61 = vpop.f32.mrb[31].mxu0 }
0x10de   :  { %1716 = vmatpush3.bf16.msra.mxu1 %v1749_v52 }
0x1149   :  { %v1254_v43 = vpop.permute.xlu1 %1253 }
0x11ac   :  { %v1184_v27 = vpop.f32.mrb[24].mxu1 }
0x11ad   :  { %v1231_v29 = vadd.f32 %v1230_v23, %v1184_v27  ;;  %v1705_v30 = vpop.f32.mrb[25].mxu1  ;;  %v201_v23 = vunpack.c.l.s4 %v1860_v22 }
0x11ae   :  { %v1187_v31 = vpop.f32.mrb[26].mxu1 }
0x11af   :  { %v1244_v32 = vadd.f32 %v1560_v28, %v1231_v29  ;;  %v1706_v33 = vpop.f32.mrb[27].mxu1  ;;  %v202_v27 = vunpack.c.0.s8 %v201_v23  ;;  %v204_v28 = vshrl.u32 %v203_v24, 7 }
0x11b1   :  { %1798 = vtanh.f32 %v1244_v32  ;;  %v1561_v35 = vmul.f32 -1.442695, %v1244_v32  ;;  %v2126_v33 = vsub.s32 %v202_v27, %v204_v28 }
0x11b3   :  { %1800 = vpow2.f32 %v1561_v35 }
0x11bb   :  { %v1799_v34 = vpop.eup %1798 }
0x11bc   :  { %1258 = vrot.lane.b32.xlu0 %v1799_v34, %s1855_s25 }
0x11bd   :  { %v1801_v36 = vpop.eup %1800 }
0x11be   :  { %v1248_v38 = vadd.f32 1.0, %v1801_v36 }
0x11c0   :  { %1802 = vrcp.f32 %v1248_v38 }
0x11ca   :  { %v1803_v39 = vpop.eup %1802 }
0x11cb   :  { %v1256_v44 = vmul.f32 %v1803_v39, %v1254_v43 }
0x122e   :  { %v1259_v40 = vpop.permute.xlu0 %1258 }
0x122f   :  { %v1261_v42 = vmul.f32 %v1803_v39, %v1259_v40 }
0x1231   :  { %1263 = vrot.lane.b32.xlu0 %v1261_v42, %s1859_s8 }
0x12a3   :  { %v1264_v45 = vpop.permute.xlu0 %1263 }
0x12a4   :  { %v1266_v46 = vadd.f32 %v1264_v45, %v1256_v44 }
0x12a6   :  { %1804 = vtanh.f32 %v1266_v46 }
0x12b0   :  { %v1805_v48 = vpop.eup %1804 }
0x12b1   :  { %1269 = vrot.lane.b32.xlu1 %v1805_v48, %s1855_s25 }
0x1323   :  { %v1270_v54 = vpop.permute.xlu1 %1269 }
0x1324   :  { %v2108_v55 = vmul.f32 %v1803_v39, %v1270_v54  ;;  %v374_v54 = vmin.f32 %v1972_v7, 0.0 }
0x1326   :  { %1274 = vrot.lane.b32.xlu0 %v2108_v55, %s1859_s8  ;;  %v1279_v16 = vmin.f32 %v2108_v55, 0.0  ;;  %vm1278_vm8 = vcmp.gt.f32.partialorder %v2108_v55, 0.0 }
0x1328   :  { %v1280_v18 = vmul.f32 1.442695, %v1279_v16 }
0x1398   :  { %v1275_v56 = vpop.permute.xlu0 %1274 }
0x1399   :  { %1277 = vst.msk [vmem:[#allocation2] sm:$0x3] %vm36_vm0, %v1275_v56  ;;  %v736_v56 = vmin.f32 %v2028_v12, 0.0 }
0x13a0   :  { %v1307_v57 = vld [vmem:[#allocation2] sm:$0x3] }
0x13a1   :  { %1434 = vrot.lane.b32.xlu0 %v1307_v57, %s1859_s8  ;;  %v1310_v58 = vpack.c.bf16 %v1307_v57, %v1307_v57  ;;  %v737_v57 = vmul.f32 1.442695, %v736_v56 }
0x13a3   :  { %1718 = vmatmul.mubr.msk.bf16.vlgmr.msra.gmra.mrb[28].mxu1 %vm58_vm4, %v1310_v58  ;;  %v1098_v58 = vmin.f32 %v2084_v19, 0.0 }
0x1413   :  { %v1435_v60 = vpop.permute.xlu0 %1434 }
0x1476   :  { %v1365_v62 = vpop.f32.mrb[28].mxu1 }
0x1477   :  { %v1412_v1 = vadd.f32 %v1411_v59, %v1365_v62  ;;  %v1719_v2 = vpop.f32.mrb[29].mxu1  ;;  %v1099_v59 = vmul.f32 1.442695, %v1098_v58 }
0x1478   :  { %v1368_v3 = vpop.f32.mrb[30].mxu1 }
0x1479   :  { %v1425_v4 = vadd.f32 %v1571_v63, %v1412_v1  ;;  %v1720_v5 = vpop.f32.mrb[31].mxu1 }
0x147b   :  { %1806 = vtanh.f32 %v1425_v4  ;;  %v1572_v9 = vmul.f32 -1.442695, %v1425_v4 }
0x147d   :  { %1808 = vpow2.f32 %v1572_v9 }
0x147e   :  { %1810 = vpow2.f32 %v194_v10 }
0x147f   :  { %1812 = vpow2.f32 %v556_v13 }
0x1480   :  { %1814 = vpow2.f32 %v918_v15 }
0x1481   :  { %1816 = vpow2.f32 %v1280_v18 }
0x1485   :  { %v1807_v6 = vpop.eup %1806 }
0x1486   :  { %1439 = vrot.lane.b32.xlu1 %v1807_v6, %s1855_s25 }
0x1487   :  { %v1809_v17 = vpop.eup %1808 }
0x1488   :  { %v1429_v20 = vadd.f32 1.0, %v1809_v17  ;;  %v1811_v21 = vpop.eup %1810 }
0x1489   :  { %v1497_v25 = vadd.f32 -1.0, %v1811_v21  ;;  %v1813_v26 = vpop.eup %1812 }
0x148a   :  { %1818 = vrcp.f32 %v1429_v20  ;;  %v1518_v29 = vadd.f32 -1.0, %v1813_v26  ;;  %v1815_v31 = vpop.eup %1814 }
0x148b   :  { %v197_v30 = vsel %vm192_vm5, %v1944_v37, %v1497_v25  ;;  %v1540_v34 = vadd.f32 -1.0, %v1815_v31  ;;  %v1817_v36 = vpop.eup %1816 }
0x148c   :  { %v198_v32 = vpack.c.bf16 %v197_v30, %v197_v30  ;;  %v559_v35 = vsel %vm554_vm6, %v2000_v41, %v1518_v29  ;;  %v1562_v43 = vadd.f32 -1.0, %v1817_v36 }
0x148d   :  { %v560_v37 = vpack.c.bf16 %v559_v35, %v559_v35  ;;  %v921_v44 = vsel %vm916_vm7, %v2056_v47, %v1540_v34 }
0x148e   :  { %v206_v42 = vrot.slane %v198_v32, %v2126_v33  ;;  %v922_v46 = vpack.c.bf16 %v921_v44, %v921_v44  ;;  %v1283_v48 = vsel %vm1278_vm8, %v2108_v55, %v1562_v43  ;;  %v375_v55 = vmul.f32 1.442695, %v374_v54 }
0x148f   :  { %v568_v45 = vrot.slane %v560_v37, %v2126_v33  ;;  %v1284_v51 = vpack.c.bf16 %v1283_v48, %v1283_v48 }
0x1490   :  { %v213_v41 = vrot.slane %v206_v42, %v2126_v33  ;;  %v930_v50 = vrot.slane %v922_v46, %v2126_v33  ;;  %1820 = vpow2.f32 %v375_v55 }
0x1491   :  { %v575_v49 = vrot.slane %v568_v45, %v2126_v33  ;;  %v1292_v52 = vrot.slane %v1284_v51, %v2126_v33  ;;  %1822 = vpow2.f32 %v737_v57 }
0x1492   :  { %v937_v47 = vrot.slane %v930_v50, %v2126_v33  ;;  %1824 = vpow2.f32 %v1099_v59 }
0x1493   :  { %v1299_v53 = vrot.slane %v1292_v52, %v2126_v33 }
0x1494   :  { %v2129_v38 = vpop.eup %1818 }
0x1495   :  { %v1437_v61 = vmul.f32 %v2129_v38, %v1435_v60 }
0x149a   :  { %v1821_v0 = vpop.eup %1820 }
0x149b   :  { %v1507_v63 = vadd.f32 -1.0, %v1821_v0  ;;  %v1823_v2 = vpop.eup %1822 }
0x149c   :  { %v1529_v4 = vadd.f32 -1.0, %v1823_v2  ;;  %v1825_v6 = vpop.eup %1824 }
0x149d   :  { %v378_v5 = vsel %vm373_vm10, %v1972_v7, %v1507_v63  ;;  %v1551_v10 = vadd.f32 -1.0, %v1825_v6 }
0x149e   :  { %v379_v9 = vpack.c.bf16 %v378_v5, %v378_v5  ;;  %v740_v11 = vsel %vm735_vm11, %v2028_v12, %v1529_v4 }
0x149f   :  { %v741_v15 = vpack.c.bf16 %v740_v11, %v740_v11  ;;  %v1102_v16 = vsel %vm1097_vm12, %v2084_v19, %v1551_v10 }
0x14a0   :  { %v387_v14 = vrot.slane %v379_v9, %v2126_v33  ;;  %v1103_v20 = vpack.c.bf16 %v1102_v16, %v1102_v16 }
0x14a1   :  { %v749_v12 = vrot.slane %v741_v15, %v2126_v33 }
0x14a2   :  { %v394_v18 = vrot.slane %v387_v14, %v2126_v33  ;;  %v1111_v22 = vrot.slane %v1103_v20, %v2126_v33 }
0x14a3   :  { %v756_v21 = vrot.slane %v749_v12, %v2126_v33 }
0x14a4   :  { %v1118_v19 = vrot.slane %v1111_v22, %v2126_v33 }
0x14f8   :  { %v1440_v39 = vpop.permute.xlu1 %1439 }
0x14f9   :  { %v1442_v40 = vmul.f32 %v2129_v38, %v1440_v39 }
0x14fb   :  { %1444 = vrot.lane.b32.xlu1 %v1442_v40, %s1859_s8 }
0x14ff   :  { %214 = vrot.lane.b32.xlu1 %v213_v41, %s1859_s8 }
0x1503   :  { %576 = vrot.lane.b32.xlu1 %v575_v49, %s1859_s8 }
0x1507   :  { %938 = vrot.lane.b32.xlu1 %v937_v47, %s1859_s8 }
0x150b   :  { %1300 = vrot.lane.b32.xlu1 %v1299_v53, %s1859_s8 }
0x156d   :  { %v1445_v62 = vpop.permute.xlu1 %1444 }
0x156e   :  { %v1447_v1 = vadd.f32 %v1445_v62, %v1437_v61 }
0x1570   :  { %1826 = vtanh.f32 %v1447_v1 }
0x1571   :  { %v215_v3 = vpop.permute.xlu1 %214 }
0x1572   :  { %218 = vst.msk [vmem:[%s2211_s4] sm:$0x1] %vm217_vm9, %v215_v3 }
0x1575   :  { %v577_v8 = vpop.permute.xlu1 %576 }
0x1576   :  { %1519 = vst.msk [vmem:[%s2211_s4 + $0x2] sm:$0x1] %vm217_vm9, %v577_v8 }
0x1579   :  { %v939_v13 = vpop.permute.xlu1 %938 }
0x157a   :  { %v1827_v7 = vpop.eup %1826  ;;  %1541 = vst.msk [vmem:[%s2211_s4 + $0x4] sm:$0x1] %vm217_vm9, %v939_v13 }
0x157b   :  { %1450 = vrot.lane.b32.xlu0 %v1827_v7, %s1855_s25 }
0x157d   :  { %v1301_v17 = vpop.permute.xlu1 %1300 }
0x157e   :  { %1563 = vst.msk [vmem:[%s2211_s4 + $0x6] sm:$0x1] %vm217_vm9, %v1301_v17 }
0x157f   :  { %395 = vrot.lane.b32.xlu0 %v394_v18, %s1859_s8 }
0x1583   :  { %757 = vrot.lane.b32.xlu0 %v756_v21, %s1859_s8 }
0x1587   :  { %1119 = vrot.lane.b32.xlu0 %v1118_v19, %s1859_s8 }
0x15ed   :  { %v1451_v23 = vpop.permute.xlu0 %1450 }
0x15ee   :  { %v1453_v24 = vmul.f32 %v2129_v38, %v1451_v23 }
0x15f0   :  { %v1460_v25 = vmin.f32 %v1453_v24, 0.0  ;;  %1455 = vrot.lane.b32.xlu0 %v1453_v24, %s1859_s8  ;;  %vm1459_vm13 = vcmp.gt.f32.partialorder %v1453_v24, 0.0 }
0x15f1   :  { %v396_v26 = vpop.permute.xlu0 %395 }
0x15f2   :  { %v1461_v27 = vmul.f32 1.442695, %v1460_v25  ;;  %1508 = vst.msk [vmem:[%s2211_s4 + $0x1] sm:$0x1] %vm217_vm9, %v396_v26 }
0x15f4   :  { %1828 = vpow2.f32 %v1461_v27 }
0x15f5   :  { %v758_v28 = vpop.permute.xlu0 %757 }
0x15f6   :  { %1530 = vst.msk [vmem:[%s2211_s4 + $0x3] sm:$0x1] %vm217_vm9, %v758_v28 }
0x15f9   :  { %v1120_v29 = vpop.permute.xlu0 %1119 }
0x15fa   :  { %1552 = vst.msk [vmem:[%s2211_s4 + $0x5] sm:$0x1] %vm217_vm9, %v1120_v29 }
0x15fe   :  { %v1829_v30 = vpop.eup %1828 }
0x15ff   :  { %v1573_v31 = vadd.f32 -1.0, %v1829_v30 }
0x1601   :  { %v1464_v32 = vsel %vm1459_vm13, %v1453_v24, %v1573_v31 }
0x1602   :  { %v1465_v34 = vpack.c.bf16 %v1464_v32, %v1464_v32 }
0x1604   :  { %v1473_v35 = vrot.slane %v1465_v34, %v2126_v33 }
0x1606   :  { %v1480_v36 = vrot.slane %v1473_v35, %v2126_v33 }
0x1608   :  { %1481 = vrot.lane.b32.xlu1 %v1480_v36, %s1859_s8 }
0x1662   :  { %v1456_v38 = vpop.permute.xlu0 %1455 }
0x1663   :  { %1458 = vst.msk [vmem:[#allocation2] sm:$0x3] %vm36_vm0, %v1456_v38 }
0x167a   :  { %v1482_v39 = vpop.permute.xlu1 %1481 }
0x167b   :  { %1574 = vst.msk [vmem:[%s2211_s4 + $0x7] sm:$0x1] %vm217_vm9, %v1482_v39 }
0x167c   :  { %1490 = vsyncpa [#allocation4], 1 }

</bundles_post_ra>
